<compile_context>
chip_gen: v6e
topology: v6e:2x2x1
jax: 0.10.0
libtpu: 0.0.40
codegen_flags: <defaults>
</compile_context>

<pallas_src>
import jax
import jax.numpy as jnp
from jax import lax
from jax.experimental import pallas as pl
from jax.experimental.pallas import tpu as pltpu


def euler_fused_kernel(a_ref, x_ref, w1_ref, b1_ref, w2_ref, b2_ref,
                       wi_ref, bi_ref, wh_ref, bh_ref,
                       out_ref, g_ref, hseq_ref):
    """Fused 2-layer GCN (ReLU) + GRU forward.

    a_ref   [T, N, N]   normalized adjacency per timestep
    x_ref   [N, F]      node features
    w1_ref  [F, H], b1_ref [1, H]     GCN layer 1
    w2_ref  [H, H], b2_ref [1, H]     GCN layer 2
    wi_ref  [H, 3E], bi_ref [1, 3E]   GRU input proj (r|z|n), biases pre-folded
    wh_ref  [E, 3E], bh_ref [1, 3E]   GRU recurrent proj (r|z|n), bh=[0,0,b_hn]
    out_ref [T, N, E]                 GRU output (batch = T, sequence = N)
    g_ref   [N, T, 3E]  VMEM scratch  precomputed gate input projections
    hseq_ref[N, T, E]   VMEM scratch  hidden state per sequence (node) step
    """
    T, N, _ = a_ref.shape
    E = wh_ref.shape[0]

    # ---------------- GCN phase (statically unrolled over T) ----------------
    # X @ W1 is timestep-invariant: compute it once, hoisted out of the loop.
    xw = jnp.dot(x_ref[...], w1_ref[...], preferred_element_type=jnp.float32)
    w2 = w2_ref[...]
    wi = wi_ref[...]
    b1 = b1_ref[...]
    b2 = b2_ref[...]
    bi = bi_ref[...]
    for t in range(T):                                   # T is small & static
        a = a_ref[t]                                                 # [N, N]
        h1 = jnp.maximum(
            jnp.dot(a, xw, preferred_element_type=jnp.float32) + b1, 0.0)
        h2 = jnp.maximum(
            jnp.dot(a, jnp.dot(h1, w2, preferred_element_type=jnp.float32),
                    preferred_element_type=jnp.float32) + b2, 0.0)
        # Fused GRU input projection for all three gates: one wide
        # [N, H] @ [H, 3E] matmul per timestep, OUTSIDE the serial recurrence.
        g_ref[:, t, :] = (
            jnp.dot(h2, wi, preferred_element_type=jnp.float32) + bi)

    # ------------- GRU phase: recurrence over the node (sequence) axis ------
    wh = wh_ref[...]
    bh = bh_ref[...]

    def step(s, h):                                      # h: [T, E]
        gi = g_ref[s]                                    # [T, 3E]
        gh = jnp.dot(h, wh, preferred_element_type=jnp.float32) + bh
        r = jax.nn.sigmoid(gi[:, :E] + gh[:, :E])
        z = jax.nn.sigmoid(gi[:, E:2 * E] + gh[:, E:2 * E])
        n = jnp.tanh(gi[:, 2 * E:] + r * gh[:, 2 * E:])
        h_new = (1.0 - z) * n + z * h
        hseq_ref[s] = h_new
        return h_new

    lax.fori_loop(0, N, step, jnp.zeros((T, E), jnp.float32), unroll=True)

    # Repack node-major hidden states [N, T, E] to the [T, N, E] output with
    # static in-VMEM copies (no wrapper transpose / extra HBM round trip).
    for t in range(T):
        out_ref[t] = hseq_ref[:, t, :]


def euler_forward(x, a_hat, params):
    T, N, _ = a_hat.shape
    E = params["wh"].shape[0]
    return pl.pallas_call(
        euler_fused_kernel,
        out_shape=jax.ShapeDtypeStruct((T, N, E), jnp.float32),
        scratch_shapes=[
            pltpu.VMEM((N, T, 3 * E), jnp.float32),  # gate input projections
            pltpu.VMEM((N, T, E), jnp.float32),      # per-step hidden states
        ],
    )(a_hat, x, params["w1"], params["b1"], params["w2"], params["b2"],
      params["wi"], params["bi"], params["wh"], params["bh"])


def euler_reference(x, a_hat, raw):
    """Pure-JAX reference with un-fused weights/biases (validates folding)."""
    T = a_hat.shape[0]
    xw = x @ raw["w1"]
    zs = []
    for t in range(T):
        h1 = jax.nn.relu(a_hat[t] @ xw + raw["b1"])
        h2 = jax.nn.relu(a_hat[t] @ (h1 @ raw["w2"]) + raw["b2"])
        zs.append(h2)
    zs = jnp.stack(zs)                                    # [T, N, H]
    N = zs.shape[1]
    E = raw["whr"].shape[1]
    h = jnp.zeros((T, E), jnp.float32)
    outs = []
    for s in range(N):                                    # sequence axis = nodes
        xs = zs[:, s, :]
        r = jax.nn.sigmoid(xs @ raw["wir"] + raw["b_ir"]
                           + h @ raw["whr"] + raw["b_hr"])
        z = jax.nn.sigmoid(xs @ raw["wiz"] + raw["b_iz"]
                           + h @ raw["whz"] + raw["b_hz"])
        n = jnp.tanh(xs @ raw["win"] + raw["b_in"]
                     + r * (h @ raw["whn"] + raw["b_hn"]))
        h = (1.0 - z) * n + z * h
        outs.append(h)
    return jnp.stack(outs, axis=1)                        # [T, N, E]


if __name__ == "__main__":
    N, F_IN, HID, EMB, T, N_EDGES = 16, 8, 32, 32, 3, 40

    key = jax.random.PRNGKey(0)
    keys = jax.random.split(key, 4)

    x = jax.random.normal(keys[0], (N, F_IN), dtype=jnp.float32)

    # Random directed edge lists per timestep (the `eis` of the PyTorch module).
    eis = []
    for t in range(T):
        ek = jax.random.fold_in(keys[1], t)
        src = jax.random.randint(jax.random.fold_in(ek, 0), (N_EDGES,), 0, N)
        dst = jax.random.randint(jax.random.fold_in(ek, 1), (N_EDGES,), 0, N)
        eis.append(jnp.stack([src, dst]))

    # Glue (graph preprocessing, not a kernel): add_remaining_self_loops +
    # GCN symmetric normalization -> dense A_hat.
    def norm_adj(ei):
        src, dst = ei[0], ei[1]
        A = jnp.zeros((N, N), jnp.float32).at[dst, src].set(1.0)
        A = jnp.maximum(A, jnp.eye(N, dtype=jnp.float32))   # remaining self loops
        deg = A.sum(axis=1)
        dinv = jnp.where(deg > 0.0, lax.rsqrt(deg), 0.0)
        return dinv[:, None] * A * dinv[None, :]

    a_hat = jnp.stack([norm_adj(ei) for ei in eis])          # [T, N, N]

    # Deterministic synthetic parameters (shapes mirror GCNConv / nn.GRU;
    # GRU weights stored transposed: W_i* [HID, EMB], W_h* [EMB, EMB];
    # gate order r|z|n as in PyTorch).
    def init(k, shape, scale=0.1):
        return scale * jax.random.normal(k, shape, dtype=jnp.float32)

    gk = jax.random.split(keys[2], 16)
    raw = dict(
        w1=init(gk[0], (F_IN, HID)), b1=init(gk[1], (1, HID)),
        w2=init(gk[2], (HID, HID)), b2=init(gk[3], (1, HID)),
        wir=init(gk[4], (HID, EMB)), wiz=init(gk[5], (HID, EMB)),
        win=init(gk[6], (HID, EMB)),
        whr=init(gk[7], (EMB, EMB)), whz=init(gk[8], (EMB, EMB)),
        whn=init(gk[9], (EMB, EMB)),
        b_ir=init(gk[10], (1, EMB)), b_iz=init(gk[11], (1, EMB)),
        b_in=init(gk[12], (1, EMB)),
        b_hr=init(gk[13], (1, EMB)), b_hz=init(gk[14], (1, EMB)),
        b_hn=init(gk[15], (1, EMB)),
    )

    # Fold into the fused-kernel parameterization:
    #   wi = [W_ir | W_iz | W_in],  bi = [b_ir+b_hr | b_iz+b_hz | b_in]
    #   wh = [W_hr | W_hz | W_hn],  bh = [0 | 0 | b_hn]
    # (b_hn stays inside the r-gated term, exactly as in nn.GRU).
    zeros_e = jnp.zeros((1, EMB), jnp.float32)
    params = dict(
        w1=raw["w1"], b1=raw["b1"], w2=raw["w2"], b2=raw["b2"],
        wi=jnp.concatenate([raw["wir"], raw["wiz"], raw["win"]], axis=1),
        bi=jnp.concatenate([raw["b_ir"] + raw["b_hr"],
                            raw["b_iz"] + raw["b_hz"],
                            raw["b_in"]], axis=1),
        wh=jnp.concatenate([raw["whr"], raw["whz"], raw["whn"]], axis=1),
        bh=jnp.concatenate([zeros_e, zeros_e, raw["b_hn"]], axis=1),
    )

    out = euler_forward(x, a_hat, params)                    # [T, N, EMB]
    jax.block_until_ready(out)
    assert out.shape == (T, N, EMB) and out.dtype == jnp.float32

    ref = euler_reference(x, a_hat, raw)
    assert jnp.allclose(out, ref, rtol=1e-3, atol=1e-3), (
        "max abs diff vs reference: %e" % float(jnp.max(jnp.abs(out - ref))))
    print("KERNEL_OK")
</pallas_src>

<mosaic_0001>
module attributes {stable_mosaic.version = 11 : i64} {
  func.func @euler_fused_kernel(%arg0: memref<3x16x16xf32, #tpu.memory_space<vmem>>, %arg1: memref<16x8xf32, #tpu.memory_space<vmem>>, %arg2: memref<8x32xf32, #tpu.memory_space<vmem>>, %arg3: memref<1x32xf32, #tpu.memory_space<vmem>>, %arg4: memref<32x32xf32, #tpu.memory_space<vmem>>, %arg5: memref<1x32xf32, #tpu.memory_space<vmem>>, %arg6: memref<32x96xf32, #tpu.memory_space<vmem>>, %arg7: memref<1x96xf32, #tpu.memory_space<vmem>>, %arg8: memref<32x96xf32, #tpu.memory_space<vmem>>, %arg9: memref<1x96xf32, #tpu.memory_space<vmem>>, %arg10: memref<3x16x32xf32, #tpu.memory_space<vmem>>, %arg11: memref<16x3x96xf32, #tpu.memory_space<vmem>>, %arg12: memref<16x3x32xf32, #tpu.memory_space<vmem>>) attributes {dimension_semantics = [], scalar_prefetch = 0 : i64, scratch_operands = 2 : i64, tpu.core_type = #tpu.core_type<tc>} {
    %c0 = arith.constant 0 : index
    %c0_0 = arith.constant 0 : index
    %0 = vector.load %arg1[%c0, %c0_0] : memref<16x8xf32, #tpu.memory_space<vmem>>, vector<16x8xf32>
    %c0_1 = arith.constant 0 : index
    %c0_2 = arith.constant 0 : index
    %1 = vector.load %arg2[%c0_1, %c0_2] : memref<8x32xf32, #tpu.memory_space<vmem>>, vector<8x32xf32>
    %cst = arith.constant dense<0.000000e+00> : vector<16x32xf32>
    %2 = tpu.matmul %0, %1, %cst {dimension_numbers = #tpu.dot_dimension_numbers<[1], [0], [0], [1], [0, 0, 1, 1], [], []>} : vector<16x8xf32>, vector<8x32xf32>, vector<16x32xf32> -> vector<16x32xf32>
    %c0_3 = arith.constant 0 : index
    %c0_4 = arith.constant 0 : index
    %3 = vector.load %arg4[%c0_3, %c0_4] : memref<32x32xf32, #tpu.memory_space<vmem>>, vector<32x32xf32>
    %c0_5 = arith.constant 0 : index
    %c0_6 = arith.constant 0 : index
    %4 = vector.load %arg6[%c0_5, %c0_6] : memref<32x96xf32, #tpu.memory_space<vmem>>, vector<32x96xf32>
    %c0_7 = arith.constant 0 : index
    %c0_8 = arith.constant 0 : index
    %5 = vector.load %arg3[%c0_7, %c0_8] : memref<1x32xf32, #tpu.memory_space<vmem>>, vector<1x32xf32>
    %c0_9 = arith.constant 0 : index
    %c0_10 = arith.constant 0 : index
    %6 = vector.load %arg5[%c0_9, %c0_10] : memref<1x32xf32, #tpu.memory_space<vmem>>, vector<1x32xf32>
    %c0_11 = arith.constant 0 : index
    %c0_12 = arith.constant 0 : index
    %7 = vector.load %arg7[%c0_11, %c0_12] : memref<1x96xf32, #tpu.memory_space<vmem>>, vector<1x96xf32>
    %c0_13 = arith.constant 0 : index
    %c0_14 = arith.constant 0 : index
    %c0_15 = arith.constant 0 : index
    %8 = vector.load %arg0[%c0_13, %c0_14, %c0_15] : memref<3x16x16xf32, #tpu.memory_space<vmem>>, vector<1x16x16xf32>
    %9 = vector.shape_cast %8 : vector<1x16x16xf32> to vector<16x16xf32>
    %cst_16 = arith.constant dense<0.000000e+00> : vector<16x32xf32>
    %10 = tpu.matmul %9, %2, %cst_16 {dimension_numbers = #tpu.dot_dimension_numbers<[1], [0], [0], [1], [0, 0, 1, 1], [], []>} : vector<16x16xf32>, vector<16x32xf32>, vector<16x32xf32> -> vector<16x32xf32>
    %11 = vector.broadcast %5 : vector<1x32xf32> to vector<16x32xf32>
    %12 = arith.addf %10, %11 : vector<16x32xf32>
    %cst_17 = arith.constant 0.000000e+00 : f32
    %13 = vector.broadcast %cst_17 : f32 to vector<16x32xf32>
    %14 = arith.maximumf %12, %13 : vector<16x32xf32>
    %cst_18 = arith.constant dense<0.000000e+00> : vector<16x32xf32>
    %15 = tpu.matmul %14, %3, %cst_18 {dimension_numbers = #tpu.dot_dimension_numbers<[1], [0], [0], [1], [0, 0, 1, 1], [], []>} : vector<16x32xf32>, vector<32x32xf32>, vector<16x32xf32> -> vector<16x32xf32>
    %cst_19 = arith.constant dense<0.000000e+00> : vector<16x32xf32>
    %16 = tpu.matmul %9, %15, %cst_19 {dimension_numbers = #tpu.dot_dimension_numbers<[1], [0], [0], [1], [0, 0, 1, 1], [], []>} : vector<16x16xf32>, vector<16x32xf32>, vector<16x32xf32> -> vector<16x32xf32>
    %17 = vector.broadcast %6 : vector<1x32xf32> to vector<16x32xf32>
    %18 = arith.addf %16, %17 : vector<16x32xf32>
    %cst_20 = arith.constant 0.000000e+00 : f32
    %19 = vector.broadcast %cst_20 : f32 to vector<16x32xf32>
    %20 = arith.maximumf %18, %19 : vector<16x32xf32>
    %cst_21 = arith.constant dense<0.000000e+00> : vector<16x96xf32>
    %21 = tpu.matmul %20, %4, %cst_21 {dimension_numbers = #tpu.dot_dimension_numbers<[1], [0], [0], [1], [0, 0, 1, 1], [], []>} : vector<16x32xf32>, vector<32x96xf32>, vector<16x96xf32> -> vector<16x96xf32>
    %22 = vector.broadcast %7 : vector<1x96xf32> to vector<16x96xf32>
    %23 = arith.addf %21, %22 : vector<16x96xf32>
    %c0_22 = arith.constant 0 : index
    %c0_23 = arith.constant 0 : index
    %c0_24 = arith.constant 0 : index
    %24 = vector.load %arg11[%c0_22, %c0_23, %c0_24] : memref<16x3x96xf32, #tpu.memory_space<vmem>>, vector<16x1x96xf32>
    %25 = vector.shape_cast %24 : vector<16x1x96xf32> to vector<16x96xf32>
    %26 = vector.shape_cast %23 : vector<16x96xf32> to vector<16x1x96xf32>
    tpu.vector_store %arg11[%c0_22, %c0_23, %c0_24], %26 {strides = array<i32>} : memref<16x3x96xf32, #tpu.memory_space<vmem>>, vector<16x1x96xf32>,
    %c1 = arith.constant 1 : index
    %c0_25 = arith.constant 0 : index
    %c0_26 = arith.constant 0 : index
    %27 = vector.load %arg0[%c1, %c0_25, %c0_26] : memref<3x16x16xf32, #tpu.memory_space<vmem>>, vector<1x16x16xf32>
    %28 = vector.shape_cast %27 : vector<1x16x16xf32> to vector<16x16xf32>
    %cst_27 = arith.constant dense<0.000000e+00> : vector<16x32xf32>
    %29 = tpu.matmul %28, %2, %cst_27 {dimension_numbers = #tpu.dot_dimension_numbers<[1], [0], [0], [1], [0, 0, 1, 1], [], []>} : vector<16x16xf32>, vector<16x32xf32>, vector<16x32xf32> -> vector<16x32xf32>
    %30 = vector.broadcast %5 : vector<1x32xf32> to vector<16x32xf32>
    %31 = arith.addf %29, %30 : vector<16x32xf32>
    %cst_28 = arith.constant 0.000000e+00 : f32
    %32 = vector.broadcast %cst_28 : f32 to vector<16x32xf32>
    %33 = arith.maximumf %31, %32 : vector<16x32xf32>
    %cst_29 = arith.constant dense<0.000000e+00> : vector<16x32xf32>
    %34 = tpu.matmul %33, %3, %cst_29 {dimension_numbers = #tpu.dot_dimension_numbers<[1], [0], [0], [1], [0, 0, 1, 1], [], []>} : vector<16x32xf32>, vector<32x32xf32>, vector<16x32xf32> -> vector<16x32xf32>
    %cst_30 = arith.constant dense<0.000000e+00> : vector<16x32xf32>
    %35 = tpu.matmul %28, %34, %cst_30 {dimension_numbers = #tpu.dot_dimension_numbers<[1], [0], [0], [1], [0, 0, 1, 1], [], []>} : vector<16x16xf32>, vector<16x32xf32>, vector<16x32xf32> -> vector<16x32xf32>
    %36 = vector.broadcast %6 : vector<1x32xf32> to vector<16x32xf32>
    %37 = arith.addf %35, %36 : vector<16x32xf32>
    %cst_31 = arith.constant 0.000000e+00 : f32
    %38 = vector.broadcast %cst_31 : f32 to vector<16x32xf32>
    %39 = arith.maximumf %37, %38 : vector<16x32xf32>
    %cst_32 = arith.constant dense<0.000000e+00> : vector<16x96xf32>
    %40 = tpu.matmul %39, %4, %cst_32 {dimension_numbers = #tpu.dot_dimension_numbers<[1], [0], [0], [1], [0, 0, 1, 1], [], []>} : vector<16x32xf32>, vector<32x96xf32>, vector<16x96xf32> -> vector<16x96xf32>
    %41 = vector.broadcast %7 : vector<1x96xf32> to vector<16x96xf32>
    %42 = arith.addf %40, %41 : vector<16x96xf32>
    %c0_33 = arith.constant 0 : index
    %c1_34 = arith.constant 1 : index
    %c0_35 = arith.constant 0 : index
    %43 = vector.load %arg11[%c0_33, %c1_34, %c0_35] : memref<16x3x96xf32, #tpu.memory_space<vmem>>, vector<16x1x96xf32>
    %44 = vector.shape_cast %43 : vector<16x1x96xf32> to vector<16x96xf32>
    %45 = vector.shape_cast %42 : vector<16x96xf32> to vector<16x1x96xf32>
    tpu.vector_store %arg11[%c0_33, %c1_34, %c0_35], %45 {strides = array<i32>} : memref<16x3x96xf32, #tpu.memory_space<vmem>>, vector<16x1x96xf32>,
    %c2 = arith.constant 2 : index
    %c0_36 = arith.constant 0 : index
    %c0_37 = arith.constant 0 : index
    %46 = vector.load %arg0[%c2, %c0_36, %c0_37] : memref<3x16x16xf32, #tpu.memory_space<vmem>>, vector<1x16x16xf32>
    %47 = vector.shape_cast %46 : vector<1x16x16xf32> to vector<16x16xf32>
    %cst_38 = arith.constant dense<0.000000e+00> : vector<16x32xf32>
    %48 = tpu.matmul %47, %2, %cst_38 {dimension_numbers = #tpu.dot_dimension_numbers<[1], [0], [0], [1], [0, 0, 1, 1], [], []>} : vector<16x16xf32>, vector<16x32xf32>, vector<16x32xf32> -> vector<16x32xf32>
    %49 = vector.broadcast %5 : vector<1x32xf32> to vector<16x32xf32>
    %50 = arith.addf %48, %49 : vector<16x32xf32>
    %cst_39 = arith.constant 0.000000e+00 : f32
    %51 = vector.broadcast %cst_39 : f32 to vector<16x32xf32>
    %52 = arith.maximumf %50, %51 : vector<16x32xf32>
    %cst_40 = arith.constant dense<0.000000e+00> : vector<16x32xf32>
    %53 = tpu.matmul %52, %3, %cst_40 {dimension_numbers = #tpu.dot_dimension_numbers<[1], [0], [0], [1], [0, 0, 1, 1], [], []>} : vector<16x32xf32>, vector<32x32xf32>, vector<16x32xf32> -> vector<16x32xf32>
    %cst_41 = arith.constant dense<0.000000e+00> : vector<16x32xf32>
    %54 = tpu.matmul %47, %53, %cst_41 {dimension_numbers = #tpu.dot_dimension_numbers<[1], [0], [0], [1], [0, 0, 1, 1], [], []>} : vector<16x16xf32>, vector<16x32xf32>, vector<16x32xf32> -> vector<16x32xf32>
    %55 = vector.broadcast %6 : vector<1x32xf32> to vector<16x32xf32>
    %56 = arith.addf %54, %55 : vector<16x32xf32>
    %cst_42 = arith.constant 0.000000e+00 : f32
    %57 = vector.broadcast %cst_42 : f32 to vector<16x32xf32>
    %58 = arith.maximumf %56, %57 : vector<16x32xf32>
    %cst_43 = arith.constant dense<0.000000e+00> : vector<16x96xf32>
    %59 = tpu.matmul %58, %4, %cst_43 {dimension_numbers = #tpu.dot_dimension_numbers<[1], [0], [0], [1], [0, 0, 1, 1], [], []>} : vector<16x32xf32>, vector<32x96xf32>, vector<16x96xf32> -> vector<16x96xf32>
    %60 = vector.broadcast %7 : vector<1x96xf32> to vector<16x96xf32>
    %61 = arith.addf %59, %60 : vector<16x96xf32>
    %c0_44 = arith.constant 0 : index
    %c2_45 = arith.constant 2 : index
    %c0_46 = arith.constant 0 : index
    %62 = vector.load %arg11[%c0_44, %c2_45, %c0_46] : memref<16x3x96xf32, #tpu.memory_space<vmem>>, vector<16x1x96xf32>
    %63 = vector.shape_cast %62 : vector<16x1x96xf32> to vector<16x96xf32>
    %64 = vector.shape_cast %61 : vector<16x96xf32> to vector<16x1x96xf32>
    tpu.vector_store %arg11[%c0_44, %c2_45, %c0_46], %64 {strides = array<i32>} : memref<16x3x96xf32, #tpu.memory_space<vmem>>, vector<16x1x96xf32>,
    %c0_47 = arith.constant 0 : index
    %c0_48 = arith.constant 0 : index
    %65 = vector.load %arg8[%c0_47, %c0_48] : memref<32x96xf32, #tpu.memory_space<vmem>>, vector<32x96xf32>
    %c0_49 = arith.constant 0 : index
    %c0_50 = arith.constant 0 : index
    %66 = vector.load %arg9[%c0_49, %c0_50] : memref<1x96xf32, #tpu.memory_space<vmem>>, vector<1x96xf32>
    %cst_51 = arith.constant 0.000000e+00 : f32
    %67 = vector.broadcast %cst_51 : f32 to vector<3x32xf32>
    %c0_i32 = arith.constant 0 : i32
    %68 = arith.index_cast %c0_i32 : i32 to index
    %c0_52 = arith.constant 0 : index
    %c0_53 = arith.constant 0 : index
    %69 = vector.load %arg11[%68, %c0_52, %c0_53] : memref<16x3x96xf32, #tpu.memory_space<vmem>>, vector<1x3x96xf32>
    %70 = vector.shape_cast %69 : vector<1x3x96xf32> to vector<3x96xf32>
    %cst_54 = arith.constant dense<0.000000e+00> : vector<3x96xf32>
    %71 = tpu.matmul %67, %65, %cst_54 {dimension_numbers = #tpu.dot_dimension_numbers<[1], [0], [0], [1], [0, 0, 1, 1], [], []>} : vector<3x32xf32>, vector<32x96xf32>, vector<3x96xf32> -> vector<3x96xf32>
    %72 = vector.broadcast %66 : vector<1x96xf32> to vector<3x96xf32>
    %73 = arith.addf %71, %72 : vector<3x96xf32>
    %74 = vector.extract_strided_slice %70 {offsets = [0, 0], sizes = [3, 32], strides = [1, 1]} : vector<3x96xf32> to vector<3x32xf32>
    %75 = vector.extract_strided_slice %73 {offsets = [0, 0], sizes = [3, 32], strides = [1, 1]} : vector<3x96xf32> to vector<3x32xf32>
    %76 = arith.addf %74, %75 : vector<3x32xf32>
    %77 = arith.negf %76 : vector<3x32xf32>
    %78 = math.exp %77 : vector<3x32xf32>
    %cst_55 = arith.constant 1.000000e+00 : f32
    %79 = vector.broadcast %cst_55 : f32 to vector<3x32xf32>
    %80 = arith.addf %79, %78 : vector<3x32xf32>
    %81 = arith.divf %79, %80 : vector<3x32xf32>
    %82 = vector.extract_strided_slice %70 {offsets = [0, 32], sizes = [3, 32], strides = [1, 1]} : vector<3x96xf32> to vector<3x32xf32>
    %83 = vector.extract_strided_slice %73 {offsets = [0, 32], sizes = [3, 32], strides = [1, 1]} : vector<3x96xf32> to vector<3x32xf32>
    %84 = arith.addf %82, %83 : vector<3x32xf32>
    %85 = arith.negf %84 : vector<3x32xf32>
    %86 = math.exp %85 : vector<3x32xf32>
    %cst_56 = arith.constant 1.000000e+00 : f32
    %87 = vector.broadcast %cst_56 : f32 to vector<3x32xf32>
    %88 = arith.addf %87, %86 : vector<3x32xf32>
    %89 = arith.divf %87, %88 : vector<3x32xf32>
    %90 = vector.extract_strided_slice %70 {offsets = [0, 64], sizes = [3, 32], strides = [1, 1]} : vector<3x96xf32> to vector<3x32xf32>
    %91 = vector.extract_strided_slice %73 {offsets = [0, 64], sizes = [3, 32], strides = [1, 1]} : vector<3x96xf32> to vector<3x32xf32>
    %92 = arith.mulf %81, %91 : vector<3x32xf32>
    %93 = arith.addf %90, %92 : vector<3x32xf32>
    %94 = math.tanh %93 : vector<3x32xf32>
    %cst_57 = arith.constant 1.000000e+00 : f32
    %95 = vector.broadcast %cst_57 : f32 to vector<3x32xf32>
    %96 = arith.subf %95, %89 : vector<3x32xf32>
    %97 = arith.mulf %96, %94 : vector<3x32xf32>
    %98 = arith.mulf %89, %67 : vector<3x32xf32>
    %99 = arith.addf %97, %98 : vector<3x32xf32>
    %100 = arith.index_cast %c0_i32 : i32 to index
    %c0_58 = arith.constant 0 : index
    %c0_59 = arith.constant 0 : index
    %101 = vector.load %arg12[%100, %c0_58, %c0_59] : memref<16x3x32xf32, #tpu.memory_space<vmem>>, vector<1x3x32xf32>
    %102 = vector.shape_cast %101 : vector<1x3x32xf32> to vector<3x32xf32>
    %103 = vector.shape_cast %99 : vector<3x32xf32> to vector<1x3x32xf32>
    tpu.vector_store %arg12[%100, %c0_58, %c0_59], %103 {strides = array<i32>} : memref<16x3x32xf32, #tpu.memory_space<vmem>>, vector<1x3x32xf32>,
    %c1_i32 = arith.constant 1 : i32
    %104 = arith.index_cast %c1_i32 : i32 to index
    %c0_60 = arith.constant 0 : index
    %c0_61 = arith.constant 0 : index
    %105 = vector.load %arg11[%104, %c0_60, %c0_61] : memref<16x3x96xf32, #tpu.memory_space<vmem>>, vector<1x3x96xf32>
    %106 = vector.shape_cast %105 : vector<1x3x96xf32> to vector<3x96xf32>
    %cst_62 = arith.constant dense<0.000000e+00> : vector<3x96xf32>
    %107 = tpu.matmul %99, %65, %cst_62 {dimension_numbers = #tpu.dot_dimension_numbers<[1], [0], [0], [1], [0, 0, 1, 1], [], []>} : vector<3x32xf32>, vector<32x96xf32>, vector<3x96xf32> -> vector<3x96xf32>
    %108 = vector.broadcast %66 : vector<1x96xf32> to vector<3x96xf32>
    %109 = arith.addf %107, %108 : vector<3x96xf32>
    %110 = vector.extract_strided_slice %106 {offsets = [0, 0], sizes = [3, 32], strides = [1, 1]} : vector<3x96xf32> to vector<3x32xf32>
    %111 = vector.extract_strided_slice %109 {offsets = [0, 0], sizes = [3, 32], strides = [1, 1]} : vector<3x96xf32> to vector<3x32xf32>
    %112 = arith.addf %110, %111 : vector<3x32xf32>
    %113 = arith.negf %112 : vector<3x32xf32>
    %114 = math.exp %113 : vector<3x32xf32>
    %cst_63 = arith.constant 1.000000e+00 : f32
    %115 = vector.broadcast %cst_63 : f32 to vector<3x32xf32>
    %116 = arith.addf %115, %114 : vector<3x32xf32>
    %117 = arith.divf %115, %116 : vector<3x32xf32>
    %118 = vector.extract_strided_slice %106 {offsets = [0, 32], sizes = [3, 32], strides = [1, 1]} : vector<3x96xf32> to vector<3x32xf32>
    %119 = vector.extract_strided_slice %109 {offsets = [0, 32], sizes = [3, 32], strides = [1, 1]} : vector<3x96xf32> to vector<3x32xf32>
    %120 = arith.addf %118, %119 : vector<3x32xf32>
    %121 = arith.negf %120 : vector<3x32xf32>
    %122 = math.exp %121 : vector<3x32xf32>
    %cst_64 = arith.constant 1.000000e+00 : f32
    %123 = vector.broadcast %cst_64 : f32 to vector<3x32xf32>
    %124 = arith.addf %123, %122 : vector<3x32xf32>
    %125 = arith.divf %123, %124 : vector<3x32xf32>
    %126 = vector.extract_strided_slice %106 {offsets = [0, 64], sizes = [3, 32], strides = [1, 1]} : vector<3x96xf32> to vector<3x32xf32>
    %127 = vector.extract_strided_slice %109 {offsets = [0, 64], sizes = [3, 32], strides = [1, 1]} : vector<3x96xf32> to vector<3x32xf32>
    %128 = arith.mulf %117, %127 : vector<3x32xf32>
    %129 = arith.addf %126, %128 : vector<3x32xf32>
    %130 = math.tanh %129 : vector<3x32xf32>
    %cst_65 = arith.constant 1.000000e+00 : f32
    %131 = vector.broadcast %cst_65 : f32 to vector<3x32xf32>
    %132 = arith.subf %131, %125 : vector<3x32xf32>
    %133 = arith.mulf %132, %130 : vector<3x32xf32>
    %134 = arith.mulf %125, %99 : vector<3x32xf32>
    %135 = arith.addf %133, %134 : vector<3x32xf32>
    %136 = arith.index_cast %c1_i32 : i32 to index
    %c0_66 = arith.constant 0 : index
    %c0_67 = arith.constant 0 : index
    %137 = vector.load %arg12[%136, %c0_66, %c0_67] : memref<16x3x32xf32, #tpu.memory_space<vmem>>, vector<1x3x32xf32>
    %138 = vector.shape_cast %137 : vector<1x3x32xf32> to vector<3x32xf32>
    %139 = vector.shape_cast %135 : vector<3x32xf32> to vector<1x3x32xf32>
    tpu.vector_store %arg12[%136, %c0_66, %c0_67], %139 {strides = array<i32>} : memref<16x3x32xf32, #tpu.memory_space<vmem>>, vector<1x3x32xf32>,
    %c2_i32 = arith.constant 2 : i32
    %140 = arith.index_cast %c2_i32 : i32 to index
    %c0_68 = arith.constant 0 : index
    %c0_69 = arith.constant 0 : index
    %141 = vector.load %arg11[%140, %c0_68, %c0_69] : memref<16x3x96xf32, #tpu.memory_space<vmem>>, vector<1x3x96xf32>
    %142 = vector.shape_cast %141 : vector<1x3x96xf32> to vector<3x96xf32>
    %cst_70 = arith.constant dense<0.000000e+00> : vector<3x96xf32>
    %143 = tpu.matmul %135, %65, %cst_70 {dimension_numbers = #tpu.dot_dimension_numbers<[1], [0], [0], [1], [0, 0, 1, 1], [], []>} : vector<3x32xf32>, vector<32x96xf32>, vector<3x96xf32> -> vector<3x96xf32>
    %144 = vector.broadcast %66 : vector<1x96xf32> to vector<3x96xf32>
    %145 = arith.addf %143, %144 : vector<3x96xf32>
    %146 = vector.extract_strided_slice %142 {offsets = [0, 0], sizes = [3, 32], strides = [1, 1]} : vector<3x96xf32> to vector<3x32xf32>
    %147 = vector.extract_strided_slice %145 {offsets = [0, 0], sizes = [3, 32], strides = [1, 1]} : vector<3x96xf32> to vector<3x32xf32>
    %148 = arith.addf %146, %147 : vector<3x32xf32>
    %149 = arith.negf %148 : vector<3x32xf32>
    %150 = math.exp %149 : vector<3x32xf32>
    %cst_71 = arith.constant 1.000000e+00 : f32
    %151 = vector.broadcast %cst_71 : f32 to vector<3x32xf32>
    %152 = arith.addf %151, %150 : vector<3x32xf32>
    %153 = arith.divf %151, %152 : vector<3x32xf32>
    %154 = vector.extract_strided_slice %142 {offsets = [0, 32], sizes = [3, 32], strides = [1, 1]} : vector<3x96xf32> to vector<3x32xf32>
    %155 = vector.extract_strided_slice %145 {offsets = [0, 32], sizes = [3, 32], strides = [1, 1]} : vector<3x96xf32> to vector<3x32xf32>
    %156 = arith.addf %154, %155 : vector<3x32xf32>
    %157 = arith.negf %156 : vector<3x32xf32>
    %158 = math.exp %157 : vector<3x32xf32>
    %cst_72 = arith.constant 1.000000e+00 : f32
    %159 = vector.broadcast %cst_72 : f32 to vector<3x32xf32>
    %160 = arith.addf %159, %158 : vector<3x32xf32>
    %161 = arith.divf %159, %160 : vector<3x32xf32>
    %162 = vector.extract_strided_slice %142 {offsets = [0, 64], sizes = [3, 32], strides = [1, 1]} : vector<3x96xf32> to vector<3x32xf32>
    %163 = vector.extract_strided_slice %145 {offsets = [0, 64], sizes = [3, 32], strides = [1, 1]} : vector<3x96xf32> to vector<3x32xf32>
    %164 = arith.mulf %153, %163 : vector<3x32xf32>
    %165 = arith.addf %162, %164 : vector<3x32xf32>
    %166 = math.tanh %165 : vector<3x32xf32>
    %cst_73 = arith.constant 1.000000e+00 : f32
    %167 = vector.broadcast %cst_73 : f32 to vector<3x32xf32>
    %168 = arith.subf %167, %161 : vector<3x32xf32>
    %169 = arith.mulf %168, %166 : vector<3x32xf32>
    %170 = arith.mulf %161, %135 : vector<3x32xf32>
    %171 = arith.addf %169, %170 : vector<3x32xf32>
    %172 = arith.index_cast %c2_i32 : i32 to index
    %c0_74 = arith.constant 0 : index
    %c0_75 = arith.constant 0 : index
    %173 = vector.load %arg12[%172, %c0_74, %c0_75] : memref<16x3x32xf32, #tpu.memory_space<vmem>>, vector<1x3x32xf32>
    %174 = vector.shape_cast %173 : vector<1x3x32xf32> to vector<3x32xf32>
    %175 = vector.shape_cast %171 : vector<3x32xf32> to vector<1x3x32xf32>
    tpu.vector_store %arg12[%172, %c0_74, %c0_75], %175 {strides = array<i32>} : memref<16x3x32xf32, #tpu.memory_space<vmem>>, vector<1x3x32xf32>,
    %c3_i32 = arith.constant 3 : i32
    %176 = arith.index_cast %c3_i32 : i32 to index
    %c0_76 = arith.constant 0 : index
    %c0_77 = arith.constant 0 : index
    %177 = vector.load %arg11[%176, %c0_76, %c0_77] : memref<16x3x96xf32, #tpu.memory_space<vmem>>, vector<1x3x96xf32>
    %178 = vector.shape_cast %177 : vector<1x3x96xf32> to vector<3x96xf32>
    %cst_78 = arith.constant dense<0.000000e+00> : vector<3x96xf32>
    %179 = tpu.matmul %171, %65, %cst_78 {dimension_numbers = #tpu.dot_dimension_numbers<[1], [0], [0], [1], [0, 0, 1, 1], [], []>} : vector<3x32xf32>, vector<32x96xf32>, vector<3x96xf32> -> vector<3x96xf32>
    %180 = vector.broadcast %66 : vector<1x96xf32> to vector<3x96xf32>
    %181 = arith.addf %179, %180 : vector<3x96xf32>
    %182 = vector.extract_strided_slice %178 {offsets = [0, 0], sizes = [3, 32], strides = [1, 1]} : vector<3x96xf32> to vector<3x32xf32>
    %183 = vector.extract_strided_slice %181 {offsets = [0, 0], sizes = [3, 32], strides = [1, 1]} : vector<3x96xf32> to vector<3x32xf32>
    %184 = arith.addf %182, %183 : vector<3x32xf32>
    %185 = arith.negf %184 : vector<3x32xf32>
    %186 = math.exp %185 : vector<3x32xf32>
    %cst_79 = arith.constant 1.000000e+00 : f32
    %187 = vector.broadcast %cst_79 : f32 to vector<3x32xf32>
    %188 = arith.addf %187, %186 : vector<3x32xf32>
    %189 = arith.divf %187, %188 : vector<3x32xf32>
    %190 = vector.extract_strided_slice %178 {offsets = [0, 32], sizes = [3, 32], strides = [1, 1]} : vector<3x96xf32> to vector<3x32xf32>
    %191 = vector.extract_strided_slice %181 {offsets = [0, 32], sizes = [3, 32], strides = [1, 1]} : vector<3x96xf32> to vector<3x32xf32>
    %192 = arith.addf %190, %191 : vector<3x32xf32>
    %193 = arith.negf %192 : vector<3x32xf32>
    %194 = math.exp %193 : vector<3x32xf32>
    %cst_80 = arith.constant 1.000000e+00 : f32
    %195 = vector.broadcast %cst_80 : f32 to vector<3x32xf32>
    %196 = arith.addf %195, %194 : vector<3x32xf32>
    %197 = arith.divf %195, %196 : vector<3x32xf32>
    %198 = vector.extract_strided_slice %178 {offsets = [0, 64], sizes = [3, 32], strides = [1, 1]} : vector<3x96xf32> to vector<3x32xf32>
    %199 = vector.extract_strided_slice %181 {offsets = [0, 64], sizes = [3, 32], strides = [1, 1]} : vector<3x96xf32> to vector<3x32xf32>
    %200 = arith.mulf %189, %199 : vector<3x32xf32>
    %201 = arith.addf %198, %200 : vector<3x32xf32>
    %202 = math.tanh %201 : vector<3x32xf32>
    %cst_81 = arith.constant 1.000000e+00 : f32
    %203 = vector.broadcast %cst_81 : f32 to vector<3x32xf32>
    %204 = arith.subf %203, %197 : vector<3x32xf32>
    %205 = arith.mulf %204, %202 : vector<3x32xf32>
    %206 = arith.mulf %197, %171 : vector<3x32xf32>
    %207 = arith.addf %205, %206 : vector<3x32xf32>
    %208 = arith.index_cast %c3_i32 : i32 to index
    %c0_82 = arith.constant 0 : index
    %c0_83 = arith.constant 0 : index
    %209 = vector.load %arg12[%208, %c0_82, %c0_83] : memref<16x3x32xf32, #tpu.memory_space<vmem>>, vector<1x3x32xf32>
    %210 = vector.shape_cast %209 : vector<1x3x32xf32> to vector<3x32xf32>
    %211 = vector.shape_cast %207 : vector<3x32xf32> to vector<1x3x32xf32>
    tpu.vector_store %arg12[%208, %c0_82, %c0_83], %211 {strides = array<i32>} : memref<16x3x32xf32, #tpu.memory_space<vmem>>, vector<1x3x32xf32>,
    %c4_i32 = arith.constant 4 : i32
    %212 = arith.index_cast %c4_i32 : i32 to index
    %c0_84 = arith.constant 0 : index
    %c0_85 = arith.constant 0 : index
    %213 = vector.load %arg11[%212, %c0_84, %c0_85] : memref<16x3x96xf32, #tpu.memory_space<vmem>>, vector<1x3x96xf32>
    %214 = vector.shape_cast %213 : vector<1x3x96xf32> to vector<3x96xf32>
    %cst_86 = arith.constant dense<0.000000e+00> : vector<3x96xf32>
    %215 = tpu.matmul %207, %65, %cst_86 {dimension_numbers = #tpu.dot_dimension_numbers<[1], [0], [0], [1], [0, 0, 1, 1], [], []>} : vector<3x32xf32>, vector<32x96xf32>, vector<3x96xf32> -> vector<3x96xf32>
    %216 = vector.broadcast %66 : vector<1x96xf32> to vector<3x96xf32>
    %217 = arith.addf %215, %216 : vector<3x96xf32>
    %218 = vector.extract_strided_slice %214 {offsets = [0, 0], sizes = [3, 32], strides = [1, 1]} : vector<3x96xf32> to vector<3x32xf32>
    %219 = vector.extract_strided_slice %217 {offsets = [0, 0], sizes = [3, 32], strides = [1, 1]} : vector<3x96xf32> to vector<3x32xf32>
    %220 = arith.addf %218, %219 : vector<3x32xf32>
    %221 = arith.negf %220 : vector<3x32xf32>
    %222 = math.exp %221 : vector<3x32xf32>
    %cst_87 = arith.constant 1.000000e+00 : f32
    %223 = vector.broadcast %cst_87 : f32 to vector<3x32xf32>
    %224 = arith.addf %223, %222 : vector<3x32xf32>
    %225 = arith.divf %223, %224 : vector<3x32xf32>
    %226 = vector.extract_strided_slice %214 {offsets = [0, 32], sizes = [3, 32], strides = [1, 1]} : vector<3x96xf32> to vector<3x32xf32>
    %227 = vector.extract_strided_slice %217 {offsets = [0, 32], sizes = [3, 32], strides = [1, 1]} : vector<3x96xf32> to vector<3x32xf32>
    %228 = arith.addf %226, %227 : vector<3x32xf32>
    %229 = arith.negf %228 : vector<3x32xf32>
    %230 = math.exp %229 : vector<3x32xf32>
    %cst_88 = arith.constant 1.000000e+00 : f32
    %231 = vector.broadcast %cst_88 : f32 to vector<3x32xf32>
    %232 = arith.addf %231, %230 : vector<3x32xf32>
    %233 = arith.divf %231, %232 : vector<3x32xf32>
    %234 = vector.extract_strided_slice %214 {offsets = [0, 64], sizes = [3, 32], strides = [1, 1]} : vector<3x96xf32> to vector<3x32xf32>
    %235 = vector.extract_strided_slice %217 {offsets = [0, 64], sizes = [3, 32], strides = [1, 1]} : vector<3x96xf32> to vector<3x32xf32>
    %236 = arith.mulf %225, %235 : vector<3x32xf32>
    %237 = arith.addf %234, %236 : vector<3x32xf32>
    %238 = math.tanh %237 : vector<3x32xf32>
    %cst_89 = arith.constant 1.000000e+00 : f32
    %239 = vector.broadcast %cst_89 : f32 to vector<3x32xf32>
    %240 = arith.subf %239, %233 : vector<3x32xf32>
    %241 = arith.mulf %240, %238 : vector<3x32xf32>
    %242 = arith.mulf %233, %207 : vector<3x32xf32>
    %243 = arith.addf %241, %242 : vector<3x32xf32>
    %244 = arith.index_cast %c4_i32 : i32 to index
    %c0_90 = arith.constant 0 : index
    %c0_91 = arith.constant 0 : index
    %245 = vector.load %arg12[%244, %c0_90, %c0_91] : memref<16x3x32xf32, #tpu.memory_space<vmem>>, vector<1x3x32xf32>
    %246 = vector.shape_cast %245 : vector<1x3x32xf32> to vector<3x32xf32>
    %247 = vector.shape_cast %243 : vector<3x32xf32> to vector<1x3x32xf32>
    tpu.vector_store %arg12[%244, %c0_90, %c0_91], %247 {strides = array<i32>} : memref<16x3x32xf32, #tpu.memory_space<vmem>>, vector<1x3x32xf32>,
    %c5_i32 = arith.constant 5 : i32
    %248 = arith.index_cast %c5_i32 : i32 to index
    %c0_92 = arith.constant 0 : index
    %c0_93 = arith.constant 0 : index
    %249 = vector.load %arg11[%248, %c0_92, %c0_93] : memref<16x3x96xf32, #tpu.memory_space<vmem>>, vector<1x3x96xf32>
    %250 = vector.shape_cast %249 : vector<1x3x96xf32> to vector<3x96xf32>
    %cst_94 = arith.constant dense<0.000000e+00> : vector<3x96xf32>
    %251 = tpu.matmul %243, %65, %cst_94 {dimension_numbers = #tpu.dot_dimension_numbers<[1], [0], [0], [1], [0, 0, 1, 1], [], []>} : vector<3x32xf32>, vector<32x96xf32>, vector<3x96xf32> -> vector<3x96xf32>
    %252 = vector.broadcast %66 : vector<1x96xf32> to vector<3x96xf32>
    %253 = arith.addf %251, %252 : vector<3x96xf32>
    %254 = vector.extract_strided_slice %250 {offsets = [0, 0], sizes = [3, 32], strides = [1, 1]} : vector<3x96xf32> to vector<3x32xf32>
    %255 = vector.extract_strided_slice %253 {offsets = [0, 0], sizes = [3, 32], strides = [1, 1]} : vector<3x96xf32> to vector<3x32xf32>
    %256 = arith.addf %254, %255 : vector<3x32xf32>
    %257 = arith.negf %256 : vector<3x32xf32>
    %258 = math.exp %257 : vector<3x32xf32>
    %cst_95 = arith.constant 1.000000e+00 : f32
    %259 = vector.broadcast %cst_95 : f32 to vector<3x32xf32>
    %260 = arith.addf %259, %258 : vector<3x32xf32>
    %261 = arith.divf %259, %260 : vector<3x32xf32>
    %262 = vector.extract_strided_slice %250 {offsets = [0, 32], sizes = [3, 32], strides = [1, 1]} : vector<3x96xf32> to vector<3x32xf32>
    %263 = vector.extract_strided_slice %253 {offsets = [0, 32], sizes = [3, 32], strides = [1, 1]} : vector<3x96xf32> to vector<3x32xf32>
    %264 = arith.addf %262, %263 : vector<3x32xf32>
    %265 = arith.negf %264 : vector<3x32xf32>
    %266 = math.exp %265 : vector<3x32xf32>
    %cst_96 = arith.constant 1.000000e+00 : f32
    %267 = vector.broadcast %cst_96 : f32 to vector<3x32xf32>
    %268 = arith.addf %267, %266 : vector<3x32xf32>
    %269 = arith.divf %267, %268 : vector<3x32xf32>
    %270 = vector.extract_strided_slice %250 {offsets = [0, 64], sizes = [3, 32], strides = [1, 1]} : vector<3x96xf32> to vector<3x32xf32>
    %271 = vector.extract_strided_slice %253 {offsets = [0, 64], sizes = [3, 32], strides = [1, 1]} : vector<3x96xf32> to vector<3x32xf32>
    %272 = arith.mulf %261, %271 : vector<3x32xf32>
    %273 = arith.addf %270, %272 : vector<3x32xf32>
    %274 = math.tanh %273 : vector<3x32xf32>
    %cst_97 = arith.constant 1.000000e+00 : f32
    %275 = vector.broadcast %cst_97 : f32 to vector<3x32xf32>
    %276 = arith.subf %275, %269 : vector<3x32xf32>
    %277 = arith.mulf %276, %274 : vector<3x32xf32>
    %278 = arith.mulf %269, %243 : vector<3x32xf32>
    %279 = arith.addf %277, %278 : vector<3x32xf32>
    %280 = arith.index_cast %c5_i32 : i32 to index
    %c0_98 = arith.constant 0 : index
    %c0_99 = arith.constant 0 : index
    %281 = vector.load %arg12[%280, %c0_98, %c0_99] : memref<16x3x32xf32, #tpu.memory_space<vmem>>, vector<1x3x32xf32>
    %282 = vector.shape_cast %281 : vector<1x3x32xf32> to vector<3x32xf32>
    %283 = vector.shape_cast %279 : vector<3x32xf32> to vector<1x3x32xf32>
    tpu.vector_store %arg12[%280, %c0_98, %c0_99], %283 {strides = array<i32>} : memref<16x3x32xf32, #tpu.memory_space<vmem>>, vector<1x3x32xf32>,
    %c6_i32 = arith.constant 6 : i32
    %284 = arith.index_cast %c6_i32 : i32 to index
    %c0_100 = arith.constant 0 : index
    %c0_101 = arith.constant 0 : index
    %285 = vector.load %arg11[%284, %c0_100, %c0_101] : memref<16x3x96xf32, #tpu.memory_space<vmem>>, vector<1x3x96xf32>
    %286 = vector.shape_cast %285 : vector<1x3x96xf32> to vector<3x96xf32>
    %cst_102 = arith.constant dense<0.000000e+00> : vector<3x96xf32>
    %287 = tpu.matmul %279, %65, %cst_102 {dimension_numbers = #tpu.dot_dimension_numbers<[1], [0], [0], [1], [0, 0, 1, 1], [], []>} : vector<3x32xf32>, vector<32x96xf32>, vector<3x96xf32> -> vector<3x96xf32>
    %288 = vector.broadcast %66 : vector<1x96xf32> to vector<3x96xf32>
    %289 = arith.addf %287, %288 : vector<3x96xf32>
    %290 = vector.extract_strided_slice %286 {offsets = [0, 0], sizes = [3, 32], strides = [1, 1]} : vector<3x96xf32> to vector<3x32xf32>
    %291 = vector.extract_strided_slice %289 {offsets = [0, 0], sizes = [3, 32], strides = [1, 1]} : vector<3x96xf32> to vector<3x32xf32>
    %292 = arith.addf %290, %291 : vector<3x32xf32>
    %293 = arith.negf %292 : vector<3x32xf32>
    %294 = math.exp %293 : vector<3x32xf32>
    %cst_103 = arith.constant 1.000000e+00 : f32
    %295 = vector.broadcast %cst_103 : f32 to vector<3x32xf32>
    %296 = arith.addf %295, %294 : vector<3x32xf32>
    %297 = arith.divf %295, %296 : vector<3x32xf32>
    %298 = vector.extract_strided_slice %286 {offsets = [0, 32], sizes = [3, 32], strides = [1, 1]} : vector<3x96xf32> to vector<3x32xf32>
    %299 = vector.extract_strided_slice %289 {offsets = [0, 32], sizes = [3, 32], strides = [1, 1]} : vector<3x96xf32> to vector<3x32xf32>
    %300 = arith.addf %298, %299 : vector<3x32xf32>
    %301 = arith.negf %300 : vector<3x32xf32>
    %302 = math.exp %301 : vector<3x32xf32>
    %cst_104 = arith.constant 1.000000e+00 : f32
    %303 = vector.broadcast %cst_104 : f32 to vector<3x32xf32>
    %304 = arith.addf %303, %302 : vector<3x32xf32>
    %305 = arith.divf %303, %304 : vector<3x32xf32>
    %306 = vector.extract_strided_slice %286 {offsets = [0, 64], sizes = [3, 32], strides = [1, 1]} : vector<3x96xf32> to vector<3x32xf32>
    %307 = vector.extract_strided_slice %289 {offsets = [0, 64], sizes = [3, 32], strides = [1, 1]} : vector<3x96xf32> to vector<3x32xf32>
    %308 = arith.mulf %297, %307 : vector<3x32xf32>
    %309 = arith.addf %306, %308 : vector<3x32xf32>
    %310 = math.tanh %309 : vector<3x32xf32>
    %cst_105 = arith.constant 1.000000e+00 : f32
    %311 = vector.broadcast %cst_105 : f32 to vector<3x32xf32>
    %312 = arith.subf %311, %305 : vector<3x32xf32>
    %313 = arith.mulf %312, %310 : vector<3x32xf32>
    %314 = arith.mulf %305, %279 : vector<3x32xf32>
    %315 = arith.addf %313, %314 : vector<3x32xf32>
    %316 = arith.index_cast %c6_i32 : i32 to index
    %c0_106 = arith.constant 0 : index
    %c0_107 = arith.constant 0 : index
    %317 = vector.load %arg12[%316, %c0_106, %c0_107] : memref<16x3x32xf32, #tpu.memory_space<vmem>>, vector<1x3x32xf32>
    %318 = vector.shape_cast %317 : vector<1x3x32xf32> to vector<3x32xf32>
    %319 = vector.shape_cast %315 : vector<3x32xf32> to vector<1x3x32xf32>
    tpu.vector_store %arg12[%316, %c0_106, %c0_107], %319 {strides = array<i32>} : memref<16x3x32xf32, #tpu.memory_space<vmem>>, vector<1x3x32xf32>,
    %c7_i32 = arith.constant 7 : i32
    %320 = arith.index_cast %c7_i32 : i32 to index
    %c0_108 = arith.constant 0 : index
    %c0_109 = arith.constant 0 : index
    %321 = vector.load %arg11[%320, %c0_108, %c0_109] : memref<16x3x96xf32, #tpu.memory_space<vmem>>, vector<1x3x96xf32>
    %322 = vector.shape_cast %321 : vector<1x3x96xf32> to vector<3x96xf32>
    %cst_110 = arith.constant dense<0.000000e+00> : vector<3x96xf32>
    %323 = tpu.matmul %315, %65, %cst_110 {dimension_numbers = #tpu.dot_dimension_numbers<[1], [0], [0], [1], [0, 0, 1, 1], [], []>} : vector<3x32xf32>, vector<32x96xf32>, vector<3x96xf32> -> vector<3x96xf32>
    %324 = vector.broadcast %66 : vector<1x96xf32> to vector<3x96xf32>
    %325 = arith.addf %323, %324 : vector<3x96xf32>
    %326 = vector.extract_strided_slice %322 {offsets = [0, 0], sizes = [3, 32], strides = [1, 1]} : vector<3x96xf32> to vector<3x32xf32>
    %327 = vector.extract_strided_slice %325 {offsets = [0, 0], sizes = [3, 32], strides = [1, 1]} : vector<3x96xf32> to vector<3x32xf32>
    %328 = arith.addf %326, %327 : vector<3x32xf32>
    %329 = arith.negf %328 : vector<3x32xf32>
    %330 = math.exp %329 : vector<3x32xf32>
    %cst_111 = arith.constant 1.000000e+00 : f32
    %331 = vector.broadcast %cst_111 : f32 to vector<3x32xf32>
    %332 = arith.addf %331, %330 : vector<3x32xf32>
    %333 = arith.divf %331, %332 : vector<3x32xf32>
    %334 = vector.extract_strided_slice %322 {offsets = [0, 32], sizes = [3, 32], strides = [1, 1]} : vector<3x96xf32> to vector<3x32xf32>
    %335 = vector.extract_strided_slice %325 {offsets = [0, 32], sizes = [3, 32], strides = [1, 1]} : vector<3x96xf32> to vector<3x32xf32>
    %336 = arith.addf %334, %335 : vector<3x32xf32>
    %337 = arith.negf %336 : vector<3x32xf32>
    %338 = math.exp %337 : vector<3x32xf32>
    %cst_112 = arith.constant 1.000000e+00 : f32
    %339 = vector.broadcast %cst_112 : f32 to vector<3x32xf32>
    %340 = arith.addf %339, %338 : vector<3x32xf32>
    %341 = arith.divf %339, %340 : vector<3x32xf32>
    %342 = vector.extract_strided_slice %322 {offsets = [0, 64], sizes = [3, 32], strides = [1, 1]} : vector<3x96xf32> to vector<3x32xf32>
    %343 = vector.extract_strided_slice %325 {offsets = [0, 64], sizes = [3, 32], strides = [1, 1]} : vector<3x96xf32> to vector<3x32xf32>
    %344 = arith.mulf %333, %343 : vector<3x32xf32>
    %345 = arith.addf %342, %344 : vector<3x32xf32>
    %346 = math.tanh %345 : vector<3x32xf32>
    %cst_113 = arith.constant 1.000000e+00 : f32
    %347 = vector.broadcast %cst_113 : f32 to vector<3x32xf32>
    %348 = arith.subf %347, %341 : vector<3x32xf32>
    %349 = arith.mulf %348, %346 : vector<3x32xf32>
    %350 = arith.mulf %341, %315 : vector<3x32xf32>
    %351 = arith.addf %349, %350 : vector<3x32xf32>
    %352 = arith.index_cast %c7_i32 : i32 to index
    %c0_114 = arith.constant 0 : index
    %c0_115 = arith.constant 0 : index
    %353 = vector.load %arg12[%352, %c0_114, %c0_115] : memref<16x3x32xf32, #tpu.memory_space<vmem>>, vector<1x3x32xf32>
    %354 = vector.shape_cast %353 : vector<1x3x32xf32> to vector<3x32xf32>
    %355 = vector.shape_cast %351 : vector<3x32xf32> to vector<1x3x32xf32>
    tpu.vector_store %arg12[%352, %c0_114, %c0_115], %355 {strides = array<i32>} : memref<16x3x32xf32, #tpu.memory_space<vmem>>, vector<1x3x32xf32>,
    %c8_i32 = arith.constant 8 : i32
    %356 = arith.index_cast %c8_i32 : i32 to index
    %c0_116 = arith.constant 0 : index
    %c0_117 = arith.constant 0 : index
    %357 = vector.load %arg11[%356, %c0_116, %c0_117] : memref<16x3x96xf32, #tpu.memory_space<vmem>>, vector<1x3x96xf32>
    %358 = vector.shape_cast %357 : vector<1x3x96xf32> to vector<3x96xf32>
    %cst_118 = arith.constant dense<0.000000e+00> : vector<3x96xf32>
    %359 = tpu.matmul %351, %65, %cst_118 {dimension_numbers = #tpu.dot_dimension_numbers<[1], [0], [0], [1], [0, 0, 1, 1], [], []>} : vector<3x32xf32>, vector<32x96xf32>, vector<3x96xf32> -> vector<3x96xf32>
    %360 = vector.broadcast %66 : vector<1x96xf32> to vector<3x96xf32>
    %361 = arith.addf %359, %360 : vector<3x96xf32>
    %362 = vector.extract_strided_slice %358 {offsets = [0, 0], sizes = [3, 32], strides = [1, 1]} : vector<3x96xf32> to vector<3x32xf32>
    %363 = vector.extract_strided_slice %361 {offsets = [0, 0], sizes = [3, 32], strides = [1, 1]} : vector<3x96xf32> to vector<3x32xf32>
    %364 = arith.addf %362, %363 : vector<3x32xf32>
    %365 = arith.negf %364 : vector<3x32xf32>
    %366 = math.exp %365 : vector<3x32xf32>
    %cst_119 = arith.constant 1.000000e+00 : f32
    %367 = vector.broadcast %cst_119 : f32 to vector<3x32xf32>
    %368 = arith.addf %367, %366 : vector<3x32xf32>
    %369 = arith.divf %367, %368 : vector<3x32xf32>
    %370 = vector.extract_strided_slice %358 {offsets = [0, 32], sizes = [3, 32], strides = [1, 1]} : vector<3x96xf32> to vector<3x32xf32>
    %371 = vector.extract_strided_slice %361 {offsets = [0, 32], sizes = [3, 32], strides = [1, 1]} : vector<3x96xf32> to vector<3x32xf32>
    %372 = arith.addf %370, %371 : vector<3x32xf32>
    %373 = arith.negf %372 : vector<3x32xf32>
    %374 = math.exp %373 : vector<3x32xf32>
    %cst_120 = arith.constant 1.000000e+00 : f32
    %375 = vector.broadcast %cst_120 : f32 to vector<3x32xf32>
    %376 = arith.addf %375, %374 : vector<3x32xf32>
    %377 = arith.divf %375, %376 : vector<3x32xf32>
    %378 = vector.extract_strided_slice %358 {offsets = [0, 64], sizes = [3, 32], strides = [1, 1]} : vector<3x96xf32> to vector<3x32xf32>
    %379 = vector.extract_strided_slice %361 {offsets = [0, 64], sizes = [3, 32], strides = [1, 1]} : vector<3x96xf32> to vector<3x32xf32>
    %380 = arith.mulf %369, %379 : vector<3x32xf32>
    %381 = arith.addf %378, %380 : vector<3x32xf32>
    %382 = math.tanh %381 : vector<3x32xf32>
    %cst_121 = arith.constant 1.000000e+00 : f32
    %383 = vector.broadcast %cst_121 : f32 to vector<3x32xf32>
    %384 = arith.subf %383, %377 : vector<3x32xf32>
    %385 = arith.mulf %384, %382 : vector<3x32xf32>
    %386 = arith.mulf %377, %351 : vector<3x32xf32>
    %387 = arith.addf %385, %386 : vector<3x32xf32>
    %388 = arith.index_cast %c8_i32 : i32 to index
    %c0_122 = arith.constant 0 : index
    %c0_123 = arith.constant 0 : index
    %389 = vector.load %arg12[%388, %c0_122, %c0_123] : memref<16x3x32xf32, #tpu.memory_space<vmem>>, vector<1x3x32xf32>
    %390 = vector.shape_cast %389 : vector<1x3x32xf32> to vector<3x32xf32>
    %391 = vector.shape_cast %387 : vector<3x32xf32> to vector<1x3x32xf32>
    tpu.vector_store %arg12[%388, %c0_122, %c0_123], %391 {strides = array<i32>} : memref<16x3x32xf32, #tpu.memory_space<vmem>>, vector<1x3x32xf32>,
    %c9_i32 = arith.constant 9 : i32
    %392 = arith.index_cast %c9_i32 : i32 to index
    %c0_124 = arith.constant 0 : index
    %c0_125 = arith.constant 0 : index
    %393 = vector.load %arg11[%392, %c0_124, %c0_125] : memref<16x3x96xf32, #tpu.memory_space<vmem>>, vector<1x3x96xf32>
    %394 = vector.shape_cast %393 : vector<1x3x96xf32> to vector<3x96xf32>
    %cst_126 = arith.constant dense<0.000000e+00> : vector<3x96xf32>
    %395 = tpu.matmul %387, %65, %cst_126 {dimension_numbers = #tpu.dot_dimension_numbers<[1], [0], [0], [1], [0, 0, 1, 1], [], []>} : vector<3x32xf32>, vector<32x96xf32>, vector<3x96xf32> -> vector<3x96xf32>
    %396 = vector.broadcast %66 : vector<1x96xf32> to vector<3x96xf32>
    %397 = arith.addf %395, %396 : vector<3x96xf32>
    %398 = vector.extract_strided_slice %394 {offsets = [0, 0], sizes = [3, 32], strides = [1, 1]} : vector<3x96xf32> to vector<3x32xf32>
    %399 = vector.extract_strided_slice %397 {offsets = [0, 0], sizes = [3, 32], strides = [1, 1]} : vector<3x96xf32> to vector<3x32xf32>
    %400 = arith.addf %398, %399 : vector<3x32xf32>
    %401 = arith.negf %400 : vector<3x32xf32>
    %402 = math.exp %401 : vector<3x32xf32>
    %cst_127 = arith.constant 1.000000e+00 : f32
    %403 = vector.broadcast %cst_127 : f32 to vector<3x32xf32>
    %404 = arith.addf %403, %402 : vector<3x32xf32>
    %405 = arith.divf %403, %404 : vector<3x32xf32>
    %406 = vector.extract_strided_slice %394 {offsets = [0, 32], sizes = [3, 32], strides = [1, 1]} : vector<3x96xf32> to vector<3x32xf32>
    %407 = vector.extract_strided_slice %397 {offsets = [0, 32], sizes = [3, 32], strides = [1, 1]} : vector<3x96xf32> to vector<3x32xf32>
    %408 = arith.addf %406, %407 : vector<3x32xf32>
    %409 = arith.negf %408 : vector<3x32xf32>
    %410 = math.exp %409 : vector<3x32xf32>
    %cst_128 = arith.constant 1.000000e+00 : f32
    %411 = vector.broadcast %cst_128 : f32 to vector<3x32xf32>
    %412 = arith.addf %411, %410 : vector<3x32xf32>
    %413 = arith.divf %411, %412 : vector<3x32xf32>
    %414 = vector.extract_strided_slice %394 {offsets = [0, 64], sizes = [3, 32], strides = [1, 1]} : vector<3x96xf32> to vector<3x32xf32>
    %415 = vector.extract_strided_slice %397 {offsets = [0, 64], sizes = [3, 32], strides = [1, 1]} : vector<3x96xf32> to vector<3x32xf32>
    %416 = arith.mulf %405, %415 : vector<3x32xf32>
    %417 = arith.addf %414, %416 : vector<3x32xf32>
    %418 = math.tanh %417 : vector<3x32xf32>
    %cst_129 = arith.constant 1.000000e+00 : f32
    %419 = vector.broadcast %cst_129 : f32 to vector<3x32xf32>
    %420 = arith.subf %419, %413 : vector<3x32xf32>
    %421 = arith.mulf %420, %418 : vector<3x32xf32>
    %422 = arith.mulf %413, %387 : vector<3x32xf32>
    %423 = arith.addf %421, %422 : vector<3x32xf32>
    %424 = arith.index_cast %c9_i32 : i32 to index
    %c0_130 = arith.constant 0 : index
    %c0_131 = arith.constant 0 : index
    %425 = vector.load %arg12[%424, %c0_130, %c0_131] : memref<16x3x32xf32, #tpu.memory_space<vmem>>, vector<1x3x32xf32>
    %426 = vector.shape_cast %425 : vector<1x3x32xf32> to vector<3x32xf32>
    %427 = vector.shape_cast %423 : vector<3x32xf32> to vector<1x3x32xf32>
    tpu.vector_store %arg12[%424, %c0_130, %c0_131], %427 {strides = array<i32>} : memref<16x3x32xf32, #tpu.memory_space<vmem>>, vector<1x3x32xf32>,
    %c10_i32 = arith.constant 10 : i32
    %428 = arith.index_cast %c10_i32 : i32 to index
    %c0_132 = arith.constant 0 : index
    %c0_133 = arith.constant 0 : index
    %429 = vector.load %arg11[%428, %c0_132, %c0_133] : memref<16x3x96xf32, #tpu.memory_space<vmem>>, vector<1x3x96xf32>
    %430 = vector.shape_cast %429 : vector<1x3x96xf32> to vector<3x96xf32>
    %cst_134 = arith.constant dense<0.000000e+00> : vector<3x96xf32>
    %431 = tpu.matmul %423, %65, %cst_134 {dimension_numbers = #tpu.dot_dimension_numbers<[1], [0], [0], [1], [0, 0, 1, 1], [], []>} : vector<3x32xf32>, vector<32x96xf32>, vector<3x96xf32> -> vector<3x96xf32>
    %432 = vector.broadcast %66 : vector<1x96xf32> to vector<3x96xf32>
    %433 = arith.addf %431, %432 : vector<3x96xf32>
    %434 = vector.extract_strided_slice %430 {offsets = [0, 0], sizes = [3, 32], strides = [1, 1]} : vector<3x96xf32> to vector<3x32xf32>
    %435 = vector.extract_strided_slice %433 {offsets = [0, 0], sizes = [3, 32], strides = [1, 1]} : vector<3x96xf32> to vector<3x32xf32>
    %436 = arith.addf %434, %435 : vector<3x32xf32>
    %437 = arith.negf %436 : vector<3x32xf32>
    %438 = math.exp %437 : vector<3x32xf32>
    %cst_135 = arith.constant 1.000000e+00 : f32
    %439 = vector.broadcast %cst_135 : f32 to vector<3x32xf32>
    %440 = arith.addf %439, %438 : vector<3x32xf32>
    %441 = arith.divf %439, %440 : vector<3x32xf32>
    %442 = vector.extract_strided_slice %430 {offsets = [0, 32], sizes = [3, 32], strides = [1, 1]} : vector<3x96xf32> to vector<3x32xf32>
    %443 = vector.extract_strided_slice %433 {offsets = [0, 32], sizes = [3, 32], strides = [1, 1]} : vector<3x96xf32> to vector<3x32xf32>
    %444 = arith.addf %442, %443 : vector<3x32xf32>
    %445 = arith.negf %444 : vector<3x32xf32>
    %446 = math.exp %445 : vector<3x32xf32>
    %cst_136 = arith.constant 1.000000e+00 : f32
    %447 = vector.broadcast %cst_136 : f32 to vector<3x32xf32>
    %448 = arith.addf %447, %446 : vector<3x32xf32>
    %449 = arith.divf %447, %448 : vector<3x32xf32>
    %450 = vector.extract_strided_slice %430 {offsets = [0, 64], sizes = [3, 32], strides = [1, 1]} : vector<3x96xf32> to vector<3x32xf32>
    %451 = vector.extract_strided_slice %433 {offsets = [0, 64], sizes = [3, 32], strides = [1, 1]} : vector<3x96xf32> to vector<3x32xf32>
    %452 = arith.mulf %441, %451 : vector<3x32xf32>
    %453 = arith.addf %450, %452 : vector<3x32xf32>
    %454 = math.tanh %453 : vector<3x32xf32>
    %cst_137 = arith.constant 1.000000e+00 : f32
    %455 = vector.broadcast %cst_137 : f32 to vector<3x32xf32>
    %456 = arith.subf %455, %449 : vector<3x32xf32>
    %457 = arith.mulf %456, %454 : vector<3x32xf32>
    %458 = arith.mulf %449, %423 : vector<3x32xf32>
    %459 = arith.addf %457, %458 : vector<3x32xf32>
    %460 = arith.index_cast %c10_i32 : i32 to index
    %c0_138 = arith.constant 0 : index
    %c0_139 = arith.constant 0 : index
    %461 = vector.load %arg12[%460, %c0_138, %c0_139] : memref<16x3x32xf32, #tpu.memory_space<vmem>>, vector<1x3x32xf32>
    %462 = vector.shape_cast %461 : vector<1x3x32xf32> to vector<3x32xf32>
    %463 = vector.shape_cast %459 : vector<3x32xf32> to vector<1x3x32xf32>
    tpu.vector_store %arg12[%460, %c0_138, %c0_139], %463 {strides = array<i32>} : memref<16x3x32xf32, #tpu.memory_space<vmem>>, vector<1x3x32xf32>,
    %c11_i32 = arith.constant 11 : i32
    %464 = arith.index_cast %c11_i32 : i32 to index
    %c0_140 = arith.constant 0 : index
    %c0_141 = arith.constant 0 : index
    %465 = vector.load %arg11[%464, %c0_140, %c0_141] : memref<16x3x96xf32, #tpu.memory_space<vmem>>, vector<1x3x96xf32>
    %466 = vector.shape_cast %465 : vector<1x3x96xf32> to vector<3x96xf32>
    %cst_142 = arith.constant dense<0.000000e+00> : vector<3x96xf32>
    %467 = tpu.matmul %459, %65, %cst_142 {dimension_numbers = #tpu.dot_dimension_numbers<[1], [0], [0], [1], [0, 0, 1, 1], [], []>} : vector<3x32xf32>, vector<32x96xf32>, vector<3x96xf32> -> vector<3x96xf32>
    %468 = vector.broadcast %66 : vector<1x96xf32> to vector<3x96xf32>
    %469 = arith.addf %467, %468 : vector<3x96xf32>
    %470 = vector.extract_strided_slice %466 {offsets = [0, 0], sizes = [3, 32], strides = [1, 1]} : vector<3x96xf32> to vector<3x32xf32>
    %471 = vector.extract_strided_slice %469 {offsets = [0, 0], sizes = [3, 32], strides = [1, 1]} : vector<3x96xf32> to vector<3x32xf32>
    %472 = arith.addf %470, %471 : vector<3x32xf32>
    %473 = arith.negf %472 : vector<3x32xf32>
    %474 = math.exp %473 : vector<3x32xf32>
    %cst_143 = arith.constant 1.000000e+00 : f32
    %475 = vector.broadcast %cst_143 : f32 to vector<3x32xf32>
    %476 = arith.addf %475, %474 : vector<3x32xf32>
    %477 = arith.divf %475, %476 : vector<3x32xf32>
    %478 = vector.extract_strided_slice %466 {offsets = [0, 32], sizes = [3, 32], strides = [1, 1]} : vector<3x96xf32> to vector<3x32xf32>
    %479 = vector.extract_strided_slice %469 {offsets = [0, 32], sizes = [3, 32], strides = [1, 1]} : vector<3x96xf32> to vector<3x32xf32>
    %480 = arith.addf %478, %479 : vector<3x32xf32>
    %481 = arith.negf %480 : vector<3x32xf32>
    %482 = math.exp %481 : vector<3x32xf32>
    %cst_144 = arith.constant 1.000000e+00 : f32
    %483 = vector.broadcast %cst_144 : f32 to vector<3x32xf32>
    %484 = arith.addf %483, %482 : vector<3x32xf32>
    %485 = arith.divf %483, %484 : vector<3x32xf32>
    %486 = vector.extract_strided_slice %466 {offsets = [0, 64], sizes = [3, 32], strides = [1, 1]} : vector<3x96xf32> to vector<3x32xf32>
    %487 = vector.extract_strided_slice %469 {offsets = [0, 64], sizes = [3, 32], strides = [1, 1]} : vector<3x96xf32> to vector<3x32xf32>
    %488 = arith.mulf %477, %487 : vector<3x32xf32>
    %489 = arith.addf %486, %488 : vector<3x32xf32>
    %490 = math.tanh %489 : vector<3x32xf32>
    %cst_145 = arith.constant 1.000000e+00 : f32
    %491 = vector.broadcast %cst_145 : f32 to vector<3x32xf32>
    %492 = arith.subf %491, %485 : vector<3x32xf32>
    %493 = arith.mulf %492, %490 : vector<3x32xf32>
    %494 = arith.mulf %485, %459 : vector<3x32xf32>
    %495 = arith.addf %493, %494 : vector<3x32xf32>
    %496 = arith.index_cast %c11_i32 : i32 to index
    %c0_146 = arith.constant 0 : index
    %c0_147 = arith.constant 0 : index
    %497 = vector.load %arg12[%496, %c0_146, %c0_147] : memref<16x3x32xf32, #tpu.memory_space<vmem>>, vector<1x3x32xf32>
    %498 = vector.shape_cast %497 : vector<1x3x32xf32> to vector<3x32xf32>
    %499 = vector.shape_cast %495 : vector<3x32xf32> to vector<1x3x32xf32>
    tpu.vector_store %arg12[%496, %c0_146, %c0_147], %499 {strides = array<i32>} : memref<16x3x32xf32, #tpu.memory_space<vmem>>, vector<1x3x32xf32>,
    %c12_i32 = arith.constant 12 : i32
    %500 = arith.index_cast %c12_i32 : i32 to index
    %c0_148 = arith.constant 0 : index
    %c0_149 = arith.constant 0 : index
    %501 = vector.load %arg11[%500, %c0_148, %c0_149] : memref<16x3x96xf32, #tpu.memory_space<vmem>>, vector<1x3x96xf32>
    %502 = vector.shape_cast %501 : vector<1x3x96xf32> to vector<3x96xf32>
    %cst_150 = arith.constant dense<0.000000e+00> : vector<3x96xf32>
    %503 = tpu.matmul %495, %65, %cst_150 {dimension_numbers = #tpu.dot_dimension_numbers<[1], [0], [0], [1], [0, 0, 1, 1], [], []>} : vector<3x32xf32>, vector<32x96xf32>, vector<3x96xf32> -> vector<3x96xf32>
    %504 = vector.broadcast %66 : vector<1x96xf32> to vector<3x96xf32>
    %505 = arith.addf %503, %504 : vector<3x96xf32>
    %506 = vector.extract_strided_slice %502 {offsets = [0, 0], sizes = [3, 32], strides = [1, 1]} : vector<3x96xf32> to vector<3x32xf32>
    %507 = vector.extract_strided_slice %505 {offsets = [0, 0], sizes = [3, 32], strides = [1, 1]} : vector<3x96xf32> to vector<3x32xf32>
    %508 = arith.addf %506, %507 : vector<3x32xf32>
    %509 = arith.negf %508 : vector<3x32xf32>
    %510 = math.exp %509 : vector<3x32xf32>
    %cst_151 = arith.constant 1.000000e+00 : f32
    %511 = vector.broadcast %cst_151 : f32 to vector<3x32xf32>
    %512 = arith.addf %511, %510 : vector<3x32xf32>
    %513 = arith.divf %511, %512 : vector<3x32xf32>
    %514 = vector.extract_strided_slice %502 {offsets = [0, 32], sizes = [3, 32], strides = [1, 1]} : vector<3x96xf32> to vector<3x32xf32>
    %515 = vector.extract_strided_slice %505 {offsets = [0, 32], sizes = [3, 32], strides = [1, 1]} : vector<3x96xf32> to vector<3x32xf32>
    %516 = arith.addf %514, %515 : vector<3x32xf32>
    %517 = arith.negf %516 : vector<3x32xf32>
    %518 = math.exp %517 : vector<3x32xf32>
    %cst_152 = arith.constant 1.000000e+00 : f32
    %519 = vector.broadcast %cst_152 : f32 to vector<3x32xf32>
    %520 = arith.addf %519, %518 : vector<3x32xf32>
    %521 = arith.divf %519, %520 : vector<3x32xf32>
    %522 = vector.extract_strided_slice %502 {offsets = [0, 64], sizes = [3, 32], strides = [1, 1]} : vector<3x96xf32> to vector<3x32xf32>
    %523 = vector.extract_strided_slice %505 {offsets = [0, 64], sizes = [3, 32], strides = [1, 1]} : vector<3x96xf32> to vector<3x32xf32>
    %524 = arith.mulf %513, %523 : vector<3x32xf32>
    %525 = arith.addf %522, %524 : vector<3x32xf32>
    %526 = math.tanh %525 : vector<3x32xf32>
    %cst_153 = arith.constant 1.000000e+00 : f32
    %527 = vector.broadcast %cst_153 : f32 to vector<3x32xf32>
    %528 = arith.subf %527, %521 : vector<3x32xf32>
    %529 = arith.mulf %528, %526 : vector<3x32xf32>
    %530 = arith.mulf %521, %495 : vector<3x32xf32>
    %531 = arith.addf %529, %530 : vector<3x32xf32>
    %532 = arith.index_cast %c12_i32 : i32 to index
    %c0_154 = arith.constant 0 : index
    %c0_155 = arith.constant 0 : index
    %533 = vector.load %arg12[%532, %c0_154, %c0_155] : memref<16x3x32xf32, #tpu.memory_space<vmem>>, vector<1x3x32xf32>
    %534 = vector.shape_cast %533 : vector<1x3x32xf32> to vector<3x32xf32>
    %535 = vector.shape_cast %531 : vector<3x32xf32> to vector<1x3x32xf32>
    tpu.vector_store %arg12[%532, %c0_154, %c0_155], %535 {strides = array<i32>} : memref<16x3x32xf32, #tpu.memory_space<vmem>>, vector<1x3x32xf32>,
    %c13_i32 = arith.constant 13 : i32
    %536 = arith.index_cast %c13_i32 : i32 to index
    %c0_156 = arith.constant 0 : index
    %c0_157 = arith.constant 0 : index
    %537 = vector.load %arg11[%536, %c0_156, %c0_157] : memref<16x3x96xf32, #tpu.memory_space<vmem>>, vector<1x3x96xf32>
    %538 = vector.shape_cast %537 : vector<1x3x96xf32> to vector<3x96xf32>
    %cst_158 = arith.constant dense<0.000000e+00> : vector<3x96xf32>
    %539 = tpu.matmul %531, %65, %cst_158 {dimension_numbers = #tpu.dot_dimension_numbers<[1], [0], [0], [1], [0, 0, 1, 1], [], []>} : vector<3x32xf32>, vector<32x96xf32>, vector<3x96xf32> -> vector<3x96xf32>
    %540 = vector.broadcast %66 : vector<1x96xf32> to vector<3x96xf32>
    %541 = arith.addf %539, %540 : vector<3x96xf32>
    %542 = vector.extract_strided_slice %538 {offsets = [0, 0], sizes = [3, 32], strides = [1, 1]} : vector<3x96xf32> to vector<3x32xf32>
    %543 = vector.extract_strided_slice %541 {offsets = [0, 0], sizes = [3, 32], strides = [1, 1]} : vector<3x96xf32> to vector<3x32xf32>
    %544 = arith.addf %542, %543 : vector<3x32xf32>
    %545 = arith.negf %544 : vector<3x32xf32>
    %546 = math.exp %545 : vector<3x32xf32>
    %cst_159 = arith.constant 1.000000e+00 : f32
    %547 = vector.broadcast %cst_159 : f32 to vector<3x32xf32>
    %548 = arith.addf %547, %546 : vector<3x32xf32>
    %549 = arith.divf %547, %548 : vector<3x32xf32>
    %550 = vector.extract_strided_slice %538 {offsets = [0, 32], sizes = [3, 32], strides = [1, 1]} : vector<3x96xf32> to vector<3x32xf32>
    %551 = vector.extract_strided_slice %541 {offsets = [0, 32], sizes = [3, 32], strides = [1, 1]} : vector<3x96xf32> to vector<3x32xf32>
    %552 = arith.addf %550, %551 : vector<3x32xf32>
    %553 = arith.negf %552 : vector<3x32xf32>
    %554 = math.exp %553 : vector<3x32xf32>
    %cst_160 = arith.constant 1.000000e+00 : f32
    %555 = vector.broadcast %cst_160 : f32 to vector<3x32xf32>
    %556 = arith.addf %555, %554 : vector<3x32xf32>
    %557 = arith.divf %555, %556 : vector<3x32xf32>
    %558 = vector.extract_strided_slice %538 {offsets = [0, 64], sizes = [3, 32], strides = [1, 1]} : vector<3x96xf32> to vector<3x32xf32>
    %559 = vector.extract_strided_slice %541 {offsets = [0, 64], sizes = [3, 32], strides = [1, 1]} : vector<3x96xf32> to vector<3x32xf32>
    %560 = arith.mulf %549, %559 : vector<3x32xf32>
    %561 = arith.addf %558, %560 : vector<3x32xf32>
    %562 = math.tanh %561 : vector<3x32xf32>
    %cst_161 = arith.constant 1.000000e+00 : f32
    %563 = vector.broadcast %cst_161 : f32 to vector<3x32xf32>
    %564 = arith.subf %563, %557 : vector<3x32xf32>
    %565 = arith.mulf %564, %562 : vector<3x32xf32>
    %566 = arith.mulf %557, %531 : vector<3x32xf32>
    %567 = arith.addf %565, %566 : vector<3x32xf32>
    %568 = arith.index_cast %c13_i32 : i32 to index
    %c0_162 = arith.constant 0 : index
    %c0_163 = arith.constant 0 : index
    %569 = vector.load %arg12[%568, %c0_162, %c0_163] : memref<16x3x32xf32, #tpu.memory_space<vmem>>, vector<1x3x32xf32>
    %570 = vector.shape_cast %569 : vector<1x3x32xf32> to vector<3x32xf32>
    %571 = vector.shape_cast %567 : vector<3x32xf32> to vector<1x3x32xf32>
    tpu.vector_store %arg12[%568, %c0_162, %c0_163], %571 {strides = array<i32>} : memref<16x3x32xf32, #tpu.memory_space<vmem>>, vector<1x3x32xf32>,
    %c14_i32 = arith.constant 14 : i32
    %572 = arith.index_cast %c14_i32 : i32 to index
    %c0_164 = arith.constant 0 : index
    %c0_165 = arith.constant 0 : index
    %573 = vector.load %arg11[%572, %c0_164, %c0_165] : memref<16x3x96xf32, #tpu.memory_space<vmem>>, vector<1x3x96xf32>
    %574 = vector.shape_cast %573 : vector<1x3x96xf32> to vector<3x96xf32>
    %cst_166 = arith.constant dense<0.000000e+00> : vector<3x96xf32>
    %575 = tpu.matmul %567, %65, %cst_166 {dimension_numbers = #tpu.dot_dimension_numbers<[1], [0], [0], [1], [0, 0, 1, 1], [], []>} : vector<3x32xf32>, vector<32x96xf32>, vector<3x96xf32> -> vector<3x96xf32>
    %576 = vector.broadcast %66 : vector<1x96xf32> to vector<3x96xf32>
    %577 = arith.addf %575, %576 : vector<3x96xf32>
    %578 = vector.extract_strided_slice %574 {offsets = [0, 0], sizes = [3, 32], strides = [1, 1]} : vector<3x96xf32> to vector<3x32xf32>
    %579 = vector.extract_strided_slice %577 {offsets = [0, 0], sizes = [3, 32], strides = [1, 1]} : vector<3x96xf32> to vector<3x32xf32>
    %580 = arith.addf %578, %579 : vector<3x32xf32>
    %581 = arith.negf %580 : vector<3x32xf32>
    %582 = math.exp %581 : vector<3x32xf32>
    %cst_167 = arith.constant 1.000000e+00 : f32
    %583 = vector.broadcast %cst_167 : f32 to vector<3x32xf32>
    %584 = arith.addf %583, %582 : vector<3x32xf32>
    %585 = arith.divf %583, %584 : vector<3x32xf32>
    %586 = vector.extract_strided_slice %574 {offsets = [0, 32], sizes = [3, 32], strides = [1, 1]} : vector<3x96xf32> to vector<3x32xf32>
    %587 = vector.extract_strided_slice %577 {offsets = [0, 32], sizes = [3, 32], strides = [1, 1]} : vector<3x96xf32> to vector<3x32xf32>
    %588 = arith.addf %586, %587 : vector<3x32xf32>
    %589 = arith.negf %588 : vector<3x32xf32>
    %590 = math.exp %589 : vector<3x32xf32>
    %cst_168 = arith.constant 1.000000e+00 : f32
    %591 = vector.broadcast %cst_168 : f32 to vector<3x32xf32>
    %592 = arith.addf %591, %590 : vector<3x32xf32>
    %593 = arith.divf %591, %592 : vector<3x32xf32>
    %594 = vector.extract_strided_slice %574 {offsets = [0, 64], sizes = [3, 32], strides = [1, 1]} : vector<3x96xf32> to vector<3x32xf32>
    %595 = vector.extract_strided_slice %577 {offsets = [0, 64], sizes = [3, 32], strides = [1, 1]} : vector<3x96xf32> to vector<3x32xf32>
    %596 = arith.mulf %585, %595 : vector<3x32xf32>
    %597 = arith.addf %594, %596 : vector<3x32xf32>
    %598 = math.tanh %597 : vector<3x32xf32>
    %cst_169 = arith.constant 1.000000e+00 : f32
    %599 = vector.broadcast %cst_169 : f32 to vector<3x32xf32>
    %600 = arith.subf %599, %593 : vector<3x32xf32>
    %601 = arith.mulf %600, %598 : vector<3x32xf32>
    %602 = arith.mulf %593, %567 : vector<3x32xf32>
    %603 = arith.addf %601, %602 : vector<3x32xf32>
    %604 = arith.index_cast %c14_i32 : i32 to index
    %c0_170 = arith.constant 0 : index
    %c0_171 = arith.constant 0 : index
    %605 = vector.load %arg12[%604, %c0_170, %c0_171] : memref<16x3x32xf32, #tpu.memory_space<vmem>>, vector<1x3x32xf32>
    %606 = vector.shape_cast %605 : vector<1x3x32xf32> to vector<3x32xf32>
    %607 = vector.shape_cast %603 : vector<3x32xf32> to vector<1x3x32xf32>
    tpu.vector_store %arg12[%604, %c0_170, %c0_171], %607 {strides = array<i32>} : memref<16x3x32xf32, #tpu.memory_space<vmem>>, vector<1x3x32xf32>,
    %c15_i32 = arith.constant 15 : i32
    %608 = arith.index_cast %c15_i32 : i32 to index
    %c0_172 = arith.constant 0 : index
    %c0_173 = arith.constant 0 : index
    %609 = vector.load %arg11[%608, %c0_172, %c0_173] : memref<16x3x96xf32, #tpu.memory_space<vmem>>, vector<1x3x96xf32>
    %610 = vector.shape_cast %609 : vector<1x3x96xf32> to vector<3x96xf32>
    %cst_174 = arith.constant dense<0.000000e+00> : vector<3x96xf32>
    %611 = tpu.matmul %603, %65, %cst_174 {dimension_numbers = #tpu.dot_dimension_numbers<[1], [0], [0], [1], [0, 0, 1, 1], [], []>} : vector<3x32xf32>, vector<32x96xf32>, vector<3x96xf32> -> vector<3x96xf32>
    %612 = vector.broadcast %66 : vector<1x96xf32> to vector<3x96xf32>
    %613 = arith.addf %611, %612 : vector<3x96xf32>
    %614 = vector.extract_strided_slice %610 {offsets = [0, 0], sizes = [3, 32], strides = [1, 1]} : vector<3x96xf32> to vector<3x32xf32>
    %615 = vector.extract_strided_slice %613 {offsets = [0, 0], sizes = [3, 32], strides = [1, 1]} : vector<3x96xf32> to vector<3x32xf32>
    %616 = arith.addf %614, %615 : vector<3x32xf32>
    %617 = arith.negf %616 : vector<3x32xf32>
    %618 = math.exp %617 : vector<3x32xf32>
    %cst_175 = arith.constant 1.000000e+00 : f32
    %619 = vector.broadcast %cst_175 : f32 to vector<3x32xf32>
    %620 = arith.addf %619, %618 : vector<3x32xf32>
    %621 = arith.divf %619, %620 : vector<3x32xf32>
    %622 = vector.extract_strided_slice %610 {offsets = [0, 32], sizes = [3, 32], strides = [1, 1]} : vector<3x96xf32> to vector<3x32xf32>
    %623 = vector.extract_strided_slice %613 {offsets = [0, 32], sizes = [3, 32], strides = [1, 1]} : vector<3x96xf32> to vector<3x32xf32>
    %624 = arith.addf %622, %623 : vector<3x32xf32>
    %625 = arith.negf %624 : vector<3x32xf32>
    %626 = math.exp %625 : vector<3x32xf32>
    %cst_176 = arith.constant 1.000000e+00 : f32
    %627 = vector.broadcast %cst_176 : f32 to vector<3x32xf32>
    %628 = arith.addf %627, %626 : vector<3x32xf32>
    %629 = arith.divf %627, %628 : vector<3x32xf32>
    %630 = vector.extract_strided_slice %610 {offsets = [0, 64], sizes = [3, 32], strides = [1, 1]} : vector<3x96xf32> to vector<3x32xf32>
    %631 = vector.extract_strided_slice %613 {offsets = [0, 64], sizes = [3, 32], strides = [1, 1]} : vector<3x96xf32> to vector<3x32xf32>
    %632 = arith.mulf %621, %631 : vector<3x32xf32>
    %633 = arith.addf %630, %632 : vector<3x32xf32>
    %634 = math.tanh %633 : vector<3x32xf32>
    %cst_177 = arith.constant 1.000000e+00 : f32
    %635 = vector.broadcast %cst_177 : f32 to vector<3x32xf32>
    %636 = arith.subf %635, %629 : vector<3x32xf32>
    %637 = arith.mulf %636, %634 : vector<3x32xf32>
    %638 = arith.mulf %629, %603 : vector<3x32xf32>
    %639 = arith.addf %637, %638 : vector<3x32xf32>
    %640 = arith.index_cast %c15_i32 : i32 to index
    %c0_178 = arith.constant 0 : index
    %c0_179 = arith.constant 0 : index
    %641 = vector.load %arg12[%640, %c0_178, %c0_179] : memref<16x3x32xf32, #tpu.memory_space<vmem>>, vector<1x3x32xf32>
    %642 = vector.shape_cast %641 : vector<1x3x32xf32> to vector<3x32xf32>
    %643 = vector.shape_cast %639 : vector<3x32xf32> to vector<1x3x32xf32>
    tpu.vector_store %arg12[%640, %c0_178, %c0_179], %643 {strides = array<i32>} : memref<16x3x32xf32, #tpu.memory_space<vmem>>, vector<1x3x32xf32>,
    %c16_i32 = arith.constant 16 : i32
    %c0_180 = arith.constant 0 : index
    %c0_181 = arith.constant 0 : index
    %c0_182 = arith.constant 0 : index
    %644 = vector.load %arg12[%c0_180, %c0_181, %c0_182] : memref<16x3x32xf32, #tpu.memory_space<vmem>>, vector<16x1x32xf32>
    %645 = vector.shape_cast %644 : vector<16x1x32xf32> to vector<16x32xf32>
    %c0_183 = arith.constant 0 : index
    %c0_184 = arith.constant 0 : index
    %c0_185 = arith.constant 0 : index
    %646 = vector.load %arg10[%c0_183, %c0_184, %c0_185] : memref<3x16x32xf32, #tpu.memory_space<vmem>>, vector<1x16x32xf32>
    %647 = vector.shape_cast %646 : vector<1x16x32xf32> to vector<16x32xf32>
    %648 = vector.shape_cast %645 : vector<16x32xf32> to vector<1x16x32xf32>
    tpu.vector_store %arg10[%c0_183, %c0_184, %c0_185], %648 {strides = array<i32>} : memref<3x16x32xf32, #tpu.memory_space<vmem>>, vector<1x16x32xf32>,
    %c0_186 = arith.constant 0 : index
    %c1_187 = arith.constant 1 : index
    %c0_188 = arith.constant 0 : index
    %649 = vector.load %arg12[%c0_186, %c1_187, %c0_188] : memref<16x3x32xf32, #tpu.memory_space<vmem>>, vector<16x1x32xf32>
    %650 = vector.shape_cast %649 : vector<16x1x32xf32> to vector<16x32xf32>
    %c1_189 = arith.constant 1 : index
    %c0_190 = arith.constant 0 : index
    %c0_191 = arith.constant 0 : index
    %651 = vector.load %arg10[%c1_189, %c0_190, %c0_191] : memref<3x16x32xf32, #tpu.memory_space<vmem>>, vector<1x16x32xf32>
    %652 = vector.shape_cast %651 : vector<1x16x32xf32> to vector<16x32xf32>
    %653 = vector.shape_cast %650 : vector<16x32xf32> to vector<1x16x32xf32>
    tpu.vector_store %arg10[%c1_189, %c0_190, %c0_191], %653 {strides = array<i32>} : memref<3x16x32xf32, #tpu.memory_space<vmem>>, vector<1x16x32xf32>,
    %c0_192 = arith.constant 0 : index
    %c2_193 = arith.constant 2 : index
    %c0_194 = arith.constant 0 : index
    %654 = vector.load %arg12[%c0_192, %c2_193, %c0_194] : memref<16x3x32xf32, #tpu.memory_space<vmem>>, vector<16x1x32xf32>
    %655 = vector.shape_cast %654 : vector<16x1x32xf32> to vector<16x32xf32>
    %c2_195 = arith.constant 2 : index
    %c0_196 = arith.constant 0 : index
    %c0_197 = arith.constant 0 : index
    %656 = vector.load %arg10[%c2_195, %c0_196, %c0_197] : memref<3x16x32xf32, #tpu.memory_space<vmem>>, vector<1x16x32xf32>
    %657 = vector.shape_cast %656 : vector<1x16x32xf32> to vector<16x32xf32>
    %658 = vector.shape_cast %655 : vector<16x32xf32> to vector<1x16x32xf32>
    tpu.vector_store %arg10[%c2_195, %c0_196, %c0_197], %658 {strides = array<i32>} : memref<3x16x32xf32, #tpu.memory_space<vmem>>, vector<1x16x32xf32>,
    return
  }
}

</mosaic_0001>

<bundles_post_ra>
// kernel: tpu_custom_call.1
= control target key start
LH: loop header
LB: loop body
LE: loop exit
PB: predicated region body
PF: predicated region fallthrough
CT: control target
= control target key end

     0   :  { %15 = vsyncpa [#allocation5], 0  ;;  %s4906_s0 = inlined_call_operand.hbm [shape: f32[3,16,16], index: 0, kind: input, shape index: {}]   ;;  %s4907_s1 = inlined_call_operand.vmem [shape: f32[16,8], index: 1, kind: input, shape index: {}]   ;;  %s4908_s2 = inlined_call_operand.hbm [shape: f32[8,32], index: 2, kind: input, shape index: {}]   ;;  %s4909_s3 = inlined_call_operand.vmem [shape: f32[1,32], index: 3, kind: input, shape index: {}]   ;;  %s4910_s4 = inlined_call_operand.hbm [shape: f32[32,32], index: 4, kind: input, shape index: {}]   ;;  %s4911_s5 = inlined_call_operand.vmem [shape: f32[1,32], index: 5, kind: input, shape index: {}]   ;;  %s4912_s6 = inlined_call_operand.vmem [shape: f32[32,96], index: 6, kind: input, shape index: {}]   ;;  %s4913_s7 = inlined_call_operand.vmem [shape: f32[1,96], index: 7, kind: input, shape index: {}]   ;;  %s4914_s8 = inlined_call_operand.hbm [shape: f32[32,96], index: 8, kind: input, shape index: {}]   ;;  %s4915_s9 = inlined_call_operand.vmem [shape: f32[1,96], index: 9, kind: input, shape index: {}]   ;;  %s4916_s10 = inlined_call_operand.hbm [shape: f32[3,16,32], index: 10, kind: output, shape index: {}]  }
   0x1   :  { %16 = vsyncpa [#allocation8], 0 }
   0x2   :  { %17 = vsyncpa [#allocation11], 0 }
   0x3   :  { %18 = vsyncpa [#allocation6], 0  ;;  %s4217_s13 = smov [#allocation7]   ;;  %s4218_s15 = smov [#allocation4]  }
   0x4   :  { %s39_s14 = sshll.u32 %s4217_s13, 4  ;;  %s24_s16 = sshll.u32 %s4218_s15, 4  ;;  %s40_s14 = int_to_ptr.vmem [resolvable:$true] %s39_s14  ;;  %s25_s16 = int_to_ptr.vmem [resolvable:$true] %s24_s16 }
   0x5   :  { %s4117_s17 = scalar_lea.vmem %s40_s14, 128  ;;  %p4122_p1 = scmp.lt.s32.totalorder %s40_s14, %s40_s14 }
   0x6   :  { %p4118_p0 = scmp.ne.s32.totalorder %s40_s14, %s4117_s17  ;;  %p4123_p2 = scmp.lt.s32.totalorder %s4117_s17, %s4117_s17 }
   0x8   :  { %p4124_p3 = por %p4123_p2, %p4122_p1 }
   0xa   :  { %p4125_p4 = pnand %p4124_p3, %p4118_p0 }
   0xc   :  { %4128 = shalt.err (!%p4125_p4)
}
   0xd   :  { %42 = dma.hbm_to_vmem [thread:$0]  %s4908_s2, 128, %s40_s14, [#allocation8]  }
   0xe   :  { %s4137_s20 = scalar_lea.vmem %s25_s16, 768  ;;  %p4142_p6 = scmp.lt.s32.totalorder %s25_s16, %s25_s16 }
   0xf   :  { %p4138_p5 = scmp.ne.s32.totalorder %s25_s16, %s4137_s20  ;;  %p4143_p7 = scmp.lt.s32.totalorder %s4137_s20, %s4137_s20 }
  0x11   :  { %p4144_p8 = por %p4143_p7, %p4142_p6 }
  0x13   :  { %p4145_p9 = pnand %p4144_p8, %p4138_p5 }
  0x15   :  { %4148 = shalt.err (!%p4145_p9)
}
  0x16   :  { %s4219_s21 = smov 128   ;;  %s4220_s22 = smov 8  }
  0x17   :  { %30 = dma.hbm_to_vmem [thread:$0]  %s4906_s0, 768, %s25_s16, [#allocation5], %s4219_s21, %s4219_s21, %s4220_s22  }
  0x18   :  { %s4221_s25 = smov [#allocation9]   ;;  %s4222_s27 = smov [#allocation10]  }
  0x19   :  { %s50_s26 = sshll.u32 %s4221_s25, 4  ;;  %s68_s2 = sshll.u32 %s4222_s27, 4  ;;  %s51_s26 = int_to_ptr.vmem [resolvable:$true] %s50_s26  ;;  %s69_s2 = int_to_ptr.vmem [resolvable:$true] %s68_s2 }
  0x1a   :  { %s4157_s28 = scalar_lea.vmem %s51_s26, 512  ;;  %p4162_p11 = scmp.lt.s32.totalorder %s51_s26, %s51_s26 }
  0x1b   :  { %p4158_p10 = scmp.ne.s32.totalorder %s51_s26, %s4157_s28  ;;  %p4163_p12 = scmp.lt.s32.totalorder %s4157_s28, %s4157_s28 }
  0x1d   :  { %p4164_p13 = por %p4163_p12, %p4162_p11 }
  0x1f   :  { %p4165_p0 = pnand %p4164_p13, %p4158_p10 }
  0x21   :  { %4168 = shalt.err (!%p4165_p0)
}
  0x22   :  { %56 = dma.hbm_to_vmem [thread:$0]  %s4910_s4, 512, %s51_s26, [#allocation8], %s4219_s21, %s4219_s21, %s4220_s22  }
  0x23   :  { %s4177_s0 = scalar_lea.vmem %s69_s2, 512  ;;  %p4182_p2 = scmp.lt.s32.totalorder %s69_s2, %s69_s2 }
  0x24   :  { %p4178_p1 = scmp.ne.s32.totalorder %s69_s2, %s4177_s0  ;;  %p4183_p3 = scmp.lt.s32.totalorder %s4177_s0, %s4177_s0 }
  0x26   :  { %p4184_p4 = por %p4183_p3, %p4182_p2 }
  0x28   :  { %p4185_p5 = pnand %p4184_p4, %p4178_p1 }
  0x2a   :  { %4188 = shalt.err (!%p4185_p5)
}
  0x2b   :  { %74 = dma.hbm_to_vmem [thread:$0]  %s4914_s8, 512, %s69_s2, [#allocation11], %s4219_s21, %s4219_s21, %s4220_s22  }
  0x2c   :  { %4209 = dma.done.wait [#allocation5], 768  }
  0x2d   :  { %4210 = vsyncadd [#allocation5], 4294966528 }
  0x2e   :  { %4211 = dma.done.wait [#allocation8], 640  }
  0x2f   :  { %4212 = vsyncadd [#allocation8], 4294966656 }
  0x30   :  { %4213 = dma.done.wait [#allocation11], 512  }
  0x31   :  { %4214 = vsyncadd [#allocation11], 4294966784  ;;  %vm92_vm0 = vcmask 64512   ;;  %v91_v0 = vld [vmem:[#allocation7] sm:$0xff]  ;;  %v89_v1 = vld [vmem:[%s4907_s1] sm:$0xff]  ;;  %vm193_vm1 = vcmask 130048   ;;  %v535_v56 = vlaneseq }
  0x32   :  { %v90_v2 = vld [vmem:[%s4907_s1 + $0x8] sm:$0xff]  ;;  %3707 = vmatprep.subr.mxu0 %v91_v0  ;;  %3709 = vmatprep.mubr.msk.f32.mxu0 %vm92_vm0, %v89_v1  ;;  %v185_v3 = vld [vmem:[#allocation4] sm:$0xff]  ;;  %v4319_v7 = vld [vmem:[#allocation9 + $0x18] sm:$0xff]  ;;  %vm277_vm2 = vcmask 261120   ;;  %v4223_v50 = vmov 0.0   ;;  %vm4224_vm3 = vmmov 0  }
  0x33   :  { %3708 = vmatpush3.msra.mxu0 %v91_v0  ;;  %3734 = vmatprep.mubr.msk.f32.mxu1 %vm193_vm1, %v185_v3  ;;  %v186_v6 = vld [vmem:[#allocation4 + $0x8] sm:$0xff]  ;;  %v175_v9 = vld [vmem:[#allocation9 + $0x8] sm:$0xff]  ;;  %v174_v10 = vld [vmem:[#allocation9] sm:$0xff]  ;;  %v4225_v54 = vmov 1966171168   ;;  %v536_v58 = vshrl.u32 %v535_v56, 7 }
  0x34   :  { %3710 = vmatmul.mubr.msk.f32.vlgmr.msra.gmra.mxu0 %vm92_vm0, %v90_v2  ;;  %v4323_v8 = vld [vmem:[#allocation9 + $0x10] sm:$0xff]  ;;  %v4334_v11 = vld [vmem:[%s4909_s3] ss:$0 sm:$0xff]  ;;  %v4338_v18 = vld [vmem:[#allocation4 + $0x10] sm:$0xff]  ;;  %v533_v55 = vunpack.c.l.s4 %v4225_v54  ;;  %vm645_vm4 = vcmask 778240   ;;  %s4226_s2 = smov 64  }
  0x35   :  { %3716 = vmatprep.mubr.msk.f32.mxu0 %vm193_vm1, %v185_v3  ;;  %v4345_v19 = vld [vmem:[#allocation4 + $0x18] sm:$0xff]  ;;  %v4359_v28 = vld [vmem:[#allocation4 + $0x20] sm:$0xff]  ;;  %v4366_v29 = vld [vmem:[#allocation4 + $0x28] sm:$0xff]  ;;  %s4227_s28 = smov 96   ;;  %vm1691_vm5 = vcmask 256000   ;;  %vm3316_vm6 = vcmask 1041409  }
  0x36   :  { %v4379_v30 = vld [vmem:[%s4912_s6 + $0x18] sm:$0xff]  ;;  %v4386_v31 = vld [vmem:[%s4912_s6 + $0x10] sm:$0xff]  ;;  %v4393_v32 = vld [vmem:[%s4912_s6 + $0x8] sm:$0xff]  ;;  %v534_v57 = vunpack.c.0.s8 %v533_v55  ;;  %vm3319_vm7 = vcmask 1042434   ;;  %vm3322_vm8 = vcmask 1043459   ;;  %vm3325_vm9 = vcmask 1044484  }
  0x37   :  { %v4399_v33 = vld [vmem:[%s4912_s6] sm:$0xff]  ;;  %v4429_v49 = vld [vmem:[#allocation10 + $0x18] sm:$0xff]  ;;  %v4432_v51 = vld [vmem:[#allocation10 + $0x10] sm:$0xff]  ;;  %vm3328_vm10 = vcmask 1045509   ;;  %vm3331_vm11 = vcmask 1046534   ;;  %vm3334_vm12 = vcmask 1047559  }
  0x38   :  { %v4407_v34 = vld [vmem:[%s4911_s5] ss:$0 sm:$0xff]  ;;  %v4442_v53 = vld [vmem:[#allocation10] sm:$0xff]  ;;  %v4464_v60 = vsub.s32 %v534_v57, %v536_v58 }
  0x39   :  { %v4438_v52 = vld [vmem:[#allocation10 + $0x8] sm:$0xff] }
  0x3a   :  { %v4462_v59 = vld [vmem:[%s4913_s7] ss:$0 sm:$0xff] }
  0xf4   :  { %v4313_v4 = vpop.f32.mrf.mxu0 }
  0xf5   :  { %3712 = vmatprep.subr.mxu0 %v4313_v4 }
  0xf6   :  { %v4316_v5 = vpop.f32.mrf.mxu0  ;;  %3713 = vmatpush3.msra.mxu0 %v4313_v4 }
  0xf7   :  { %3714 = vmatprep.subr.mxu0 %v4316_v5 }
  0xf8   :  { %3715 = vmatpush3.msra.mxu0 %v4316_v5 }
  0xf9   :  { %3717 = vmatmul.mubr.msk.f32.vlgmr.msra.gmra.mxu0 %vm193_vm1, %v186_v6  ;;  %3719 = vmatprep.subr.mxu0 %v4319_v7 }
  0xfa   :  { %3720 = vmatpush3.msra.mxu0 %v4319_v7 }
  0xfb   :  { %3721 = vmatprep.subr.mxu0 %v4323_v8 }
  0xfc   :  { %3722 = vmatpush3.msra.mxu0 %v4323_v8 }
  0xfd   :  { %3723 = vmatprep.subr.mxu0 %v175_v9 }
  0xfe   :  { %3724 = vmatpush3.msra.mxu0 %v175_v9 }
  0xff   :  { %3725 = vmatprep.subr.mxu0 %v174_v10 }
 0x100   :  { %3726 = vmatpush3.msra.mxu0 %v174_v10 }
 0x101   :  { %3748 = vmatprep.subr.mxu0 %v4313_v4 }
 0x1b9   :  { %v3718_v12 = vpop.f32.mrf.mxu0 }
 0x1ba   :  { %v272_v13 = vadd.f32 %v3718_v12, %v4334_v11 }
 0x1bb   :  { %v266_v14 = vpop.f32.mrf.mxu0 }
 0x1bc   :  { %v267_v15 = vadd.f32 %v4334_v11, %v266_v14  ;;  %v276_v17 = vmax.f32 %v272_v13, 0.0 }
 0x1be   :  { %v275_v16 = vmax.f32 %v267_v15, 0.0 }
 0x1c0   :  { %3727 = vmatprep.mubr.msk.f32.mxu0 %vm277_vm2, %v275_v16 }
 0x1c1   :  { %3728 = vmatmul.mubr.msk.f32.vlgmr.msra.gmra.mxu0 %vm277_vm2, %v276_v17 }
 0x1c2   :  { %3749 = vmatpush3.msra.mxu0 %v4313_v4  ;;  %3752 = vmatprep.mubr.msk.f32.mxu0 %vm193_vm1, %v4338_v18 }
 0x1c3   :  { %3750 = vmatprep.subr.mxu0 %v4316_v5 }
 0x1c4   :  { %3751 = vmatpush3.msra.mxu0 %v4316_v5 }
 0x1c5   :  { %3755 = vmatprep.subr.mxu0 %v4319_v7  ;;  %3753 = vmatmul.mubr.msk.f32.vlgmr.msra.gmra.mxu0 %vm193_vm1, %v4345_v19 }
 0x1c6   :  { %3756 = vmatpush3.msra.mxu0 %v4319_v7 }
 0x1c7   :  { %3757 = vmatprep.subr.mxu0 %v4323_v8 }
 0x1c8   :  { %3758 = vmatpush3.msra.mxu0 %v4323_v8 }
 0x1c9   :  { %3759 = vmatprep.subr.mxu0 %v175_v9 }
 0x1ca   :  { %3760 = vmatpush3.msra.mxu0 %v175_v9 }
 0x1cb   :  { %3761 = vmatprep.subr.mxu0 %v174_v10 }
 0x1cc   :  { %3762 = vmatpush3.msra.mxu0 %v174_v10 }
 0x1cd   :  { %3784 = vmatprep.subr.mxu0 %v4313_v4 }
 0x281   :  { %v3729_v20 = vpop.f32.mrf.mxu0 }
 0x282   :  { %3730 = vmatprep.subr.mxu1 %v3729_v20 }
 0x283   :  { %v350_v21 = vpop.f32.mrf.mxu0  ;;  %3731 = vmatpush3.msra.mxu1 %v3729_v20 }
 0x284   :  { %3732 = vmatprep.subr.mxu1 %v350_v21 }
 0x285   :  { %3733 = vmatpush3.msra.mxu1 %v350_v21  ;;  %v3754_v22 = vpop.f32.mrf.mxu0 }
 0x286   :  { %3735 = vmatmul.mubr.msk.f32.vlgmr.msra.gmra.mxu1 %vm193_vm1, %v186_v6  ;;  %v743_v23 = vadd.f32 %v3754_v22, %v4334_v11  ;;  %3737 = vmatprep.subr.mxu1 %v4379_v30 }
 0x287   :  { %v737_v24 = vpop.f32.mrf.mxu0  ;;  %3738 = vmatpush3.msra.mxu1 %v4379_v30 }
 0x288   :  { %v738_v25 = vadd.f32 %v4334_v11, %v737_v24  ;;  %v747_v27 = vmax.f32 %v743_v23, 0.0  ;;  %3739 = vmatprep.subr.mxu1 %v4386_v31 }
 0x289   :  { %3740 = vmatpush3.msra.mxu1 %v4386_v31 }
 0x28a   :  { %v746_v26 = vmax.f32 %v738_v25, 0.0  ;;  %3741 = vmatprep.subr.mxu1 %v4393_v32 }
 0x28b   :  { %3742 = vmatpush3.msra.mxu1 %v4393_v32 }
 0x28c   :  { %3763 = vmatprep.mubr.msk.f32.mxu0 %vm277_vm2, %v746_v26  ;;  %3743 = vmatprep.subr.mxu1 %v4399_v33 }
 0x28d   :  { %3764 = vmatmul.mubr.msk.f32.vlgmr.msra.gmra.mxu0 %vm277_vm2, %v747_v27  ;;  %3744 = vmatpush3.msra.mxu1 %v4399_v33 }
 0x28e   :  { %3785 = vmatpush3.msra.mxu0 %v4313_v4  ;;  %3788 = vmatprep.mubr.msk.f32.mxu0 %vm193_vm1, %v4359_v28 }
 0x28f   :  { %3786 = vmatprep.subr.mxu0 %v4316_v5 }
 0x290   :  { %3787 = vmatpush3.msra.mxu0 %v4316_v5 }
 0x291   :  { %3789 = vmatmul.mubr.msk.f32.vlgmr.msra.gmra.mxu0 %vm193_vm1, %v4366_v29  ;;  %3791 = vmatprep.subr.mxu0 %v4319_v7 }
 0x292   :  { %3792 = vmatpush3.msra.mxu0 %v4319_v7 }
 0x293   :  { %3793 = vmatprep.subr.mxu0 %v4323_v8 }
 0x294   :  { %3794 = vmatpush3.msra.mxu0 %v4323_v8 }
 0x295   :  { %3795 = vmatprep.subr.mxu0 %v175_v9 }
 0x296   :  { %3796 = vmatpush3.msra.mxu0 %v175_v9 }
 0x297   :  { %3797 = vmatprep.subr.mxu0 %v174_v10 }
 0x298   :  { %3798 = vmatpush3.msra.mxu0 %v174_v10 }
 0x299   :  { %3820 = vmatprep.subr.mxu0 %v4223_v50 }
 0x346   :  { %v3736_v35 = vpop.f32.mrf.mxu1 }
 0x347   :  { %v437_v36 = vadd.f32 %v3736_v35, %v4407_v34 }
 0x348   :  { %v431_v37 = vpop.f32.mrf.mxu1 }
 0x349   :  { %v432_v38 = vadd.f32 %v4407_v34, %v431_v37  ;;  %v441_v40 = vmax.f32 %v437_v36, 0.0 }
 0x34b   :  { %v440_v39 = vmax.f32 %v432_v38, 0.0 }
 0x34d   :  { %3745 = vmatprep.mubr.msk.f32.mxu1 %vm277_vm2, %v440_v39  ;;  %v3765_v41 = vpop.f32.mrf.mxu0 }
 0x34e   :  { %3746 = vmatmul.mubr.msk.f32.vlgmr.msra.gmra.mxu1 %vm277_vm2, %v441_v40  ;;  %3766 = vmatprep.subr.mxu1 %v3765_v41 }
 0x34f   :  { %v820_v42 = vpop.f32.mrf.mxu0  ;;  %3767 = vmatpush3.msra.mxu1 %v3765_v41  ;;  %3770 = vmatprep.mubr.msk.f32.mxu1 %vm193_vm1, %v4338_v18 }
 0x350   :  { %3768 = vmatprep.subr.mxu1 %v820_v42 }
 0x351   :  { %3769 = vmatpush3.msra.mxu1 %v820_v42  ;;  %v3790_v43 = vpop.f32.mrf.mxu0 }
 0x352   :  { %3771 = vmatmul.mubr.msk.f32.vlgmr.msra.gmra.mxu1 %vm193_vm1, %v4345_v19  ;;  %3773 = vmatprep.subr.mxu1 %v4379_v30  ;;  %v1200_v44 = vadd.f32 %v3790_v43, %v4334_v11 }
 0x353   :  { %v1194_v45 = vpop.f32.mrf.mxu0  ;;  %3774 = vmatpush3.msra.mxu1 %v4379_v30 }
 0x354   :  { %v1195_v46 = vadd.f32 %v4334_v11, %v1194_v45  ;;  %3775 = vmatprep.subr.mxu1 %v4386_v31  ;;  %v1204_v48 = vmax.f32 %v1200_v44, 0.0 }
 0x355   :  { %3776 = vmatpush3.msra.mxu1 %v4386_v31 }
 0x356   :  { %v1203_v47 = vmax.f32 %v1195_v46, 0.0  ;;  %3777 = vmatprep.subr.mxu1 %v4393_v32 }
 0x357   :  { %3778 = vmatpush3.msra.mxu1 %v4393_v32 }
 0x358   :  { %3799 = vmatprep.mubr.msk.f32.mxu0 %vm277_vm2, %v1203_v47  ;;  %3779 = vmatprep.subr.mxu1 %v4399_v33 }
 0x359   :  { %3800 = vmatmul.mubr.msk.f32.vlgmr.msra.gmra.mxu0 %vm277_vm2, %v1204_v48  ;;  %3780 = vmatpush3.msra.mxu1 %v4399_v33 }
 0x35a   :  { %3828 = vmatprep.mubr.msk.f32.mxu0 %vm4224_vm3, %v4223_v50  ;;  %3821 = vmatpush3.msra.mxu0 %v4429_v49 }
 0x35b   :  { %3822 = vmatprep.subr.mxu0 %v4223_v50 }
 0x35c   :  { %3823 = vmatpush3.msra.mxu0 %v4432_v51 }
 0x35d   :  { %3824 = vmatprep.subr.mxu0 %v4223_v50 }
 0x35e   :  { %3825 = vmatpush3.msra.mxu0 %v4438_v52 }
 0x35f   :  { %3826 = vmatprep.subr.mxu0 %v4223_v50 }
 0x360   :  { %3827 = vmatpush3.msra.mxu0 %v4442_v53 }
 0x361   :  { %3829 = vmatmul.mubr.f32.vlgmr.msra.gmra.mxu0 %v4223_v50  ;;  %3842 = vmatprep.subr.mxu0 %v4223_v50 }
 0x362   :  { %3843 = vmatpush3.msra.mxu0 %v4429_v49  ;;  %3850 = vmatprep.mubr.msk.f32.mxu0 %vm4224_vm3, %v4223_v50 }
 0x363   :  { %3844 = vmatprep.subr.mxu0 %v4223_v50 }
 0x364   :  { %3845 = vmatpush3.msra.mxu0 %v4432_v51 }
 0x365   :  { %3846 = vmatprep.subr.mxu0 %v4223_v50 }
 0x366   :  { %3847 = vmatpush3.msra.mxu0 %v4438_v52 }
 0x367   :  { %3848 = vmatprep.subr.mxu0 %v4223_v50 }
 0x368   :  { %3849 = vmatpush3.msra.mxu0 %v4442_v53 }
 0x369   :  { %3864 = vmatprep.subr.mxu0 %v4223_v50 }
 0x40e   :  { %v3747_v61 = vpop.f32.mrf.mxu1 }
 0x40f   :  { %v526_v62 = vadd.f32 %v3747_v61, %v4462_v59 }
 0x410   :  { %v520_v63 = vpop.f32.mrf.mxu1 }
 0x411   :  { %v580_v0 = vcombine.high %v526_v62, %v526_v62  ;;  %v587_v1 = vrot.slane %v526_v62, %v4464_v60  ;;  %v521_v2 = vadd.f32 %v4462_v59, %v520_v63 }
 0x412   :  { %v3772_v3 = vpop.f32.mrf.mxu1 }
 0x413   :  { %v594_v4 = vrot.slane %v580_v0, %v4464_v60  ;;  %v595_v5 = vcombine.high %v587_v1, %v587_v1  ;;  %v603_v6 = vrot.slane %v587_v1, %v4464_v60  ;;  %v531_v7 = vcombine.high %v521_v2, %v521_v2 }
 0x414   :  { %v538_v8 = vrot.slane %v521_v2, %v4464_v60  ;;  %v895_v9 = vpop.f32.mrf.mxu1  ;;  %v901_v17 = vadd.f32 %v3772_v3, %v4407_v34 }
 0x415   :  { %v596_v10 = vcombine.high %v594_v4, %v594_v4  ;;  %v610_v11 = vrot.slane %v594_v4, %v4464_v60  ;;  %v617_v12 = vrot.slane %v595_v5, %v4464_v60  ;;  %v625_v13 = vcombine.high %v603_v6, %v603_v6  ;;  %654 = vst.msk [vmem:[#allocation2 + $0x20] sm:$0x1] %vm645_vm4, %v603_v6 }
 0x416   :  { %v545_v14 = vrot.slane %v531_v7, %v4464_v60  ;;  %v546_v15 = vcombine.high %v538_v8, %v538_v8  ;;  %v554_v16 = vrot.slane %v538_v8, %v4464_v60  ;;  %v896_v21 = vadd.f32 %v4407_v34, %v895_v9 }
 0x417   :  { %v624_v18 = vrot.slane %v596_v10, %v4464_v60  ;;  %v626_v19 = vcombine.high %v610_v11, %v610_v11  ;;  %v627_v20 = vcombine.high %v617_v12, %v617_v12  ;;  %655 = vst.msk [vmem:[#allocation2 + $0x24] sm:$0x1] %vm645_vm4, %v617_v12  ;;  %656 = vst.msk [vmem:[#allocation2 + $0x28] sm:$0x1] %vm645_vm4, %v625_v13  ;;  %v905_v39 = vmax.f32 %v901_v17, 0.0 }
 0x418   :  { %658 = vst.msk [vmem:[#allocation2 + $0x30] sm:$0x1] %vm645_vm4, %v610_v11  ;;  %v547_v22 = vcombine.high %v545_v14, %v545_v14  ;;  %v561_v23 = vrot.slane %v545_v14, %v4464_v60  ;;  %v568_v24 = vrot.slane %v546_v15, %v4464_v60  ;;  %v576_v25 = vcombine.high %v554_v16, %v554_v16 }
 0x419   :  { %646 = vst.msk [vmem:[#allocation2] sm:$0x1] %vm645_vm4, %v554_v16  ;;  %v628_v26 = vcombine.high %v624_v18, %v624_v18  ;;  %657 = vst.msk [vmem:[#allocation2 + $0x2c] sm:$0x1] %vm645_vm4, %v627_v20  ;;  %v904_v27 = vmax.f32 %v896_v21, 0.0  ;;  %v3801_v35 = vpop.f32.mrf.mxu0 }
 0x41a   :  { %659 = vst.msk [vmem:[#allocation2 + $0x34] sm:$0x1] %vm645_vm4, %v624_v18  ;;  %660 = vst.msk [vmem:[#allocation2 + $0x38] sm:$0x1] %vm645_vm4, %v626_v19  ;;  %v575_v36 = vrot.slane %v547_v22, %v4464_v60  ;;  %v577_v37 = vcombine.high %v561_v23, %v561_v23  ;;  %v578_v38 = vcombine.high %v568_v24, %v568_v24  ;;  %3802 = vmatprep.subr.mxu1 %v3801_v35 }
 0x41b   :  { %647 = vst.msk [vmem:[#allocation2 + $0x4] sm:$0x1] %vm645_vm4, %v568_v24  ;;  %648 = vst.msk [vmem:[#allocation2 + $0x8] sm:$0x1] %vm645_vm4, %v576_v25  ;;  %3781 = vmatprep.mubr.msk.f32.mxu1 %vm277_vm2, %v904_v27  ;;  %v1277_v40 = vpop.f32.mrf.mxu0 }
 0x41c   :  { %650 = vst.msk [vmem:[#allocation2 + $0x10] sm:$0x1] %vm645_vm4, %v561_v23  ;;  %661 = vst.msk [vmem:[#allocation2 + $0x3c] sm:$0x1] %vm645_vm4, %v628_v26  ;;  %v579_v41 = vcombine.high %v575_v36, %v575_v36  ;;  %3782 = vmatmul.mubr.msk.f32.vlgmr.msra.gmra.mxu1 %vm277_vm2, %v905_v39 }
 0x41d   :  { %649 = vst.msk [vmem:[#allocation2 + $0xc] sm:$0x1] %vm645_vm4, %v578_v38  ;;  %651 = vst.msk [vmem:[#allocation2 + $0x14] sm:$0x1] %vm645_vm4, %v575_v36  ;;  %3803 = vmatpush3.msra.mxu1 %v3801_v35  ;;  %3806 = vmatprep.mubr.msk.f32.mxu1 %vm193_vm1, %v4359_v28  ;;  %v4516_v28 = vld [vmem:[%s4915_s9] ss:$0 sm:$0xff] }
 0x41e   :  { %652 = vst.msk [vmem:[#allocation2 + $0x18] sm:$0x1] %vm645_vm4, %v577_v37  ;;  %653 = vst.msk [vmem:[#allocation2 + $0x1c] sm:$0x1] %vm645_vm4, %v579_v41  ;;  %3804 = vmatprep.subr.mxu1 %v1277_v40 }
 0x41f   :  { %3805 = vmatpush3.msra.mxu1 %v1277_v40 }
 0x420   :  { %3807 = vmatmul.mubr.msk.f32.vlgmr.msra.gmra.mxu1 %vm193_vm1, %v4366_v29  ;;  %3809 = vmatprep.subr.mxu1 %v4379_v30 }
 0x421   :  { %3810 = vmatpush3.msra.mxu1 %v4379_v30  ;;  %v1657_v29 = vpop.f32.mrf.mxu0 }
 0x422   :  { %3811 = vmatprep.subr.mxu1 %v4386_v31  ;;  %v4519_v30 = vadd.f32 %v4516_v28, %v1657_v29 }
 0x423   :  { %3812 = vmatpush3.msra.mxu1 %v4386_v31  ;;  %v3830_v31 = vpop.f32.mrf.mxu0 }
 0x424   :  { %3813 = vmatprep.subr.mxu1 %v4393_v32  ;;  %1669 = vrot.lane.b32.xlu0 %v4519_v30, %s4226_s2 }
 0x425   :  { %3814 = vmatpush3.msra.mxu1 %v4393_v32 }
 0x426   :  { %3815 = vmatprep.subr.mxu1 %v4399_v33 }
 0x427   :  { %3816 = vmatpush3.msra.mxu1 %v4399_v33 }
 0x428   :  { %3831 = vmatprep.subr.mxu1 %v4223_v50 }
 0x4dc   :  { %v3783_v32 = vpop.f32.mrf.mxu1 }
 0x4dd   :  { %v984_v42 = vadd.f32 %v3783_v32, %v4462_v59 }
 0x4de   :  { %v978_v33 = vpop.f32.mrf.mxu1 }
 0x4df   :  { %v1038_v43 = vcombine.high %v984_v42, %v984_v42  ;;  %v1045_v44 = vrot.slane %v984_v42, %v4464_v60  ;;  %v979_v45 = vadd.f32 %v4462_v59, %v978_v33 }
 0x4e0   :  { %v3808_v46 = vpop.f32.mrf.mxu1 }
 0x4e1   :  { %v1052_v47 = vrot.slane %v1038_v43, %v4464_v60  ;;  %v1053_v48 = vcombine.high %v1045_v44, %v1045_v44  ;;  %v1061_v54 = vrot.slane %v1045_v44, %v4464_v60  ;;  %v989_v55 = vcombine.high %v979_v45, %v979_v45 }
 0x4e2   :  { %v996_v56 = vrot.slane %v979_v45, %v4464_v60  ;;  %v1352_v57 = vpop.f32.mrf.mxu1  ;;  %v1358_v3 = vadd.f32 %v3808_v46, %v4407_v34 }
 0x4e3   :  { %v1054_v58 = vcombine.high %v1052_v47, %v1052_v47  ;;  %v1068_v61 = vrot.slane %v1052_v47, %v4464_v60  ;;  %v1075_v62 = vrot.slane %v1053_v48, %v4464_v60  ;;  %v1083_v63 = vcombine.high %v1061_v54, %v1061_v54  ;;  %1111 = vst.msk [vmem:[#allocation2 + $0x21] sm:$0x1] %vm645_vm4, %v1061_v54 }
 0x4e4   :  { %v1003_v0 = vrot.slane %v989_v55, %v4464_v60  ;;  %v1004_v1 = vcombine.high %v996_v56, %v996_v56  ;;  %v1012_v2 = vrot.slane %v996_v56, %v4464_v60  ;;  %v1353_v7 = vadd.f32 %v4407_v34, %v1352_v57 }
 0x4e5   :  { %v1082_v4 = vrot.slane %v1054_v58, %v4464_v60  ;;  %v1084_v5 = vcombine.high %v1068_v61, %v1068_v61  ;;  %v1085_v6 = vcombine.high %v1075_v62, %v1075_v62  ;;  %1112 = vst.msk [vmem:[#allocation2 + $0x25] sm:$0x1] %vm645_vm4, %v1075_v62  ;;  %1113 = vst.msk [vmem:[#allocation2 + $0x29] sm:$0x1] %vm645_vm4, %v1083_v63  ;;  %v1362_v16 = vmax.f32 %v1358_v3, 0.0 }
 0x4e6   :  { %1115 = vst.msk [vmem:[#allocation2 + $0x31] sm:$0x1] %vm645_vm4, %v1068_v61  ;;  %v1005_v8 = vcombine.high %v1003_v0, %v1003_v0  ;;  %v1019_v9 = vrot.slane %v1003_v0, %v4464_v60  ;;  %v1026_v10 = vrot.slane %v1004_v1, %v4464_v60  ;;  %v1034_v11 = vcombine.high %v1012_v2, %v1012_v2  ;;  %v1670_v61 = vpop.permute.xlu0 %1669 }
 0x4e7   :  { %1103 = vst.msk [vmem:[#allocation2 + $0x1] sm:$0x1] %vm645_vm4, %v1012_v2  ;;  %v1086_v12 = vcombine.high %v1082_v4, %v1082_v4  ;;  %1114 = vst.msk [vmem:[#allocation2 + $0x2d] sm:$0x1] %vm645_vm4, %v1085_v6  ;;  %v1361_v13 = vmax.f32 %v1353_v7, 0.0 }
 0x4e8   :  { %1116 = vst.msk [vmem:[#allocation2 + $0x35] sm:$0x1] %vm645_vm4, %v1082_v4  ;;  %1117 = vst.msk [vmem:[#allocation2 + $0x39] sm:$0x1] %vm645_vm4, %v1084_v5  ;;  %v1033_v14 = vrot.slane %v1005_v8, %v4464_v60  ;;  %v1035_v15 = vcombine.high %v1019_v9, %v1019_v9  ;;  %v1036_v34 = vcombine.high %v1026_v10, %v1026_v10 }
 0x4e9   :  { %1104 = vst.msk [vmem:[#allocation2 + $0x5] sm:$0x1] %vm645_vm4, %v1026_v10  ;;  %1105 = vst.msk [vmem:[#allocation2 + $0x9] sm:$0x1] %vm645_vm4, %v1034_v11  ;;  %3817 = vmatprep.mubr.msk.f32.mxu1 %vm277_vm2, %v1361_v13 }
 0x4ea   :  { %1107 = vst.msk [vmem:[#allocation2 + $0x11] sm:$0x1] %vm645_vm4, %v1019_v9  ;;  %1118 = vst.msk [vmem:[#allocation2 + $0x3d] sm:$0x1] %vm645_vm4, %v1086_v12  ;;  %v1037_v17 = vcombine.high %v1033_v14, %v1033_v14  ;;  %3818 = vmatmul.mubr.msk.f32.vlgmr.msra.gmra.mxu1 %vm277_vm2, %v1362_v16 }
 0x4eb   :  { %1106 = vst.msk [vmem:[#allocation2 + $0xd] sm:$0x1] %vm645_vm4, %v1036_v34  ;;  %1108 = vst.msk [vmem:[#allocation2 + $0x15] sm:$0x1] %vm645_vm4, %v1033_v14  ;;  %3832 = vmatpush3.msra.mxu1 %v4429_v49  ;;  %3839 = vmatprep.mubr.msk.f32.mxu1 %vm4224_vm3, %v4223_v50 }
 0x4ec   :  { %1109 = vst.msk [vmem:[#allocation2 + $0x19] sm:$0x1] %vm645_vm4, %v1035_v15  ;;  %1110 = vst.msk [vmem:[#allocation2 + $0x1d] sm:$0x1] %vm645_vm4, %v1037_v17  ;;  %3833 = vmatprep.subr.mxu1 %v4223_v50 }
 0x4ed   :  { %3834 = vmatpush3.msra.mxu1 %v4432_v51 }
 0x4ee   :  { %3835 = vmatprep.subr.mxu1 %v4223_v50 }
 0x4ef   :  { %3836 = vmatpush3.msra.mxu1 %v4438_v52 }
 0x4f0   :  { %3837 = vmatprep.subr.mxu1 %v4223_v50 }
 0x4f1   :  { %3838 = vmatpush3.msra.mxu1 %v4442_v53 }
 0x4f2   :  { %3853 = vmatprep.subr.mxu1 %v4223_v50 }
 0x5aa   :  { %v3819_v18 = vpop.f32.mrf.mxu1 }
 0x5ab   :  { %v1441_v19 = vadd.f32 %v3819_v18, %v4462_v59 }
 0x5ac   :  { %v1435_v20 = vpop.f32.mrf.mxu1 }
 0x5ad   :  { %v1495_v21 = vcombine.high %v1441_v19, %v1441_v19  ;;  %v1502_v22 = vrot.slane %v1441_v19, %v4464_v60  ;;  %v1436_v23 = vadd.f32 %v4462_v59, %v1435_v20 }
 0x5af   :  { %v1509_v24 = vrot.slane %v1495_v21, %v4464_v60  ;;  %v1510_v25 = vcombine.high %v1502_v22, %v1502_v22  ;;  %v1518_v26 = vrot.slane %v1502_v22, %v4464_v60  ;;  %v1446_v27 = vcombine.high %v1436_v23, %v1436_v23 }
 0x5b0   :  { %v1453_v35 = vrot.slane %v1436_v23, %v4464_v60 }
 0x5b1   :  { %v1511_v36 = vcombine.high %v1509_v24, %v1509_v24  ;;  %v1525_v37 = vrot.slane %v1509_v24, %v4464_v60  ;;  %v1532_v38 = vrot.slane %v1510_v25, %v4464_v60  ;;  %v1540_v39 = vcombine.high %v1518_v26, %v1518_v26  ;;  %1568 = vst.msk [vmem:[#allocation2 + $0x22] sm:$0x1] %vm645_vm4, %v1518_v26 }
 0x5b2   :  { %v1460_v40 = vrot.slane %v1446_v27, %v4464_v60  ;;  %v1461_v41 = vcombine.high %v1453_v35, %v1453_v35  ;;  %v1469_v59 = vrot.slane %v1453_v35, %v4464_v60 }
 0x5b3   :  { %v1539_v29 = vrot.slane %v1511_v36, %v4464_v60  ;;  %v1541_v31 = vcombine.high %v1525_v37, %v1525_v37  ;;  %v1542_v32 = vcombine.high %v1532_v38, %v1532_v38  ;;  %1569 = vst.msk [vmem:[#allocation2 + $0x26] sm:$0x1] %vm645_vm4, %v1532_v38  ;;  %1570 = vst.msk [vmem:[#allocation2 + $0x2a] sm:$0x1] %vm645_vm4, %v1540_v39 }
 0x5b4   :  { %1572 = vst.msk [vmem:[#allocation2 + $0x32] sm:$0x1] %vm645_vm4, %v1525_v37  ;;  %v1462_v42 = vcombine.high %v1460_v40, %v1460_v40  ;;  %v1476_v33 = vrot.slane %v1460_v40, %v4464_v60  ;;  %v1483_v43 = vrot.slane %v1461_v41, %v4464_v60  ;;  %v1491_v44 = vcombine.high %v1469_v59, %v1469_v59 }
 0x5b5   :  { %1560 = vst.msk [vmem:[#allocation2 + $0x2] sm:$0x1] %vm645_vm4, %v1469_v59  ;;  %v1543_v45 = vcombine.high %v1539_v29, %v1539_v29  ;;  %1571 = vst.msk [vmem:[#allocation2 + $0x2e] sm:$0x1] %vm645_vm4, %v1542_v32 }
 0x5b6   :  { %1573 = vst.msk [vmem:[#allocation2 + $0x36] sm:$0x1] %vm645_vm4, %v1539_v29  ;;  %1574 = vst.msk [vmem:[#allocation2 + $0x3a] sm:$0x1] %vm645_vm4, %v1541_v31  ;;  %v1490_v46 = vrot.slane %v1462_v42, %v4464_v60  ;;  %v1492_v47 = vcombine.high %v1476_v33, %v1476_v33  ;;  %v1493_v48 = vcombine.high %v1483_v43, %v1483_v43 }
 0x5b7   :  { %1561 = vst.msk [vmem:[#allocation2 + $0x6] sm:$0x1] %vm645_vm4, %v1483_v43  ;;  %1562 = vst.msk [vmem:[#allocation2 + $0xa] sm:$0x1] %vm645_vm4, %v1491_v44 }
 0x5b8   :  { %1564 = vst.msk [vmem:[#allocation2 + $0x12] sm:$0x1] %vm645_vm4, %v1476_v33  ;;  %1575 = vst.msk [vmem:[#allocation2 + $0x3e] sm:$0x1] %vm645_vm4, %v1543_v45  ;;  %v1494_v54 = vcombine.high %v1490_v46, %v1490_v46 }
 0x5b9   :  { %1563 = vst.msk [vmem:[#allocation2 + $0xe] sm:$0x1] %vm645_vm4, %v1493_v48  ;;  %1565 = vst.msk [vmem:[#allocation2 + $0x16] sm:$0x1] %vm645_vm4, %v1490_v46 }
 0x5ba   :  { %1566 = vst.msk [vmem:[#allocation2 + $0x1a] sm:$0x1] %vm645_vm4, %v1492_v47  ;;  %1567 = vst.msk [vmem:[#allocation2 + $0x1e] sm:$0x1] %vm645_vm4, %v1494_v54 }
 0x5bc   :  { %v1581_v60 = vld [vmem:[#allocation2] sm:$0x7] }
 0x5bd   :  { %v1661_v55 = vadd.f32 %v4519_v30, %v1581_v60 }
 0x5be   :  { %v1694_v11 = vld [vmem:[#allocation2 + $0x4] sm:$0x7]  ;;  %v1800_v37 = vld [vmem:[#allocation2 + $0x8] sm:$0x7] }
 0x5bf   :  { %v3533_v56 = vmul.f32 -1.442695, %v1661_v55 }
 0x5c1   :  { %4008 = vpow2.f32 %v3533_v56  ;;  %v1906_v56 = vld [vmem:[#allocation2 + $0xc] sm:$0x7] }
 0x5ce   :  { %v4009_v57 = vpop.eup %4008 }
 0x5cf   :  { %v1665_v58 = vadd.f32 1.0, %v4009_v57 }
 0x5d1   :  { %4010 = vrcp.f32 %v1665_v58 }
 0x5de   :  { %v4011_v62 = vpop.eup %4010 }
 0x5df   :  { %v1672_v63 = vmul.f32 %v4011_v62, %v1670_v61  ;;  %v1679_v3 = vsub.f32 1.0, %v4011_v62  ;;  %v1685_v30 = vmul.f32 0.0, %v4011_v62 }
 0x5e1   :  { %1674 = vrot.lane.b32.xlu0 %v1672_v63, %s4226_s2 }
 0x653   :  { %v1675_v0 = vpop.permute.xlu0 %1674 }
 0x654   :  { %v1677_v1 = vadd.f32 %v1675_v0, %v1581_v60 }
 0x656   :  { %4012 = vtanh.f32 %v1677_v1 }
 0x663   :  { %v4013_v2 = vpop.eup %4012 }
 0x664   :  { %1681 = vrot.lane.b32.xlu1 %v4013_v2, %s4227_s28 }
 0x6d6   :  { %v1682_v4 = vpop.permute.xlu1 %1681 }
 0x6d7   :  { %v1684_v5 = vmul.f32 %v1682_v4, %v1679_v3 }
 0x6d9   :  { %v1686_v6 = vadd.f32 %v1685_v30, %v1684_v5 }
 0x6db   :  { %1688 = vrot.lane.b32.xlu1 %v1686_v6, %s4227_s28 }
 0x74d   :  { %v1689_v7 = vpop.permute.xlu1 %1688 }
 0x74e   :  { %1692 = vst.msk [vmem:[#allocation3] sm:$0x7] %vm1691_vm5, %v1689_v7  ;;  %3840 = vmatmul.mubr.msk.f32.vlgmr.msra.gmra.mxu1 %vm277_vm2, %v1689_v7 }
 0x74f   :  { %3854 = vmatpush3.msra.mxu1 %v4429_v49  ;;  %3861 = vmatprep.mubr.msk.f32.mxu1 %vm4224_vm3, %v4223_v50 }
 0x750   :  { %3855 = vmatprep.subr.mxu1 %v4223_v50 }
 0x751   :  { %3856 = vmatpush3.msra.mxu1 %v4432_v51 }
 0x752   :  { %3857 = vmatprep.subr.mxu1 %v4223_v50 }
 0x753   :  { %3858 = vmatpush3.msra.mxu1 %v4438_v52 }
 0x754   :  { %3859 = vmatprep.subr.mxu1 %v4223_v50 }
 0x755   :  { %3860 = vmatpush3.msra.mxu1 %v4442_v53 }
 0x756   :  { %3875 = vmatprep.subr.mxu1 %v4223_v50 }
 0x80e   :  { %v1763_v8 = vpop.f32.mrf.mxu1 }
 0x80f   :  { %v1764_v9 = vadd.f32 %v4516_v28, %v1763_v8 }
 0x810   :  { %v3841_v10 = vpop.f32.mrf.mxu1 }
 0x811   :  { %1775 = vrot.lane.b32.xlu0 %v1764_v9, %s4226_s2  ;;  %v1767_v12 = vadd.f32 %v1764_v9, %v1694_v11 }
 0x813   :  { %v3535_v13 = vmul.f32 -1.442695, %v1767_v12 }
 0x815   :  { %4014 = vpow2.f32 %v3535_v13  ;;  %v2012_v13 = vld [vmem:[#allocation2 + $0x10] sm:$0x7] }
 0x822   :  { %v4015_v14 = vpop.eup %4014 }
 0x823   :  { %v1771_v15 = vadd.f32 1.0, %v4015_v14 }
 0x825   :  { %4016 = vrcp.f32 %v1771_v15 }
 0x832   :  { %v4017_v34 = vpop.eup %4016 }
 0x833   :  { %v1785_v21 = vsub.f32 1.0, %v4017_v34  ;;  %v1791_v23 = vmul.f32 %v4017_v34, %v1686_v6 }
 0x883   :  { %v1776_v16 = vpop.permute.xlu0 %1775 }
 0x884   :  { %v1778_v17 = vmul.f32 %v4017_v34, %v1776_v16 }
 0x886   :  { %1780 = vrot.lane.b32.xlu1 %v1778_v17, %s4226_s2 }
 0x8f8   :  { %v1781_v18 = vpop.permute.xlu1 %1780 }
 0x8f9   :  { %v1783_v19 = vadd.f32 %v1781_v18, %v1694_v11 }
 0x8fb   :  { %4018 = vtanh.f32 %v1783_v19 }
 0x908   :  { %v4019_v20 = vpop.eup %4018 }
 0x909   :  { %1787 = vrot.lane.b32.xlu0 %v4019_v20, %s4227_s28 }
 0x97b   :  { %v1788_v22 = vpop.permute.xlu0 %1787 }
 0x97c   :  { %v1790_v24 = vmul.f32 %v1788_v22, %v1785_v21 }
 0x97e   :  { %v1792_v25 = vadd.f32 %v1791_v23, %v1790_v24 }
 0x980   :  { %1794 = vrot.lane.b32.xlu1 %v1792_v25, %s4227_s28 }
 0x9f2   :  { %v1795_v26 = vpop.permute.xlu1 %1794 }
 0x9f3   :  { %1798 = vst.msk [vmem:[#allocation3 + $0x4] sm:$0x7] %vm1691_vm5, %v1795_v26  ;;  %3851 = vmatmul.mubr.msk.f32.vlgmr.msra.gmra.mxu0 %vm277_vm2, %v1795_v26 }
 0x9f4   :  { %3865 = vmatpush3.msra.mxu0 %v4429_v49  ;;  %3872 = vmatprep.mubr.msk.f32.mxu0 %vm4224_vm3, %v4223_v50 }
 0x9f5   :  { %3866 = vmatprep.subr.mxu0 %v4223_v50 }
 0x9f6   :  { %3867 = vmatpush3.msra.mxu0 %v4432_v51 }
 0x9f7   :  { %3868 = vmatprep.subr.mxu0 %v4223_v50 }
 0x9f8   :  { %3869 = vmatpush3.msra.mxu0 %v4438_v52 }
 0x9f9   :  { %3870 = vmatprep.subr.mxu0 %v4223_v50 }
 0x9fa   :  { %3871 = vmatpush3.msra.mxu0 %v4442_v53 }
 0x9fb   :  { %3886 = vmatprep.subr.mxu0 %v4223_v50 }
 0xab3   :  { %v1869_v27 = vpop.f32.mrf.mxu0 }
 0xab4   :  { %v1870_v35 = vadd.f32 %v4516_v28, %v1869_v27 }
 0xab5   :  { %v3852_v36 = vpop.f32.mrf.mxu0 }
 0xab6   :  { %1881 = vrot.lane.b32.xlu0 %v1870_v35, %s4226_s2  ;;  %v1873_v38 = vadd.f32 %v1870_v35, %v1800_v37 }
 0xab8   :  { %v3537_v39 = vmul.f32 -1.442695, %v1873_v38 }
 0xaba   :  { %4020 = vpow2.f32 %v3537_v39  ;;  %v2118_v39 = vld [vmem:[#allocation2 + $0x14] sm:$0x7] }
 0xac7   :  { %v4021_v40 = vpop.eup %4020 }
 0xac8   :  { %v1877_v41 = vadd.f32 1.0, %v4021_v40 }
 0xaca   :  { %4022 = vrcp.f32 %v1877_v41 }
 0xad7   :  { %v4023_v59 = vpop.eup %4022 }
 0xad8   :  { %v1891_v43 = vsub.f32 1.0, %v4023_v59  ;;  %v1897_v45 = vmul.f32 %v4023_v59, %v1792_v25 }
 0xb28   :  { %v1882_v29 = vpop.permute.xlu0 %1881 }
 0xb29   :  { %v1884_v31 = vmul.f32 %v4023_v59, %v1882_v29 }
 0xb2b   :  { %1886 = vrot.lane.b32.xlu1 %v1884_v31, %s4226_s2 }
 0xb9d   :  { %v1887_v32 = vpop.permute.xlu1 %1886 }
 0xb9e   :  { %v1889_v42 = vadd.f32 %v1887_v32, %v1800_v37 }
 0xba0   :  { %4024 = vtanh.f32 %v1889_v42 }
 0xbad   :  { %v4025_v33 = vpop.eup %4024 }
 0xbae   :  { %1893 = vrot.lane.b32.xlu0 %v4025_v33, %s4227_s28 }
 0xc20   :  { %v1894_v44 = vpop.permute.xlu0 %1893 }
 0xc21   :  { %v1896_v46 = vmul.f32 %v1894_v44, %v1891_v43 }
 0xc23   :  { %v1898_v47 = vadd.f32 %v1897_v45, %v1896_v46 }
 0xc25   :  { %1900 = vrot.lane.b32.xlu1 %v1898_v47, %s4227_s28 }
 0xc97   :  { %v1901_v48 = vpop.permute.xlu1 %1900 }
 0xc98   :  { %1904 = vst.msk [vmem:[#allocation3 + $0x8] sm:$0x7] %vm1691_vm5, %v1901_v48  ;;  %3862 = vmatmul.mubr.msk.f32.vlgmr.msra.gmra.mxu1 %vm277_vm2, %v1901_v48 }
 0xc99   :  { %3876 = vmatpush3.msra.mxu1 %v4429_v49  ;;  %3883 = vmatprep.mubr.msk.f32.mxu1 %vm4224_vm3, %v4223_v50 }
 0xc9a   :  { %3877 = vmatprep.subr.mxu1 %v4223_v50 }
 0xc9b   :  { %3878 = vmatpush3.msra.mxu1 %v4432_v51 }
 0xc9c   :  { %3879 = vmatprep.subr.mxu1 %v4223_v50 }
 0xc9d   :  { %3880 = vmatpush3.msra.mxu1 %v4438_v52 }
 0xc9e   :  { %3881 = vmatprep.subr.mxu1 %v4223_v50 }
 0xc9f   :  { %3882 = vmatpush3.msra.mxu1 %v4442_v53 }
 0xca0   :  { %3897 = vmatprep.subr.mxu1 %v4223_v50 }
 0xd58   :  { %v1975_v54 = vpop.f32.mrf.mxu1 }
 0xd59   :  { %v1976_v60 = vadd.f32 %v4516_v28, %v1975_v54 }
 0xd5a   :  { %v3863_v55 = vpop.f32.mrf.mxu1 }
 0xd5b   :  { %1987 = vrot.lane.b32.xlu0 %v1976_v60, %s4226_s2  ;;  %v1979_v57 = vadd.f32 %v1976_v60, %v1906_v56 }
 0xd5d   :  { %v3539_v58 = vmul.f32 -1.442695, %v1979_v57 }
 0xd5f   :  { %4026 = vpow2.f32 %v3539_v58  ;;  %v2224_v58 = vld [vmem:[#allocation2 + $0x18] sm:$0x7] }
 0xd6c   :  { %v4027_v61 = vpop.eup %4026 }
 0xd6d   :  { %v1983_v62 = vadd.f32 1.0, %v4027_v61 }
 0xd6f   :  { %4028 = vrcp.f32 %v1983_v62 }
 0xd7c   :  { %v4029_v63 = vpop.eup %4028 }
 0xd7d   :  { %v1997_v30 = vsub.f32 1.0, %v4029_v63  ;;  %v2003_v6 = vmul.f32 %v4029_v63, %v1898_v47 }
 0xdcd   :  { %v1988_v0 = vpop.permute.xlu0 %1987 }
 0xdce   :  { %v1990_v1 = vmul.f32 %v4029_v63, %v1988_v0 }
 0xdd0   :  { %1992 = vrot.lane.b32.xlu1 %v1990_v1, %s4226_s2 }
 0xe42   :  { %v1993_v2 = vpop.permute.xlu1 %1992 }
 0xe43   :  { %v1995_v3 = vadd.f32 %v1993_v2, %v1906_v56 }
 0xe45   :  { %4030 = vtanh.f32 %v1995_v3 }
 0xe52   :  { %v4031_v4 = vpop.eup %4030 }
 0xe53   :  { %1999 = vrot.lane.b32.xlu0 %v4031_v4, %s4227_s28 }
 0xec5   :  { %v2000_v5 = vpop.permute.xlu0 %1999 }
 0xec6   :  { %v2002_v7 = vmul.f32 %v2000_v5, %v1997_v30 }
 0xec8   :  { %v2004_v8 = vadd.f32 %v2003_v6, %v2002_v7 }
 0xeca   :  { %2006 = vrot.lane.b32.xlu1 %v2004_v8, %s4227_s28 }
 0xf3c   :  { %v2007_v9 = vpop.permute.xlu1 %2006 }
 0xf3d   :  { %2010 = vst.msk [vmem:[#allocation3 + $0xc] sm:$0x7] %vm1691_vm5, %v2007_v9  ;;  %3873 = vmatmul.mubr.msk.f32.vlgmr.msra.gmra.mxu0 %vm277_vm2, %v2007_v9 }
 0xf3e   :  { %3887 = vmatpush3.msra.mxu0 %v4429_v49  ;;  %3894 = vmatprep.mubr.msk.f32.mxu0 %vm4224_vm3, %v4223_v50 }
 0xf3f   :  { %3888 = vmatprep.subr.mxu0 %v4223_v50 }
 0xf40   :  { %3889 = vmatpush3.msra.mxu0 %v4432_v51 }
 0xf41   :  { %3890 = vmatprep.subr.mxu0 %v4223_v50 }
 0xf42   :  { %3891 = vmatpush3.msra.mxu0 %v4438_v52 }
 0xf43   :  { %3892 = vmatprep.subr.mxu0 %v4223_v50 }
 0xf44   :  { %3893 = vmatpush3.msra.mxu0 %v4442_v53 }
 0xf45   :  { %3908 = vmatprep.subr.mxu0 %v4223_v50 }
 0xffd   :  { %v2081_v10 = vpop.f32.mrf.mxu0 }
 0xffe   :  { %v2082_v11 = vadd.f32 %v4516_v28, %v2081_v10 }
 0xfff   :  { %v3874_v12 = vpop.f32.mrf.mxu0 }
0x1000   :  { %2093 = vrot.lane.b32.xlu0 %v2082_v11, %s4226_s2  ;;  %v2085_v14 = vadd.f32 %v2082_v11, %v2012_v13 }
0x1002   :  { %v3541_v15 = vmul.f32 -1.442695, %v2085_v14  ;;  %v2330_v14 = vld [vmem:[#allocation2 + $0x1c] sm:$0x7] }
0x1004   :  { %4032 = vpow2.f32 %v3541_v15 }
0x1011   :  { %v4033_v34 = vpop.eup %4032 }
0x1012   :  { %v2089_v16 = vadd.f32 1.0, %v4033_v34 }
0x1014   :  { %4034 = vrcp.f32 %v2089_v16 }
0x1021   :  { %v4035_v17 = vpop.eup %4034 }
0x1022   :  { %v2103_v23 = vsub.f32 1.0, %v4035_v17  ;;  %v2109_v25 = vmul.f32 %v4035_v17, %v2004_v8 }
0x1072   :  { %v2094_v18 = vpop.permute.xlu0 %2093 }
0x1073   :  { %v2096_v19 = vmul.f32 %v4035_v17, %v2094_v18 }
0x1075   :  { %2098 = vrot.lane.b32.xlu1 %v2096_v19, %s4226_s2 }
0x10e7   :  { %v2099_v20 = vpop.permute.xlu1 %2098 }
0x10e8   :  { %v2101_v21 = vadd.f32 %v2099_v20, %v2012_v13 }
0x10ea   :  { %4036 = vtanh.f32 %v2101_v21 }
0x10f7   :  { %v4037_v22 = vpop.eup %4036 }
0x10f8   :  { %2105 = vrot.lane.b32.xlu0 %v4037_v22, %s4227_s28 }
0x116a   :  { %v2106_v24 = vpop.permute.xlu0 %2105 }
0x116b   :  { %v2108_v26 = vmul.f32 %v2106_v24, %v2103_v23 }
0x116d   :  { %v2110_v27 = vadd.f32 %v2109_v25, %v2108_v26  ;;  %v3284_v26 = vld [vmem:[#allocation3 + $0x4] sm:$0x1] }
0x116f   :  { %2112 = vrot.lane.b32.xlu1 %v2110_v27, %s4227_s28 }
0x11e1   :  { %v2113_v35 = vpop.permute.xlu1 %2112 }
0x11e2   :  { %2116 = vst.msk [vmem:[#allocation3 + $0x10] sm:$0x7] %vm1691_vm5, %v2113_v35  ;;  %3884 = vmatmul.mubr.msk.f32.vlgmr.msra.gmra.mxu1 %vm277_vm2, %v2113_v35  ;;  %v3420_v35 = vld [vmem:[#allocation3 + $0x6] sm:$0x1] }
0x11e3   :  { %3898 = vmatpush3.msra.mxu1 %v4429_v49  ;;  %3905 = vmatprep.mubr.msk.f32.mxu1 %vm4224_vm3, %v4223_v50 }
0x11e4   :  { %3899 = vmatprep.subr.mxu1 %v4223_v50 }
0x11e5   :  { %3900 = vmatpush3.msra.mxu1 %v4432_v51 }
0x11e6   :  { %3901 = vmatprep.subr.mxu1 %v4223_v50 }
0x11e7   :  { %3902 = vmatpush3.msra.mxu1 %v4438_v52 }
0x11e8   :  { %3903 = vmatprep.subr.mxu1 %v4223_v50 }
0x11e9   :  { %3904 = vmatpush3.msra.mxu1 %v4442_v53 }
0x11ea   :  { %3919 = vmatprep.subr.mxu1 %v4223_v50 }
0x12a2   :  { %v2187_v36 = vpop.f32.mrf.mxu1 }
0x12a3   :  { %v2188_v37 = vadd.f32 %v4516_v28, %v2187_v36  ;;  %v3285_v36 = vld [vmem:[#allocation3 + $0x8] sm:$0x1] }
0x12a4   :  { %v3885_v38 = vpop.f32.mrf.mxu1 }
0x12a5   :  { %2199 = vrot.lane.b32.xlu0 %v2188_v37, %s4226_s2  ;;  %v2191_v40 = vadd.f32 %v2188_v37, %v2118_v39  ;;  %v3356_v37 = vld [vmem:[#allocation3 + $0x9] sm:$0x1]  ;;  %v3421_v38 = vld [vmem:[#allocation3 + $0xa] sm:$0x1] }
0x12a7   :  { %v3543_v41 = vmul.f32 -1.442695, %v2191_v40 }
0x12a9   :  { %4038 = vpow2.f32 %v3543_v41  ;;  %v3451_v41 = vrot.slane %v3420_v35, 7 }
0x12b6   :  { %v4039_v59 = vpop.eup %4038 }
0x12b7   :  { %v2195_v29 = vadd.f32 1.0, %v4039_v59  ;;  %v3286_v59 = vld [vmem:[#allocation3 + $0xc] sm:$0x1] }
0x12b9   :  { %4040 = vrcp.f32 %v2195_v29  ;;  %v3357_v29 = vld [vmem:[#allocation3 + $0xd] sm:$0x1] }
0x12c6   :  { %v4041_v31 = vpop.eup %4040 }
0x12c7   :  { %v2209_v45 = vsub.f32 1.0, %v4041_v31  ;;  %v2215_v47 = vmul.f32 %v4041_v31, %v2110_v27  ;;  %v3355_v27 = vld [vmem:[#allocation3 + $0x5] sm:$0x1] }
0x12c8   :  { %v3386_v40 = vrot.slane %v3355_v27, 7 }
0x1317   :  { %v2200_v32 = vpop.permute.xlu0 %2199 }
0x1318   :  { %v2202_v42 = vmul.f32 %v4041_v31, %v2200_v32  ;;  %v3283_v31 = vld [vmem:[#allocation3] sm:$0x1]  ;;  %v3318_v32 = vrot.slane %v3285_v36, 6 }
0x131a   :  { %2204 = vrot.lane.b32.xlu1 %v2202_v42, %s4226_s2  ;;  %v3354_v42 = vld [vmem:[#allocation3 + $0x1] sm:$0x1] }
0x138c   :  { %v2205_v33 = vpop.permute.xlu1 %2204 }
0x138d   :  { %v2207_v43 = vadd.f32 %v2205_v33, %v2118_v39  ;;  %v3315_v39 = vrot.slane %v3284_v26, 7  ;;  %v3388_v33 = vrot.slane %v3356_v37, 6 }
0x138f   :  { %4042 = vtanh.f32 %v2207_v43  ;;  %v3453_v43 = vrot.slane %v3421_v38, 6 }
0x139c   :  { %v4043_v44 = vpop.eup %4042 }
0x139d   :  { %2211 = vrot.lane.b32.xlu0 %v4043_v44, %s4227_s28  ;;  %v3287_v44 = vld [vmem:[#allocation3 + $0x10] sm:$0x1] }
0x140f   :  { %v2212_v46 = vpop.permute.xlu0 %2211 }
0x1410   :  { %v2214_v48 = vmul.f32 %v2212_v46, %v2209_v45  ;;  %v3358_v45 = vld [vmem:[#allocation3 + $0x11] sm:$0x1]  ;;  %v3422_v46 = vld [vmem:[#allocation3 + $0xe] sm:$0x1] }
0x1412   :  { %v2216_v54 = vadd.f32 %v2215_v47, %v2214_v48  ;;  %v3321_v48 = vrot.slane %v3286_v59, 5 }
0x1414   :  { %2218 = vrot.lane.b32.xlu1 %v2216_v54, %s4227_s28 }
0x1486   :  { %v2219_v60 = vpop.permute.xlu1 %2218 }
0x1487   :  { %2222 = vst.msk [vmem:[#allocation3 + $0x14] sm:$0x7] %vm1691_vm5, %v2219_v60  ;;  %3895 = vmatmul.mubr.msk.f32.vlgmr.msra.gmra.mxu0 %vm277_vm2, %v2219_v60  ;;  %v3419_v60 = vld [vmem:[#allocation3 + $0x2] sm:$0x1] }
0x1488   :  { %3909 = vmatpush3.msra.mxu0 %v4429_v49  ;;  %3916 = vmatprep.mubr.msk.f32.mxu0 %vm4224_vm3, %v4223_v50 }
0x1489   :  { %3910 = vmatprep.subr.mxu0 %v4223_v50 }
0x148a   :  { %3911 = vmatpush3.msra.mxu0 %v4432_v51 }
0x148b   :  { %3912 = vmatprep.subr.mxu0 %v4223_v50 }
0x148c   :  { %3913 = vmatpush3.msra.mxu0 %v4438_v52 }
0x148d   :  { %3914 = vmatprep.subr.mxu0 %v4223_v50 }
0x148e   :  { %3915 = vmatpush3.msra.mxu0 %v4442_v53 }
0x148f   :  { %3930 = vmatprep.subr.mxu0 %v4223_v50 }
0x1547   :  { %v2293_v55 = vpop.f32.mrf.mxu0 }
0x1548   :  { %v2294_v56 = vadd.f32 %v4516_v28, %v2293_v55  ;;  %v3288_v55 = vld [vmem:[#allocation3 + $0x14] sm:$0x1] }
0x1549   :  { %v3896_v57 = vpop.f32.mrf.mxu0 }
0x154a   :  { %2305 = vrot.lane.b32.xlu0 %v2294_v56, %s4226_s2  ;;  %v2297_v61 = vadd.f32 %v2294_v56, %v2224_v58  ;;  %v3317_v56 = vsel %vm3316_vm6, %v3315_v39, %v3283_v31  ;;  %v3359_v57 = vld [vmem:[#allocation3 + $0x15] sm:$0x1] }
0x154c   :  { %v3545_v62 = vmul.f32 -1.442695, %v2297_v61  ;;  %v3423_v61 = vld [vmem:[#allocation3 + $0x12] sm:$0x1] }
0x154e   :  { %4044 = vpow2.f32 %v3545_v62  ;;  %v3452_v62 = vsel %vm3316_vm6, %v3451_v41, %v3419_v60 }
0x155b   :  { %v4045_v63 = vpop.eup %4044 }
0x155c   :  { %v2301_v0 = vadd.f32 1.0, %v4045_v63  ;;  %v4728_v63 = vld [vmem:[#allocation10 + $0x18] sm:$0xff] }
0x155e   :  { %4046 = vrcp.f32 %v2301_v0  ;;  %v3324_v0 = vrot.slane %v3287_v44, 4 }
0x156b   :  { %v4047_v1 = vpop.eup %4046 }
0x156c   :  { %v2315_v6 = vsub.f32 1.0, %v4047_v1  ;;  %v2321_v8 = vmul.f32 %v4047_v1, %v2216_v54  ;;  %v3390_v54 = vrot.slane %v3357_v29, 5 }
0x15bc   :  { %v2306_v2 = vpop.permute.xlu0 %2305 }
0x15bd   :  { %v2308_v3 = vmul.f32 %v4047_v1, %v2306_v2  ;;  %v3392_v1 = vrot.slane %v3358_v45, 4  ;;  %v3424_v2 = vld [vmem:[#allocation3 + $0x16] sm:$0x1] }
0x15bf   :  { %2310 = vrot.lane.b32.xlu1 %v2308_v3, %s4226_s2  ;;  %v3455_v3 = vrot.slane %v3422_v46, 5 }
0x1631   :  { %v2311_v4 = vpop.permute.xlu1 %2310 }
0x1632   :  { %v2313_v30 = vadd.f32 %v2311_v4, %v2224_v58  ;;  %v3387_v58 = vsel %vm3316_vm6, %v3386_v40, %v3354_v42  ;;  %v2436_v42 = vld [vmem:[#allocation2 + $0x20] sm:$0x7] }
0x1634   :  { %4048 = vtanh.f32 %v2313_v30  ;;  %v3320_v30 = vsel %vm3319_vm7, %v3318_v32, %v3317_v56 }
0x1641   :  { %v4049_v5 = vpop.eup %4048 }
0x1642   :  { %2317 = vrot.lane.b32.xlu0 %v4049_v5, %s4227_s28 }
0x16b4   :  { %v2318_v7 = vpop.permute.xlu0 %2317 }
0x16b5   :  { %v2320_v9 = vmul.f32 %v2318_v7, %v2315_v6  ;;  %v3389_v6 = vsel %vm3319_vm7, %v3388_v33, %v3387_v58 }
0x16b7   :  { %v2322_v10 = vadd.f32 %v2321_v8, %v2320_v9  ;;  %v3454_v8 = vsel %vm3319_vm7, %v3453_v43, %v3452_v62  ;;  %v4737_v9 = vld [vmem:[#allocation10 + $0x10] sm:$0xff] }
0x16b9   :  { %2324 = vrot.lane.b32.xlu1 %v2322_v10, %s4227_s28 }
0x172b   :  { %v2325_v11 = vpop.permute.xlu1 %2324 }
0x172c   :  { %2328 = vst.msk [vmem:[#allocation3 + $0x18] sm:$0x7] %vm1691_vm5, %v2325_v11  ;;  %3906 = vmatmul.mubr.msk.f32.vlgmr.msra.gmra.mxu1 %vm277_vm2, %v2325_v11  ;;  %v3394_v11 = vrot.slane %v3359_v57, 3 }
0x172d   :  { %3920 = vmatpush3.msra.mxu1 %v4429_v49  ;;  %3927 = vmatprep.mubr.msk.f32.mxu1 %vm4224_vm3, %v4223_v50 }
0x172e   :  { %3921 = vmatprep.subr.mxu1 %v4223_v50 }
0x172f   :  { %3922 = vmatpush3.msra.mxu1 %v4432_v51 }
0x1730   :  { %3923 = vmatprep.subr.mxu1 %v4223_v50 }
0x1731   :  { %3924 = vmatpush3.msra.mxu1 %v4438_v52 }
0x1732   :  { %3925 = vmatprep.subr.mxu1 %v4223_v50 }
0x1733   :  { %3926 = vmatpush3.msra.mxu1 %v4442_v53  ;;  %v3289_v4 = vld [vmem:[#allocation3 + $0x18] sm:$0x1]  ;;  %v3360_v5 = vld [vmem:[#allocation3 + $0x19] sm:$0x1]  ;;  %v3425_v7 = vld [vmem:[#allocation3 + $0x1a] sm:$0x1] }
0x1734   :  { %3941 = vmatprep.subr.mxu1 %v4223_v50 }
0x17ec   :  { %v2399_v12 = vpop.f32.mrf.mxu1 }
0x17ed   :  { %v2400_v49 = vadd.f32 %v4516_v28, %v2399_v12  ;;  %v3457_v12 = vrot.slane %v3423_v61, 4 }
0x17ee   :  { %v3907_v13 = vpop.f32.mrf.mxu1 }
0x17ef   :  { %2411 = vrot.lane.b32.xlu0 %v2400_v49, %s4226_s2  ;;  %v2403_v15 = vadd.f32 %v2400_v49, %v2330_v14  ;;  %v3323_v49 = vsel %vm3322_vm8, %v3321_v48, %v3320_v30  ;;  %v3391_v13 = vsel %vm3322_vm8, %v3390_v54, %v3389_v6 }
0x17f1   :  { %v3547_v34 = vmul.f32 -1.442695, %v2403_v15  ;;  %v4743_v15 = vld [vmem:[#allocation10 + $0x8] sm:$0xff] }
0x17f3   :  { %4050 = vpow2.f32 %v3547_v34  ;;  %v3330_v34 = vrot.slane %v3289_v4, 2 }
0x1800   :  { %v4051_v51 = vpop.eup %4050 }
0x1801   :  { %v2407_v16 = vadd.f32 1.0, %v4051_v51  ;;  %v3396_v51 = vrot.slane %v3360_v5, 2 }
0x1803   :  { %4052 = vrcp.f32 %v2407_v16  ;;  %v3456_v16 = vsel %vm3322_vm8, %v3455_v3, %v3454_v8  ;;  %v2542_v3 = vld [vmem:[#allocation2 + $0x24] sm:$0x7] }
0x1810   :  { %v4053_v52 = vpop.eup %4052 }
0x1811   :  { %v2421_v21 = vsub.f32 1.0, %v4053_v52  ;;  %v2427_v23 = vmul.f32 %v4053_v52, %v2322_v10  ;;  %v3327_v10 = vrot.slane %v3288_v55, 3 }
0x1861   :  { %v2412_v17 = vpop.permute.xlu0 %2411 }
0x1862   :  { %v2414_v18 = vmul.f32 %v4053_v52, %v2412_v17  ;;  %v3461_v52 = vrot.slane %v3425_v7, 2  ;;  %v3326_v17 = vsel %vm3325_vm9, %v3324_v0, %v3323_v49  ;;  %v4788_v0 = vld [vmem:[%s4915_s9] ss:$0 sm:$0xff]  ;;  %s4228_s9 = smov [#allocation12]  }
0x1863   :  { %s3489_s0 = sshll.u32 %s4228_s9, 4  ;;  %s3490_s0 = int_to_ptr.vmem [resolvable:$true] %s3489_s0 }
0x1864   :  { %2416 = vrot.lane.b32.xlu1 %v2414_v18, %s4226_s2  ;;  %v3393_v18 = vsel %vm3325_vm9, %v3392_v1, %v3391_v13  ;;  %s4189_s11 = scalar_lea.vmem %s3490_s0, 768  ;;  %p4194_p7 = scmp.lt.s32.totalorder %s3490_s0, %s3490_s0 }
0x1865   :  { %p4190_p6 = scmp.ne.s32.totalorder %s3490_s0, %s4189_s11  ;;  %p4195_p8 = scmp.lt.s32.totalorder %s4189_s11, %s4189_s11 }
0x1867   :  { %p4196_p9 = por %p4195_p8, %p4194_p7 }
0x1869   :  { %p4197_p10 = pnand %p4196_p9, %p4190_p6 }
0x18d6   :  { %v2417_v53 = vpop.permute.xlu1 %2416 }
0x18d7   :  { %v2419_v19 = vadd.f32 %v2417_v53, %v2330_v14  ;;  %v3459_v14 = vrot.slane %v3424_v2, 3  ;;  %v4750_v53 = vld [vmem:[#allocation10] sm:$0xff] }
0x18d9   :  { %4054 = vtanh.f32 %v2419_v19 }
0x18e6   :  { %v4055_v20 = vpop.eup %4054 }
0x18e7   :  { %2423 = vrot.lane.b32.xlu0 %v4055_v20, %s4227_s28  ;;  %v3329_v20 = vsel %vm3328_vm10, %v3327_v10, %v3326_v17 }
0x18e8   :  { %v3332_v37 = vsel %vm3331_vm11, %v3330_v34, %v3329_v20  ;;  %v2648_v20 = vld [vmem:[#allocation2 + $0x28] sm:$0x7] }
0x1959   :  { %v2424_v22 = vpop.permute.xlu0 %2423 }
0x195a   :  { %v2426_v24 = vmul.f32 %v2424_v22, %v2421_v21  ;;  %v3395_v22 = vsel %vm3328_vm10, %v3394_v11, %v3393_v18 }
0x195b   :  { %v3397_v38 = vsel %vm3331_vm11, %v3396_v51, %v3395_v22 }
0x195c   :  { %v4719_v25 = vadd.f32 %v2427_v23, %v2426_v24  ;;  %v3458_v24 = vsel %vm3325_vm9, %v3457_v12, %v3456_v16 }
0x195d   :  { %v3460_v35 = vsel %vm3328_vm10, %v3459_v14, %v3458_v24 }
0x195e   :  { %2430 = vrot.lane.b32.xlu1 %v4719_v25, %s4227_s28  ;;  %v3462_v39 = vsel %vm3331_vm11, %v3461_v52, %v3460_v35 }
0x19d0   :  { %v2431_v47 = vpop.permute.xlu1 %2430 }
0x19d1   :  { %2434 = vst.msk [vmem:[#allocation3 + $0x1c] sm:$0x7] %vm1691_vm5, %v2431_v47  ;;  %3917 = vmatmul.mubr.msk.f32.vlgmr.msra.gmra.mxu0 %vm277_vm2, %v2431_v47 }
0x19d2   :  { %3931 = vmatpush3.msra.mxu0 %v4728_v63  ;;  %3938 = vmatprep.mubr.msk.f32.mxu0 %vm4224_vm3, %v4223_v50 }
0x19d3   :  { %3932 = vmatprep.subr.mxu0 %v4223_v50 }
0x19d4   :  { %3933 = vmatpush3.msra.mxu0 %v4737_v9 }
0x19d5   :  { %3934 = vmatprep.subr.mxu0 %v4223_v50 }
0x19d6   :  { %3935 = vmatpush3.msra.mxu0 %v4743_v15 }
0x19d7   :  { %3936 = vmatprep.subr.mxu0 %v4223_v50 }
0x19d8   :  { %3937 = vmatpush3.msra.mxu0 %v4750_v53  ;;  %v3290_v19 = vld [vmem:[#allocation3 + $0x1c] sm:$0x1]  ;;  %v3361_v21 = vld [vmem:[#allocation3 + $0x1d] sm:$0x1]  ;;  %v3426_v23 = vld [vmem:[#allocation3 + $0x1e] sm:$0x1] }
0x19d9   :  { %3952 = vmatprep.subr.mxu0 %v4223_v50  ;;  %v3333_v26 = vrot.slane %v3290_v19, 1  ;;  %v3398_v27 = vrot.slane %v3361_v21, 1  ;;  %v3463_v36 = vrot.slane %v3426_v23, 1 }
0x19db   :  { %v3335_v40 = vsel %vm3334_vm12, %v3333_v26, %v3332_v37  ;;  %v3399_v41 = vsel %vm3334_vm12, %v3398_v27, %v3397_v38  ;;  %v3464_v59 = vsel %vm3334_vm12, %v3463_v36, %v3462_v39 }
0x19dc   :  { %3352 = vst.msk [vmem:[#allocation12] sm:$0xff] %vm277_vm2, %v3335_v40  ;;  %3417 = vst.msk [vmem:[#allocation12 + $0x10] sm:$0xff] %vm277_vm2, %v3399_v41 }
0x19dd   :  { %3482 = vst.msk [vmem:[#allocation12 + $0x20] sm:$0xff] %vm277_vm2, %v3464_v59 }
0x1a91   :  { %v2505_v29 = vpop.f32.mrf.mxu0 }
0x1a92   :  { %v2506_v31 = vadd.f32 %v4516_v28, %v2505_v29 }
0x1a93   :  { %v3918_v32 = vpop.f32.mrf.mxu0 }
0x1a94   :  { %2517 = vrot.lane.b32.xlu0 %v2506_v31, %s4226_s2  ;;  %v2509_v33 = vadd.f32 %v2506_v31, %v2436_v42 }
0x1a96   :  { %v3549_v43 = vmul.f32 -1.442695, %v2509_v33 }
0x1a98   :  { %4056 = vpow2.f32 %v3549_v43  ;;  %v2754_v43 = vld [vmem:[#allocation2 + $0x2c] sm:$0x7] }
0x1aa5   :  { %v4057_v44 = vpop.eup %4056 }
0x1aa6   :  { %v2513_v45 = vadd.f32 1.0, %v4057_v44 }
0x1aa8   :  { %4058 = vrcp.f32 %v2513_v45 }
0x1ab5   :  { %v4059_v46 = vpop.eup %4058 }
0x1ab6   :  { %v2527_v28 = vsub.f32 1.0, %v4059_v46  ;;  %v2533_v57 = vmul.f32 %v4059_v46, %v4719_v25 }
0x1b06   :  { %v2518_v47 = vpop.permute.xlu0 %2517 }
0x1b07   :  { %v2520_v48 = vmul.f32 %v4059_v46, %v2518_v47 }
0x1b09   :  { %2522 = vrot.lane.b32.xlu1 %v2520_v48, %s4226_s2 }
0x1b7b   :  { %v2523_v54 = vpop.permute.xlu1 %2522 }
0x1b7c   :  { %v2525_v60 = vadd.f32 %v2523_v54, %v2436_v42 }
0x1b7e   :  { %4060 = vtanh.f32 %v2525_v60 }
0x1b8b   :  { %v4061_v55 = vpop.eup %4060 }
0x1b8c   :  { %2529 = vrot.lane.b32.xlu0 %v4061_v55, %s4227_s28 }
0x1bfe   :  { %v2530_v56 = vpop.permute.xlu0 %2529 }
0x1bff   :  { %v2532_v58 = vmul.f32 %v2530_v56, %v2527_v28 }
0x1c01   :  { %v2534_v61 = vadd.f32 %v2533_v57, %v2532_v58 }
0x1c03   :  { %2536 = vrot.lane.b32.xlu1 %v2534_v61, %s4227_s28 }
0x1c75   :  { %v2537_v62 = vpop.permute.xlu1 %2536 }
0x1c76   :  { %2540 = vst.msk [vmem:[#allocation3 + $0x20] sm:$0x7] %vm1691_vm5, %v2537_v62  ;;  %3928 = vmatmul.mubr.msk.f32.vlgmr.msra.gmra.mxu1 %vm277_vm2, %v2537_v62 }
0x1c77   :  { %3942 = vmatpush3.msra.mxu1 %v4728_v63  ;;  %3949 = vmatprep.mubr.msk.f32.mxu1 %vm4224_vm3, %v4223_v50 }
0x1c78   :  { %3943 = vmatprep.subr.mxu1 %v4223_v50 }
0x1c79   :  { %3944 = vmatpush3.msra.mxu1 %v4737_v9 }
0x1c7a   :  { %3945 = vmatprep.subr.mxu1 %v4223_v50 }
0x1c7b   :  { %3946 = vmatpush3.msra.mxu1 %v4743_v15 }
0x1c7c   :  { %3947 = vmatprep.subr.mxu1 %v4223_v50 }
0x1c7d   :  { %3948 = vmatpush3.msra.mxu1 %v4750_v53 }
0x1c7e   :  { %3963 = vmatprep.subr.mxu1 %v4223_v50 }
0x1d36   :  { %v2611_v25 = vpop.f32.mrf.mxu1 }
0x1d37   :  { %v2612_v1 = vadd.f32 %v4788_v0, %v2611_v25 }
0x1d38   :  { %v3929_v2 = vpop.f32.mrf.mxu1 }
0x1d39   :  { %2623 = vrot.lane.b32.xlu0 %v2612_v1, %s4226_s2  ;;  %v2615_v4 = vadd.f32 %v2612_v1, %v2542_v3 }
0x1d3b   :  { %v3551_v30 = vmul.f32 -1.442695, %v2615_v4 }
0x1d3d   :  { %4062 = vpow2.f32 %v3551_v30  ;;  %v2860_v30 = vld [vmem:[#allocation2 + $0x30] sm:$0x7] }
0x1d4a   :  { %v4063_v5 = vpop.eup %4062 }
0x1d4b   :  { %v2619_v6 = vadd.f32 1.0, %v4063_v5 }
0x1d4d   :  { %4064 = vrcp.f32 %v2619_v6 }
0x1d5a   :  { %v4065_v7 = vpop.eup %4064 }
0x1d5b   :  { %v2633_v13 = vsub.f32 1.0, %v4065_v7  ;;  %v2639_v34 = vmul.f32 %v4065_v7, %v2534_v61 }
0x1dab   :  { %v2624_v8 = vpop.permute.xlu0 %2623 }
0x1dac   :  { %v2626_v10 = vmul.f32 %v4065_v7, %v2624_v8 }
0x1dae   :  { %2628 = vrot.lane.b32.xlu1 %v2626_v10, %s4226_s2 }
0x1e20   :  { %v2629_v11 = vpop.permute.xlu1 %2628 }
0x1e21   :  { %v2631_v12 = vadd.f32 %v2629_v11, %v2542_v3 }
0x1e23   :  { %4066 = vtanh.f32 %v2631_v12 }
0x1e30   :  { %v4067_v49 = vpop.eup %4066 }
0x1e31   :  { %2635 = vrot.lane.b32.xlu0 %v4067_v49, %s4227_s28 }
0x1ea3   :  { %v2636_v14 = vpop.permute.xlu0 %2635 }
0x1ea4   :  { %v2638_v51 = vmul.f32 %v2636_v14, %v2633_v13 }
0x1ea6   :  { %v2640_v16 = vadd.f32 %v2639_v34, %v2638_v51 }
0x1ea8   :  { %2642 = vrot.lane.b32.xlu1 %v2640_v16, %s4227_s28 }
0x1f1a   :  { %v2643_v52 = vpop.permute.xlu1 %2642 }
0x1f1b   :  { %2646 = vst.msk [vmem:[#allocation3 + $0x24] sm:$0x7] %vm1691_vm5, %v2643_v52  ;;  %3939 = vmatmul.mubr.msk.f32.vlgmr.msra.gmra.mxu0 %vm277_vm2, %v2643_v52 }
0x1f1c   :  { %3953 = vmatpush3.msra.mxu0 %v4728_v63  ;;  %3960 = vmatprep.mubr.msk.f32.mxu0 %vm4224_vm3, %v4223_v50 }
0x1f1d   :  { %3954 = vmatprep.subr.mxu0 %v4223_v50 }
0x1f1e   :  { %3955 = vmatpush3.msra.mxu0 %v4737_v9 }
0x1f1f   :  { %3956 = vmatprep.subr.mxu0 %v4223_v50 }
0x1f20   :  { %3957 = vmatpush3.msra.mxu0 %v4743_v15 }
0x1f21   :  { %3958 = vmatprep.subr.mxu0 %v4223_v50 }
0x1f22   :  { %3959 = vmatpush3.msra.mxu0 %v4750_v53 }
0x1f23   :  { %3974 = vmatprep.subr.mxu0 %v4223_v50 }
0x1fdb   :  { %v2717_v17 = vpop.f32.mrf.mxu0 }
0x1fdc   :  { %v2718_v18 = vadd.f32 %v4788_v0, %v2717_v17 }
0x1fdd   :  { %v3940_v19 = vpop.f32.mrf.mxu0 }
0x1fde   :  { %2729 = vrot.lane.b32.xlu0 %v2718_v18, %s4226_s2  ;;  %v2721_v21 = vadd.f32 %v2718_v18, %v2648_v20 }
0x1fe0   :  { %v3553_v22 = vmul.f32 -1.442695, %v2721_v21 }
0x1fe2   :  { %4068 = vpow2.f32 %v3553_v22 }
0x1fef   :  { %v4069_v23 = vpop.eup %4068 }
0x1ff0   :  { %v2725_v24 = vadd.f32 1.0, %v4069_v23 }
0x1ff2   :  { %4070 = vrcp.f32 %v2725_v24 }
0x1fff   :  { %v4071_v26 = vpop.eup %4070 }
0x2000   :  { %v2739_v39 = vsub.f32 1.0, %v4071_v26  ;;  %v2745_v41 = vmul.f32 %v4071_v26, %v2640_v16 }
0x2050   :  { %v2730_v27 = vpop.permute.xlu0 %2729 }
0x2051   :  { %v2732_v35 = vmul.f32 %v4071_v26, %v2730_v27 }
0x2053   :  { %2734 = vrot.lane.b32.xlu1 %v2732_v35, %s4226_s2 }
0x20c5   :  { %v2735_v36 = vpop.permute.xlu1 %2734 }
0x20c6   :  { %v2737_v37 = vadd.f32 %v2735_v36, %v2648_v20 }
0x20c8   :  { %4072 = vtanh.f32 %v2737_v37 }
0x20d5   :  { %v4073_v38 = vpop.eup %4072 }
0x20d6   :  { %2741 = vrot.lane.b32.xlu0 %v4073_v38, %s4227_s28 }
0x2148   :  { %v2742_v40 = vpop.permute.xlu0 %2741 }
0x2149   :  { %v2744_v59 = vmul.f32 %v2742_v40, %v2739_v39 }
0x214b   :  { %v2746_v29 = vadd.f32 %v2745_v41, %v2744_v59 }
0x214d   :  { %2748 = vrot.lane.b32.xlu1 %v2746_v29, %s4227_s28 }
0x21bf   :  { %v2749_v31 = vpop.permute.xlu1 %2748 }
0x21c0   :  { %2752 = vst.msk [vmem:[#allocation3 + $0x28] sm:$0x7] %vm1691_vm5, %v2749_v31  ;;  %3950 = vmatmul.mubr.msk.f32.vlgmr.msra.gmra.mxu1 %vm277_vm2, %v2749_v31 }
0x21c1   :  { %3964 = vmatpush3.msra.mxu1 %v4728_v63  ;;  %3971 = vmatprep.mubr.msk.f32.mxu1 %vm4224_vm3, %v4223_v50 }
0x21c2   :  { %3965 = vmatprep.subr.mxu1 %v4223_v50 }
0x21c3   :  { %3966 = vmatpush3.msra.mxu1 %v4737_v9 }
0x21c4   :  { %3967 = vmatprep.subr.mxu1 %v4223_v50 }
0x21c5   :  { %3968 = vmatpush3.msra.mxu1 %v4743_v15 }
0x21c6   :  { %3969 = vmatprep.subr.mxu1 %v4223_v50 }
0x21c7   :  { %3970 = vmatpush3.msra.mxu1 %v4750_v53 }
0x21c8   :  { %3985 = vmatprep.subr.mxu1 %v4223_v50 }
0x2280   :  { %v2823_v32 = vpop.f32.mrf.mxu1 }
0x2281   :  { %v2824_v42 = vadd.f32 %v4788_v0, %v2823_v32  ;;  %v3072_v32 = vld [vmem:[#allocation2 + $0x38] sm:$0x7] }
0x2282   :  { %v3951_v33 = vpop.f32.mrf.mxu1 }
0x2283   :  { %2835 = vrot.lane.b32.xlu0 %v2824_v42, %s4226_s2  ;;  %v2827_v44 = vadd.f32 %v2824_v42, %v2754_v43 }
0x2285   :  { %v3555_v45 = vmul.f32 -1.442695, %v2827_v44 }
0x2287   :  { %4074 = vpow2.f32 %v3555_v45 }
0x2294   :  { %v4075_v46 = vpop.eup %4074 }
0x2295   :  { %v2831_v47 = vadd.f32 1.0, %v4075_v46 }
0x2297   :  { %4076 = vrcp.f32 %v2831_v47 }
0x22a4   :  { %v4077_v48 = vpop.eup %4076 }
0x22a5   :  { %v2845_v57 = vsub.f32 1.0, %v4077_v48  ;;  %v2851_v61 = vmul.f32 %v4077_v48, %v2746_v29 }
0x22f5   :  { %v2836_v54 = vpop.permute.xlu0 %2835 }
0x22f6   :  { %v2838_v60 = vmul.f32 %v4077_v48, %v2836_v54 }
0x22f8   :  { %2840 = vrot.lane.b32.xlu1 %v2838_v60, %s4226_s2 }
0x236a   :  { %v2841_v55 = vpop.permute.xlu1 %2840 }
0x236b   :  { %v2843_v28 = vadd.f32 %v2841_v55, %v2754_v43 }
0x236d   :  { %4078 = vtanh.f32 %v2843_v28 }
0x237a   :  { %v4079_v56 = vpop.eup %4078 }
0x237b   :  { %2847 = vrot.lane.b32.xlu0 %v4079_v56, %s4227_s28 }
0x23ed   :  { %v2848_v58 = vpop.permute.xlu0 %2847 }
0x23ee   :  { %v2850_v62 = vmul.f32 %v2848_v58, %v2845_v57 }
0x23f0   :  { %v2852_v25 = vadd.f32 %v2851_v61, %v2850_v62 }
0x23f2   :  { %2854 = vrot.lane.b32.xlu1 %v2852_v25, %s4227_s28 }
0x2464   :  { %v2855_v1 = vpop.permute.xlu1 %2854 }
0x2465   :  { %2858 = vst.msk [vmem:[#allocation3 + $0x2c] sm:$0x7] %vm1691_vm5, %v2855_v1  ;;  %3961 = vmatmul.mubr.msk.f32.vlgmr.msra.gmra.mxu0 %vm277_vm2, %v2855_v1 }
0x2466   :  { %3975 = vmatpush3.msra.mxu0 %v4728_v63  ;;  %3982 = vmatprep.mubr.msk.f32.mxu0 %vm4224_vm3, %v4223_v50 }
0x2467   :  { %3976 = vmatprep.subr.mxu0 %v4223_v50 }
0x2468   :  { %3977 = vmatpush3.msra.mxu0 %v4737_v9 }
0x2469   :  { %3978 = vmatprep.subr.mxu0 %v4223_v50 }
0x246a   :  { %3979 = vmatpush3.msra.mxu0 %v4743_v15 }
0x246b   :  { %3980 = vmatprep.subr.mxu0 %v4223_v50 }
0x246c   :  { %3981 = vmatpush3.msra.mxu0 %v4750_v53 }
0x2525   :  { %v2929_v2 = vpop.f32.mrf.mxu0 }
0x2526   :  { %v2930_v3 = vadd.f32 %v4788_v0, %v2929_v2  ;;  %v3178_v2 = vld [vmem:[#allocation2 + $0x3c] sm:$0x7] }
0x2527   :  { %v3962_v4 = vpop.f32.mrf.mxu0 }
0x2528   :  { %2941 = vrot.lane.b32.xlu0 %v2930_v3, %s4226_s2  ;;  %v2933_v5 = vadd.f32 %v2930_v3, %v2860_v30 }
0x252a   :  { %v3557_v6 = vmul.f32 -1.442695, %v2933_v5 }
0x252c   :  { %4080 = vpow2.f32 %v3557_v6 }
0x2539   :  { %v4081_v7 = vpop.eup %4080 }
0x253a   :  { %v2937_v8 = vadd.f32 1.0, %v4081_v7 }
0x253c   :  { %4082 = vrcp.f32 %v2937_v8 }
0x2549   :  { %v4083_v10 = vpop.eup %4082 }
0x254a   :  { %v2951_v34 = vsub.f32 1.0, %v4083_v10  ;;  %v2957_v16 = vmul.f32 %v4083_v10, %v2852_v25 }
0x259a   :  { %v2942_v11 = vpop.permute.xlu0 %2941 }
0x259b   :  { %v2944_v12 = vmul.f32 %v4083_v10, %v2942_v11 }
0x259d   :  { %2946 = vrot.lane.b32.xlu1 %v2944_v12, %s4226_s2 }
0x260f   :  { %v2947_v49 = vpop.permute.xlu1 %2946 }
0x2610   :  { %v2949_v13 = vadd.f32 %v2947_v49, %v2860_v30 }
0x2612   :  { %4084 = vtanh.f32 %v2949_v13 }
0x261f   :  { %v4085_v14 = vpop.eup %4084 }
0x2620   :  { %2953 = vrot.lane.b32.xlu0 %v4085_v14, %s4227_s28 }
0x2692   :  { %v2954_v51 = vpop.permute.xlu0 %2953 }
0x2693   :  { %v2956_v52 = vmul.f32 %v2954_v51, %v2951_v34  ;;  %v3292_v51 = vld [vmem:[#allocation3 + $0x24] sm:$0x1] }
0x2695   :  { %v2958_v17 = vadd.f32 %v2957_v16, %v2956_v52  ;;  %v3363_v16 = vld [vmem:[#allocation3 + $0x25] sm:$0x1]  ;;  %v3428_v52 = vld [vmem:[#allocation3 + $0x26] sm:$0x1] }
0x2697   :  { %2960 = vrot.lane.b32.xlu1 %v2958_v17, %s4227_s28 }
0x2709   :  { %v2961_v18 = vpop.permute.xlu1 %2960 }
0x270a   :  { %2964 = vst.msk [vmem:[#allocation3 + $0x30] sm:$0x7] %vm1691_vm5, %v2961_v18  ;;  %3972 = vmatmul.mubr.msk.f32.vlgmr.msra.gmra.mxu1 %vm277_vm2, %v2961_v18  ;;  %v3294_v18 = vld [vmem:[#allocation3 + $0x2c] sm:$0x1] }
0x270b   :  { %3986 = vmatpush3.msra.mxu1 %v4728_v63  ;;  %3993 = vmatprep.mubr.msk.f32.mxu1 %vm4224_vm3, %v4223_v50  ;;  %v2966_v63 = vld [vmem:[#allocation2 + $0x34] sm:$0x7] }
0x270c   :  { %3987 = vmatprep.subr.mxu1 %v4223_v50 }
0x270d   :  { %3988 = vmatpush3.msra.mxu1 %v4737_v9 }
0x270e   :  { %3989 = vmatprep.subr.mxu1 %v4223_v50 }
0x270f   :  { %3990 = vmatpush3.msra.mxu1 %v4743_v15 }
0x2710   :  { %3991 = vmatprep.subr.mxu1 %v4223_v50 }
0x2711   :  { %3992 = vmatpush3.msra.mxu1 %v4750_v53 }
0x27ca   :  { %v3035_v19 = vpop.f32.mrf.mxu1 }
0x27cb   :  { %v3036_v20 = vadd.f32 %v4788_v0, %v3035_v19  ;;  %v3364_v19 = vld [vmem:[#allocation3 + $0x29] sm:$0x1] }
0x27cc   :  { %v3973_v21 = vpop.f32.mrf.mxu1 }
0x27cd   :  { %3047 = vrot.lane.b32.xlu0 %v3036_v20, %s4226_s2  ;;  %v3039_v22 = vadd.f32 %v3036_v20, %v2966_v63  ;;  %v3429_v20 = vld [vmem:[#allocation3 + $0x2a] sm:$0x1]  ;;  %v3336_v21 = vrot.slane %v3292_v51, 7 }
0x27cf   :  { %v3559_v23 = vmul.f32 -1.442695, %v3039_v22  ;;  %v3465_v22 = vrot.slane %v3428_v52, 7 }
0x27d1   :  { %4086 = vpow2.f32 %v3559_v23  ;;  %v3365_v23 = vld [vmem:[#allocation3 + $0x2d] sm:$0x1] }
0x27de   :  { %v4087_v24 = vpop.eup %4086 }
0x27df   :  { %v3043_v9 = vadd.f32 1.0, %v4087_v24  ;;  %v3295_v24 = vld [vmem:[#allocation3 + $0x30] sm:$0x1] }
0x27e1   :  { %4088 = vrcp.f32 %v3043_v9  ;;  %v3366_v9 = vld [vmem:[#allocation3 + $0x31] sm:$0x1] }
0x27ee   :  { %v4089_v26 = vpop.eup %4088 }
0x27ef   :  { %v3057_v36 = vsub.f32 1.0, %v4089_v26  ;;  %v3063_v38 = vmul.f32 %v4089_v26, %v2958_v17  ;;  %v3293_v17 = vld [vmem:[#allocation3 + $0x28] sm:$0x1] }
0x283f   :  { %v3048_v27 = vpop.permute.xlu0 %3047 }
0x2840   :  { %v3050_v15 = vmul.f32 %v4089_v26, %v3048_v27  ;;  %v3430_v26 = vld [vmem:[#allocation3 + $0x2e] sm:$0x1] }
0x2842   :  { %3052 = vrot.lane.b32.xlu1 %v3050_v15, %s4226_s2  ;;  %v3291_v15 = vld [vmem:[#allocation3 + $0x20] sm:$0x1] }
0x28b4   :  { %v3053_v50 = vpop.permute.xlu1 %3052 }
0x28b5   :  { %v3055_v53 = vadd.f32 %v3053_v50, %v2966_v63  ;;  %v3400_v63 = vrot.slane %v3363_v16, 7  ;;  %v3338_v50 = vrot.slane %v3293_v17, 6 }
0x28b7   :  { %4090 = vtanh.f32 %v3055_v53  ;;  %v3340_v53 = vrot.slane %v3294_v18, 5 }
0x28c4   :  { %v4091_v35 = vpop.eup %4090 }
0x28c5   :  { %3059 = vrot.lane.b32.xlu0 %v4091_v35, %s4227_s28  ;;  %v3362_v35 = vld [vmem:[#allocation3 + $0x21] sm:$0x1] }
0x2937   :  { %v3060_v37 = vpop.permute.xlu0 %3059 }
0x2938   :  { %v3062_v39 = vmul.f32 %v3060_v37, %v3057_v36  ;;  %v3402_v36 = vrot.slane %v3364_v19, 6  ;;  %v3427_v37 = vld [vmem:[#allocation3 + $0x22] sm:$0x1] }
0x293a   :  { %v3064_v40 = vadd.f32 %v3063_v38, %v3062_v39  ;;  %v3467_v38 = vrot.slane %v3429_v20, 6 }
0x293c   :  { %3066 = vrot.lane.b32.xlu1 %v3064_v40, %s4227_s28 }
0x29ae   :  { %v3067_v41 = vpop.permute.xlu1 %3066 }
0x29af   :  { %3070 = vst.msk [vmem:[#allocation3 + $0x34] sm:$0x7] %vm1691_vm5, %v3067_v41  ;;  %3983 = vmatmul.mubr.msk.f32.vlgmr.msra.gmra.mxu0 %vm277_vm2, %v3067_v41  ;;  %v3431_v41 = vld [vmem:[#allocation3 + $0x32] sm:$0x1] }
0x29b6   :  { %v3296_v39 = vld [vmem:[#allocation3 + $0x34] sm:$0x1] }
0x2a6f   :  { %v3141_v59 = vpop.f32.mrf.mxu0 }
0x2a70   :  { %v3142_v29 = vadd.f32 %v4788_v0, %v3141_v59  ;;  %v3342_v59 = vrot.slane %v3295_v24, 4 }
0x2a71   :  { %v3984_v31 = vpop.f32.mrf.mxu0 }
0x2a72   :  { %3153 = vrot.lane.b32.xlu0 %v3142_v29, %s4226_s2  ;;  %v3145_v42 = vadd.f32 %v3142_v29, %v3072_v32  ;;  %v3404_v29 = vrot.slane %v3365_v23, 5  ;;  %v3406_v31 = vrot.slane %v3366_v9, 4 }
0x2a74   :  { %v3561_v33 = vmul.f32 -1.442695, %v3145_v42  ;;  %v3469_v42 = vrot.slane %v3430_v26, 5 }
0x2a76   :  { %4092 = vpow2.f32 %v3561_v33 }
0x2a83   :  { %v4093_v43 = vpop.eup %4092 }
0x2a84   :  { %v3149_v44 = vadd.f32 1.0, %v4093_v43  ;;  %v3337_v43 = vsel %vm3316_vm6, %v3336_v21, %v3291_v15 }
0x2a86   :  { %4094 = vrcp.f32 %v3149_v44 }
0x2a93   :  { %v4095_v45 = vpop.eup %4094 }
0x2a94   :  { %v3163_v55 = vsub.f32 1.0, %v4095_v45  ;;  %v3169_v56 = vmul.f32 %v4095_v45, %v3064_v40  ;;  %v3367_v40 = vld [vmem:[#allocation3 + $0x35] sm:$0x1] }
0x2ae4   :  { %v3154_v46 = vpop.permute.xlu0 %3153 }
0x2ae5   :  { %v3156_v47 = vmul.f32 %v4095_v45, %v3154_v46  ;;  %v3401_v45 = vsel %vm3316_vm6, %v3400_v63, %v3362_v35 }
0x2ae7   :  { %3158 = vrot.lane.b32.xlu1 %v3156_v47, %s4226_s2  ;;  %v3466_v47 = vsel %vm3316_vm6, %v3465_v22, %v3427_v37 }
0x2b59   :  { %v3159_v48 = vpop.permute.xlu1 %3158 }
0x2b5a   :  { %v3161_v54 = vadd.f32 %v3159_v48, %v3072_v32  ;;  %v3432_v32 = vld [vmem:[#allocation3 + $0x36] sm:$0x1]  ;;  %v3339_v48 = vsel %vm3319_vm7, %v3338_v50, %v3337_v43 }
0x2b5c   :  { %4096 = vtanh.f32 %v3161_v54  ;;  %v3344_v54 = vrot.slane %v3296_v39, 3 }
0x2b69   :  { %v4097_v60 = vpop.eup %4096 }
0x2b6a   :  { %3165 = vrot.lane.b32.xlu0 %v4097_v60, %s4227_s28  ;;  %v3408_v60 = vrot.slane %v3367_v40, 3 }
0x2bdc   :  { %v3166_v28 = vpop.permute.xlu0 %3165 }
0x2bdd   :  { %v3168_v57 = vmul.f32 %v3166_v28, %v3163_v55  ;;  %v3471_v55 = vrot.slane %v3431_v41, 4  ;;  %v3341_v28 = vsel %vm3322_vm8, %v3340_v53, %v3339_v48 }
0x2bdf   :  { %v3170_v58 = vadd.f32 %v3169_v56, %v3168_v57  ;;  %v3403_v56 = vsel %vm3319_vm7, %v3402_v36, %v3401_v45  ;;  %v3468_v57 = vsel %vm3319_vm7, %v3467_v38, %v3466_v47 }
0x2be1   :  { %3172 = vrot.lane.b32.xlu1 %v3170_v58, %s4227_s28 }
0x2c53   :  { %v3173_v61 = vpop.permute.xlu1 %3172 }
0x2c54   :  { %3176 = vst.msk [vmem:[#allocation3 + $0x38] sm:$0x7] %vm1691_vm5, %v3173_v61  ;;  %3994 = vmatmul.mubr.msk.f32.vlgmr.msra.gmra.mxu1 %vm277_vm2, %v3173_v61 }
0x2c5b   :  { %v3297_v33 = vld [vmem:[#allocation3 + $0x38] sm:$0x1]  ;;  %v3368_v44 = vld [vmem:[#allocation3 + $0x39] sm:$0x1]  ;;  %v3433_v46 = vld [vmem:[#allocation3 + $0x3a] sm:$0x1] }
0x2c5c   :  { %v3346_v61 = vrot.slane %v3297_v33, 2 }
0x2d14   :  { %v3247_v62 = vpop.f32.mrf.mxu1 }
0x2d15   :  { %v3248_v25 = vadd.f32 %v4788_v0, %v3247_v62  ;;  %v3405_v62 = vsel %vm3322_vm8, %v3404_v29, %v3403_v56 }
0x2d16   :  { %v3995_v1 = vpop.f32.mrf.mxu1 }
0x2d17   :  { %3259 = vrot.lane.b32.xlu0 %v3248_v25, %s4226_s2  ;;  %v3251_v3 = vadd.f32 %v3248_v25, %v3178_v2  ;;  %v3410_v25 = vrot.slane %v3368_v44, 2  ;;  %v3475_v1 = vrot.slane %v3433_v46, 2 }
0x2d19   :  { %v3563_v4 = vmul.f32 -1.442695, %v3251_v3  ;;  %v3407_v3 = vsel %vm3325_vm9, %v3406_v31, %v3405_v62 }
0x2d1b   :  { %4098 = vpow2.f32 %v3563_v4  ;;  %v3470_v4 = vsel %vm3322_vm8, %v3469_v42, %v3468_v57 }
0x2d28   :  { %v4099_v30 = vpop.eup %4098 }
0x2d29   :  { %v3255_v5 = vadd.f32 1.0, %v4099_v30 }
0x2d2b   :  { %4100 = vrcp.f32 %v3255_v5 }
0x2d38   :  { %v4101_v6 = vpop.eup %4100 }
0x2d39   :  { %v3269_v0 = vsub.f32 1.0, %v4101_v6  ;;  %v3275_v13 = vmul.f32 %v4101_v6, %v3170_v58  ;;  %v3473_v58 = vrot.slane %v3432_v32, 3 }
0x2d89   :  { %v3260_v7 = vpop.permute.xlu0 %3259 }
0x2d8a   :  { %v3262_v8 = vmul.f32 %v4101_v6, %v3260_v7  ;;  %v3409_v7 = vsel %vm3328_vm10, %v3408_v60, %v3407_v3 }
0x2d8c   :  { %3264 = vrot.lane.b32.xlu1 %v3262_v8, %s4226_s2 }
0x2dfe   :  { %v3265_v10 = vpop.permute.xlu1 %3264 }
0x2dff   :  { %v3267_v11 = vadd.f32 %v3265_v10, %v3178_v2  ;;  %v3343_v2 = vsel %vm3325_vm9, %v3342_v59, %v3341_v28  ;;  %v3472_v10 = vsel %vm3325_vm9, %v3471_v55, %v3470_v4 }
0x2e00   :  { %v3345_v5 = vsel %vm3328_vm10, %v3344_v54, %v3343_v2 }
0x2e01   :  { %4102 = vtanh.f32 %v3267_v11 }
0x2e0e   :  { %v4103_v12 = vpop.eup %4102 }
0x2e0f   :  { %3271 = vrot.lane.b32.xlu0 %v4103_v12, %s4227_s28 }
0x2e81   :  { %v3272_v49 = vpop.permute.xlu0 %3271 }
0x2e82   :  { %v3274_v14 = vmul.f32 %v3272_v49, %v3269_v0  ;;  %v3474_v0 = vsel %vm3328_vm10, %v3473_v58, %v3472_v10 }
0x2e84   :  { %v3276_v34 = vadd.f32 %v3275_v13, %v3274_v14  ;;  %v3347_v13 = vsel %vm3331_vm11, %v3346_v61, %v3345_v5  ;;  %v3411_v14 = vsel %vm3331_vm11, %v3410_v25, %v3409_v7 }
0x2e86   :  { %3278 = vrot.lane.b32.xlu1 %v3276_v34, %s4227_s28  ;;  %v3476_v34 = vsel %vm3331_vm11, %v3475_v1, %v3474_v0 }
0x2ef8   :  { %v3279_v27 = vpop.permute.xlu1 %3278 }
0x2ef9   :  { %3282 = vst.msk [vmem:[#allocation3 + $0x3c] sm:$0x7] %vm1691_vm5, %v3279_v27 }
0x2f00   :  { %v3298_v30 = vld [vmem:[#allocation3 + $0x3c] sm:$0x1]  ;;  %v3369_v6 = vld [vmem:[#allocation3 + $0x3d] sm:$0x1]  ;;  %v3434_v8 = vld [vmem:[#allocation3 + $0x3e] sm:$0x1] }
0x2f01   :  { %v3348_v11 = vrot.slane %v3298_v30, 1  ;;  %v3412_v12 = vrot.slane %v3369_v6, 1  ;;  %v3477_v49 = vrot.slane %v3434_v8, 1 }
0x2f03   :  { %v3349_v51 = vsel %vm3334_vm12, %v3348_v11, %v3347_v13  ;;  %v3413_v16 = vsel %vm3334_vm12, %v3412_v12, %v3411_v14  ;;  %v3478_v52 = vsel %vm3334_vm12, %v3477_v49, %v3476_v34 }
0x2f04   :  { %3353 = vst.msk [vmem:[#allocation12 + $0x8] sm:$0xff] %vm277_vm2, %v3349_v51  ;;  %3418 = vst.msk [vmem:[#allocation12 + $0x18] sm:$0xff] %vm277_vm2, %v3413_v16 }
0x2f05   :  { %3483 = vst.msk [vmem:[#allocation12 + $0x28] sm:$0xff] %vm277_vm2, %v3478_v52 }
0x2f06   :  { %4200 = shalt.err (!%p4197_p10)
}
0x2f07   :  { %3495 = dma.vmem_to_hbm [thread:$0]  %s3490_s0, 768, %s4916_s10, [#allocation6], %s4219_s21, %s4219_s21, %s4220_s22  }
0x2f08   :  { %4215 = dma.done.wait [#allocation6], 768  }
0x2f09   :  { %4216 = vsyncadd [#allocation6], 4294966528 }
0x2f0a   :  { %3499 = vsyncpa [#allocation5], 1 }
0x2f0b   :  { %3500 = vsyncpa [#allocation8], 1 }
0x2f0c   :  { %3501 = vsyncpa [#allocation11], 1 }
0x2f0d   :  { %3502 = vsyncpa [#allocation6], 1 }

</bundles_post_ra>
